<compile_context>
chip_gen: v6e
topology: v6e:2x2x1
jax: 0.10.0
libtpu: 0.0.40
codegen_flags: <defaults>
</compile_context>

<pallas_src>
import functools

import jax
import jax.numpy as jnp
from jax import lax
from jax.experimental import pallas as pl
from jax.experimental.pallas import tpu as pltpu


# ----------------------------- kernel helpers -----------------------------

def _layer_norm(v, g, b, eps=1e-5):
    mu = jnp.mean(v, axis=-1, keepdims=True)
    var = jnp.mean(jnp.square(v - mu), axis=-1, keepdims=True)
    return (v - mu) * lax.rsqrt(var + eps) * g + b


def _sel(shape, pred):
    """0/1 f32 selection matrix built from 2-D iotas (VPU-only)."""
    r = lax.broadcasted_iota(jnp.int32, shape, 0)
    c = lax.broadcasted_iota(jnp.int32, shape, 1)
    return jnp.where(pred(r, c), 1.0, 0.0).astype(jnp.float32)


# ----------------------------- fused MICN kernel -----------------------------

def _micn_kernel(
    # inputs
    dm_a_ref, dm_c_ref, xpad_ref,
    wconv_ref, bconv_ref, wiso_ref, biso_ref, wct_ref, bct_ref,
    ln_ref,
    wmg_ref, bmg_ref, wc1_ref, bc1_ref, wc2_ref, bc2_ref,
    wpj_ref, bpj_ref,
    wp1_ref, bp1_ref, wp2_ref, bp2_ref, wp3_ref, bp3_ref,
    # output
    out_ref,
    # scratch
    xz_ref,
    *, L, pad, dm_k, mic_k, k_iso,
):
    f32 = jnp.float32
    Lc = L // 2 + 1                 # length after Conv1d(k=2, pad=1, stride=2)
    Li = 2 * Lc - k_iso             # length after isometric conv

    xp = xpad_ref[0]                # [L + 2*pad, C] replicate-padded series
    C = xp.shape[1]
    x = xp[pad:pad + L, :]          # [L, C] original series

    # ---------------- centered moving means (shared incremental sums) -------
    # moving_avg(k): mean over window [-h, +h] with replicate padding, h odd.
    # Sums for increasing k reuse the previous (smaller) window's sum.
    means = {}
    s = x                           # offset-0 term
    half_done = 0
    for k in sorted(set(dm_k) | {mic_k}):
        h = (k - 1) // 2
        for d in range(half_done + 1, h + 1):
            s = s + xp[pad - d:pad - d + L, :] + xp[pad + d:pad + d + L, :]
        half_done = h
        means[k] = s * (1.0 / float(k))

    # ---------------- series_decomp_multi -> trend ----------------
    # softmax over Linear(1,2)(x) reduced to one sigmoid:
    #   p0 = sigmoid((w0-w1)*x + (b0-b1))
    z = x * dm_a_ref[...] + dm_c_ref[...]
    p0 = 1.0 / (1.0 + jnp.exp(-z))
    trend = means[dm_k[0]] * p0 + means[dm_k[1]] * (1.0 - p0)   # [L, C]

    # ---------------- MIC: series_decomp(3) seasonal ----------------
    src = x - means[mic_k]                                       # [L, C]

    # ----- conv_trans_conv -----
    # Conv1d(C,C,k=2,pad=1,stride=2) + tanh : per-tap dots + even/odd select.
    y0 = jnp.dot(src, wconv_ref[0], preferred_element_type=f32)
    y1 = jnp.dot(src, wconv_ref[1], preferred_element_type=f32)
    s0 = _sel((Lc, L), lambda r, c: c == 2 * r - 1)        # tap 0 reads row 2t-1
    s1 = _sel((Lc, L), lambda r, c: c == 2 * r)            # tap 1 reads row 2t
    x1 = jnp.tanh(jnp.dot(s0, y0, preferred_element_type=f32)
                  + jnp.dot(s1, y1, preferred_element_type=f32)
                  + bconv_ref[...])                        # [Lc, C]

    # prepend (Lc-1) zeros along the sequence, isometric Conv1d(k_iso) + tanh.
    xz_ref[0:Lc - 1, :] = jnp.zeros((Lc - 1, C), f32)      # aligned zero prefix
    xz_ref[Lc - 1:, :] = x1
    acc = jnp.zeros((Li, C), f32)
    for j in range(k_iso):
        acc = acc + jnp.dot(xz_ref[j:j + Li, :], wiso_ref[j],
                            preferred_element_type=f32)
    xiso = jnp.tanh(acc + biso_ref[...])                   # [Li, C]

    ng, nb = ln_ref[0:1, :], ln_ref[1:2, :]
    n1g, n1b = ln_ref[2:3, :], ln_ref[3:4, :]
    n2g, n2b = ln_ref[4:5, :], ln_ref[5:6, :]

    # norm(x + x)  -- the reference module adds the tensor to itself here.
    xn = _layer_norm(xiso + xiso, ng, nb)                  # [Li, C]

    # ConvTranspose1d(C,C,k=2,stride=2) + tanh, truncated to first L rows.
    z0 = jnp.dot(xn, wct_ref[0], preferred_element_type=f32)
    z1 = jnp.dot(xn, wct_ref[1], preferred_element_type=f32)
    u0 = _sel((L, Li), lambda r, c: r == 2 * c)            # out[2t]   = z0[t]
    u1 = _sel((L, Li), lambda r, c: r == 2 * c + 1)        # out[2t+1] = z1[t]
    xup = jnp.tanh(jnp.dot(u0, z0, preferred_element_type=f32)
                   + jnp.dot(u1, z1, preferred_element_type=f32)
                   + bct_ref[...])                         # [L, C]

    xr = _layer_norm(xup + src, ng, nb)                    # norm(x + input)

    # ----- merge(1x1) / norm1 / conv1 / conv2 / norm2 / projection -----
    mg = jnp.dot(xr, wmg_ref[...], preferred_element_type=f32) + bmg_ref[...]
    y = _layer_norm(mg, n1g, n1b)
    h = jnp.dot(y, wc1_ref[...], preferred_element_type=f32) + bc1_ref[...]
    y = jnp.dot(h, wc2_ref[...], preferred_element_type=f32) + bc2_ref[...]
    mic_out = _layer_norm(mg + y, n2g, n2b)                # [L, C]

    dec = jnp.dot(mic_out, wpj_ref[...], preferred_element_type=f32) + bpj_ref[...]

    # ---------------- output heads ----------------
    # trend path: proj1 over seq, proj2 over channels
    t1 = jnp.dot(wp1_ref[...], trend, preferred_element_type=f32) + bp1_ref[...]   # [P, C]
    t2 = jnp.dot(t1, wp2_ref[...], preferred_element_type=f32) + bp2_ref[...]      # [P, c_out]
    # seasonal path: proj3 over seq
    d3 = jnp.dot(wp3_ref[...], dec, preferred_element_type=f32) + bp3_ref[...]     # [P, c_out]

    out_ref[0] = (t2 + d3).astype(out_ref.dtype)


# ----------------------------- wrapper -----------------------------

def micn_forward(x_enc, w, *, dm_kernels=(13, 17), mic_decomp_kernel=3):
    B, L, C = x_enc.shape
    P = w["w_p1"].shape[0]
    c_out = w["w_pj"].shape[1]
    k_iso = w["w_iso"].shape[0]

    Lc = L // 2 + 1
    Li = 2 * Lc - k_iso
    assert Li >= 1 and 2 * Li >= L, "seq_len too short for the isometric kernel"
    assert all(k % 2 == 1 for k in (*dm_kernels, mic_decomp_kernel)), \
        "only odd (centered) decomposition kernels are supported"

    # Single replicate-pad covering every decomposition kernel.
    pad = max(max((k - 1) // 2 for k in dm_kernels), (mic_decomp_kernel - 1) // 2)
    front = jnp.broadcast_to(x_enc[:, :1, :], (B, pad, C))
    back = jnp.broadcast_to(x_enc[:, -1:, :], (B, pad, C))
    xpad = jnp.concatenate([front, x_enc, back], axis=1).astype(jnp.float32)
    Lp = L + 2 * pad

    kernel = functools.partial(
        _micn_kernel, L=L, pad=pad, dm_k=tuple(dm_kernels),
        mic_k=mic_decomp_kernel, k_iso=k_iso)

    def full2d(shape):
        return pl.BlockSpec(shape, lambda b: (0, 0))

    def full3d(shape):
        return pl.BlockSpec(shape, lambda b: (0, 0, 0))

    grid_spec = pltpu.PrefetchScalarGridSpec(
        num_scalar_prefetch=0,
        grid=(B,),
        in_specs=[
            full2d((1, 1)), full2d((1, 1)),                   # dm_a, dm_c
            pl.BlockSpec((1, Lp, C), lambda b: (b, 0, 0)),    # padded input (per batch)
            full3d((2, C, C)), full2d((1, C)),                # downsampling conv
            full3d((k_iso, C, C)), full2d((1, C)),            # isometric conv
            full3d((2, C, C)), full2d((1, C)),                # transposed conv
            full2d((6, C)),                                   # stacked LayerNorm params
            full2d((C, C)), full2d((1, C)),                   # merge (1x1 conv2d)
            full2d((C, 4 * C)), full2d((1, 4 * C)),           # conv1
            full2d((4 * C, C)), full2d((1, C)),               # conv2
            full2d((C, c_out)), full2d((1, c_out)),           # SeasonalPrediction projection
            full2d((P, L)), full2d((P, 1)),                   # proj1
            full2d((C, c_out)), full2d((1, c_out)),           # proj2
            full2d((P, L)), full2d((P, 1)),                   # proj3
        ],
        out_specs=pl.BlockSpec((1, P, c_out), lambda b: (b, 0, 0)),
        scratch_shapes=[pltpu.VMEM((2 * Lc - 1, C), jnp.float32)],
    )

    return pl.pallas_call(
        kernel,
        out_shape=jax.ShapeDtypeStruct((B, P, c_out), jnp.float32),
        grid_spec=grid_spec,
        compiler_params=pltpu.CompilerParams(
            dimension_semantics=("parallel",)),
    )(w["dm_a"], w["dm_c"], xpad,
      w["w_conv"], w["b_conv"], w["w_iso"], w["b_iso"], w["w_ct"], w["b_ct"],
      w["ln"],
      w["w_mg"], w["b_mg"], w["w_c1"], w["b_c1"], w["w_c2"], w["b_c2"],
      w["w_pj"], w["b_pj"],
      w["w_p1"], w["b_p1"], w["w_p2"], w["b_p2"], w["w_p3"], w["b_p3"])


# ----------------------------- parameters -----------------------------

def init_params(key, C, L, P, c_out, conv_kernel=(12, 16),
                mic_conv_kernel=2, mic_iso_kernel=18):
    """Synthetic params in the PyTorch module's native shapes."""
    decomp_kernel = tuple(k + 1 for k in conv_kernel)  # (13, 17)
    keys = jax.random.split(key, 20)

    def w(k, shape, scale=0.1):
        return (scale * jax.random.normal(k, shape)).astype(jnp.float32)

    p = {
        "dm_w": w(keys[0], (2, 1)), "dm_b": w(keys[1], (2,), 0.05),
        "proj1_w": w(keys[2], (P, L)), "proj1_b": w(keys[3], (P,), 0.05),
        "proj2_w": w(keys[4], (c_out, C)), "proj2_b": w(keys[5], (c_out,), 0.05),
        "proj3_w": w(keys[6], (P, L)), "proj3_b": w(keys[7], (P,), 0.05),
        "projection_w": w(keys[8], (c_out, C)), "projection_b": w(keys[9], (c_out,), 0.05),
        "conv_w": w(keys[10], (C, C, mic_conv_kernel)), "conv_b": w(keys[11], (C,), 0.05),
        "iso_w": w(keys[12], (C, C, mic_iso_kernel)), "iso_b": w(keys[13], (C,), 0.05),
        "ct_w": w(keys[14], (C, C, mic_conv_kernel)), "ct_b": w(keys[15], (C,), 0.05),
        "merge_w": w(keys[16], (C, C, 1, 1)), "merge_b": w(keys[17], (C,), 0.05),
        "conv1_w": w(keys[18], (4 * C, C, 1)), "conv1_b": jnp.zeros((4 * C,), jnp.float32),
        "conv2_w": w(keys[19], (C, 4 * C, 1)), "conv2_b": jnp.zeros((C,), jnp.float32),
        "norm_g": jnp.ones((C,), jnp.float32), "norm_b": jnp.zeros((C,), jnp.float32),
        "norm1_g": jnp.ones((C,), jnp.float32), "norm1_b": jnp.zeros((C,), jnp.float32),
        "norm2_g": jnp.ones((C,), jnp.float32), "norm2_b": jnp.zeros((C,), jnp.float32),
    }
    return p, decomp_kernel


def pack_params(p):
    """One-time re-layout of PyTorch-shaped params into kernel (MXU) layouts."""
    f32 = jnp.float32
    C = p["merge_b"].shape[0]
    return {
        # softmax(Linear(1,2)) folded into sigmoid((w0-w1)x + (b0-b1))
        "dm_a": (p["dm_w"][0, 0] - p["dm_w"][1, 0]).reshape(1, 1).astype(f32),
        "dm_c": (p["dm_b"][0] - p["dm_b"][1]).reshape(1, 1).astype(f32),
        # Conv1d weight [Co,Ci,k] -> tap-major [k,Ci,Co]
        "w_conv": jnp.transpose(p["conv_w"], (2, 1, 0)).astype(f32),
        "b_conv": p["conv_b"].reshape(1, -1).astype(f32),
        "w_iso": jnp.transpose(p["iso_w"], (2, 1, 0)).astype(f32),
        "b_iso": p["iso_b"].reshape(1, -1).astype(f32),
        # ConvTranspose1d weight [Ci,Co,k] -> tap-major [k,Ci,Co]
        "w_ct": jnp.transpose(p["ct_w"], (2, 0, 1)).astype(f32),
        "b_ct": p["ct_b"].reshape(1, -1).astype(f32),
        "ln": jnp.stack([p["norm_g"], p["norm_b"], p["norm1_g"], p["norm1_b"],
                         p["norm2_g"], p["norm2_b"]]).astype(f32),
        "w_mg": p["merge_w"].reshape(C, C).T.astype(f32),
        "b_mg": p["merge_b"].reshape(1, -1).astype(f32),
        "w_c1": p["conv1_w"].reshape(4 * C, C).T.astype(f32),
        "b_c1": p["conv1_b"].reshape(1, -1).astype(f32),
        "w_c2": p["conv2_w"].reshape(C, 4 * C).T.astype(f32),
        "b_c2": p["conv2_b"].reshape(1, -1).astype(f32),
        "w_pj": p["projection_w"].T.astype(f32),
        "b_pj": p["projection_b"].reshape(1, -1).astype(f32),
        "w_p1": p["proj1_w"].astype(f32),
        "b_p1": p["proj1_b"].reshape(-1, 1).astype(f32),
        "w_p2": p["proj2_w"].T.astype(f32),
        "b_p2": p["proj2_b"].reshape(1, -1).astype(f32),
        "w_p3": p["proj3_w"].astype(f32),
        "b_p3": p["proj3_b"].reshape(-1, 1).astype(f32),
    }


# ----------------------------- main -----------------------------

if __name__ == "__main__":
    # seq_len >= 32 so the default isometric kernel (18) fits and the
    # transposed conv covers the full sequence.
    B, L, C = 2, 32, 32          # batch, seq_len, d_model
    P, c_out = 8, 4              # pred_len, c_out

    key = jax.random.PRNGKey(0)
    kx, kp = jax.random.split(key)
    x_enc = jax.random.normal(kx, (B, L, C), dtype=jnp.float32)
    params, dm_kernels = init_params(kp, C, L, P, c_out)
    packed = pack_params(params)

    fwd = jax.jit(functools.partial(
        micn_forward, dm_kernels=dm_kernels, mic_decomp_kernel=3))
    out = fwd(x_enc, packed)
    jax.block_until_ready(out)

    assert out.shape == (B, P, c_out), out.shape
    assert bool(jnp.all(jnp.isfinite(out)))
    print("KERNEL_OK")
</pallas_src>

<mosaic_0001>
module attributes {stable_mosaic.version = 11 : i64} {
  func.func @_micn_kernel(%arg0: i32, %arg1: memref<1x1xf32, #tpu.memory_space<vmem>>, %arg2: memref<1x1xf32, #tpu.memory_space<vmem>>, %arg3: memref<1x48x32xf32, #tpu.memory_space<vmem>>, %arg4: memref<2x32x32xf32, #tpu.memory_space<vmem>>, %arg5: memref<1x32xf32, #tpu.memory_space<vmem>>, %arg6: memref<18x32x32xf32, #tpu.memory_space<vmem>>, %arg7: memref<1x32xf32, #tpu.memory_space<vmem>>, %arg8: memref<2x32x32xf32, #tpu.memory_space<vmem>>, %arg9: memref<1x32xf32, #tpu.memory_space<vmem>>, %arg10: memref<6x32xf32, #tpu.memory_space<vmem>>, %arg11: memref<32x32xf32, #tpu.memory_space<vmem>>, %arg12: memref<1x32xf32, #tpu.memory_space<vmem>>, %arg13: memref<32x128xf32, #tpu.memory_space<vmem>>, %arg14: memref<1x128xf32, #tpu.memory_space<vmem>>, %arg15: memref<128x32xf32, #tpu.memory_space<vmem>>, %arg16: memref<1x32xf32, #tpu.memory_space<vmem>>, %arg17: memref<32x4xf32, #tpu.memory_space<vmem>>, %arg18: memref<1x4xf32, #tpu.memory_space<vmem>>, %arg19: memref<8x32xf32, #tpu.memory_space<vmem>>, %arg20: memref<8x1xf32, #tpu.memory_space<vmem>>, %arg21: memref<32x4xf32, #tpu.memory_space<vmem>>, %arg22: memref<1x4xf32, #tpu.memory_space<vmem>>, %arg23: memref<8x32xf32, #tpu.memory_space<vmem>>, %arg24: memref<8x1xf32, #tpu.memory_space<vmem>>, %arg25: memref<1x8x4xf32, #tpu.memory_space<vmem>>, %arg26: memref<33x32xf32, #tpu.memory_space<vmem>>) attributes {dimension_semantics = [#tpu.dimension_semantics<parallel>], iteration_bounds = array<i64: 2>, scalar_prefetch = 0 : i64, scratch_operands = 1 : i64, tpu.core_type = #tpu.core_type<tc>, window_params = [{pipeline_mode = #tpu.pipeline_mode<synchronous>, transform_indices = @transform_0, window_bounds = array<i64: 1, 1>}, {pipeline_mode = #tpu.pipeline_mode<synchronous>, transform_indices = @transform_1, window_bounds = array<i64: 1, 1>}, {transform_indices = @transform_2, window_bounds = array<i64: 1, 48, 32>}, {pipeline_mode = #tpu.pipeline_mode<synchronous>, transform_indices = @transform_3, window_bounds = array<i64: 2, 32, 32>}, {pipeline_mode = #tpu.pipeline_mode<synchronous>, transform_indices = @transform_4, window_bounds = array<i64: 1, 32>}, {pipeline_mode = #tpu.pipeline_mode<synchronous>, transform_indices = @transform_5, window_bounds = array<i64: 18, 32, 32>}, {pipeline_mode = #tpu.pipeline_mode<synchronous>, transform_indices = @transform_6, window_bounds = array<i64: 1, 32>}, {pipeline_mode = #tpu.pipeline_mode<synchronous>, transform_indices = @transform_7, window_bounds = array<i64: 2, 32, 32>}, {pipeline_mode = #tpu.pipeline_mode<synchronous>, transform_indices = @transform_8, window_bounds = array<i64: 1, 32>}, {pipeline_mode = #tpu.pipeline_mode<synchronous>, transform_indices = @transform_9, window_bounds = array<i64: 6, 32>}, {pipeline_mode = #tpu.pipeline_mode<synchronous>, transform_indices = @transform_10, window_bounds = array<i64: 32, 32>}, {pipeline_mode = #tpu.pipeline_mode<synchronous>, transform_indices = @transform_11, window_bounds = array<i64: 1, 32>}, {pipeline_mode = #tpu.pipeline_mode<synchronous>, transform_indices = @transform_12, window_bounds = array<i64: 32, 128>}, {pipeline_mode = #tpu.pipeline_mode<synchronous>, transform_indices = @transform_13, window_bounds = array<i64: 1, 128>}, {pipeline_mode = #tpu.pipeline_mode<synchronous>, transform_indices = @transform_14, window_bounds = array<i64: 128, 32>}, {pipeline_mode = #tpu.pipeline_mode<synchronous>, transform_indices = @transform_15, window_bounds = array<i64: 1, 32>}, {pipeline_mode = #tpu.pipeline_mode<synchronous>, transform_indices = @transform_16, window_bounds = array<i64: 32, 4>}, {pipeline_mode = #tpu.pipeline_mode<synchronous>, transform_indices = @transform_17, window_bounds = array<i64: 1, 4>}, {pipeline_mode = #tpu.pipeline_mode<synchronous>, transform_indices = @transform_18, window_bounds = array<i64: 8, 32>}, {pipeline_mode = #tpu.pipeline_mode<synchronous>, transform_indices = @transform_19, window_bounds = array<i64: 8, 1>}, {pipeline_mode = #tpu.pipeline_mode<synchronous>, transform_indices = @transform_20, window_bounds = array<i64: 32, 4>}, {pipeline_mode = #tpu.pipeline_mode<synchronous>, transform_indices = @transform_21, window_bounds = array<i64: 1, 4>}, {pipeline_mode = #tpu.pipeline_mode<synchronous>, transform_indices = @transform_22, window_bounds = array<i64: 8, 32>}, {pipeline_mode = #tpu.pipeline_mode<synchronous>, transform_indices = @transform_23, window_bounds = array<i64: 8, 1>}, {transform_indices = @transform_24, window_bounds = array<i64: 1, 8, 4>}]} {
    %c0 = arith.constant 0 : index
    %c0_0 = arith.constant 0 : index
    %c0_1 = arith.constant 0 : index
    %0 = vector.load %arg3[%c0, %c0_0, %c0_1] : memref<1x48x32xf32, #tpu.memory_space<vmem>>, vector<1x48x32xf32>
    %1 = vector.shape_cast %0 : vector<1x48x32xf32> to vector<48x32xf32>
    %2 = vector.extract_strided_slice %1 {offsets = [8, 0], sizes = [32, 32], strides = [1, 1]} : vector<48x32xf32> to vector<32x32xf32>
    %3 = vector.extract_strided_slice %1 {offsets = [7, 0], sizes = [32, 32], strides = [1, 1]} : vector<48x32xf32> to vector<32x32xf32>
    %4 = arith.addf %2, %3 : vector<32x32xf32>
    %5 = vector.extract_strided_slice %1 {offsets = [9, 0], sizes = [32, 32], strides = [1, 1]} : vector<48x32xf32> to vector<32x32xf32>
    %6 = arith.addf %4, %5 : vector<32x32xf32>
    %cst = arith.constant 0.333333343 : f32
    %7 = vector.broadcast %cst : f32 to vector<32x32xf32>
    %8 = arith.mulf %6, %7 : vector<32x32xf32>
    %9 = vector.extract_strided_slice %1 {offsets = [6, 0], sizes = [32, 32], strides = [1, 1]} : vector<48x32xf32> to vector<32x32xf32>
    %10 = arith.addf %6, %9 : vector<32x32xf32>
    %11 = vector.extract_strided_slice %1 {offsets = [10, 0], sizes = [32, 32], strides = [1, 1]} : vector<48x32xf32> to vector<32x32xf32>
    %12 = arith.addf %10, %11 : vector<32x32xf32>
    %13 = vector.extract_strided_slice %1 {offsets = [5, 0], sizes = [32, 32], strides = [1, 1]} : vector<48x32xf32> to vector<32x32xf32>
    %14 = arith.addf %12, %13 : vector<32x32xf32>
    %15 = vector.extract_strided_slice %1 {offsets = [11, 0], sizes = [32, 32], strides = [1, 1]} : vector<48x32xf32> to vector<32x32xf32>
    %16 = arith.addf %14, %15 : vector<32x32xf32>
    %17 = vector.extract_strided_slice %1 {offsets = [4, 0], sizes = [32, 32], strides = [1, 1]} : vector<48x32xf32> to vector<32x32xf32>
    %18 = arith.addf %16, %17 : vector<32x32xf32>
    %19 = vector.extract_strided_slice %1 {offsets = [12, 0], sizes = [32, 32], strides = [1, 1]} : vector<48x32xf32> to vector<32x32xf32>
    %20 = arith.addf %18, %19 : vector<32x32xf32>
    %21 = vector.extract_strided_slice %1 {offsets = [3, 0], sizes = [32, 32], strides = [1, 1]} : vector<48x32xf32> to vector<32x32xf32>
    %22 = arith.addf %20, %21 : vector<32x32xf32>
    %23 = vector.extract_strided_slice %1 {offsets = [13, 0], sizes = [32, 32], strides = [1, 1]} : vector<48x32xf32> to vector<32x32xf32>
    %24 = arith.addf %22, %23 : vector<32x32xf32>
    %25 = vector.extract_strided_slice %1 {offsets = [2, 0], sizes = [32, 32], strides = [1, 1]} : vector<48x32xf32> to vector<32x32xf32>
    %26 = arith.addf %24, %25 : vector<32x32xf32>
    %27 = vector.extract_strided_slice %1 {offsets = [14, 0], sizes = [32, 32], strides = [1, 1]} : vector<48x32xf32> to vector<32x32xf32>
    %28 = arith.addf %26, %27 : vector<32x32xf32>
    %cst_2 = arith.constant 0.0769230798 : f32
    %29 = vector.broadcast %cst_2 : f32 to vector<32x32xf32>
    %30 = arith.mulf %28, %29 : vector<32x32xf32>
    %31 = vector.extract_strided_slice %1 {offsets = [1, 0], sizes = [32, 32], strides = [1, 1]} : vector<48x32xf32> to vector<32x32xf32>
    %32 = arith.addf %28, %31 : vector<32x32xf32>
    %33 = vector.extract_strided_slice %1 {offsets = [15, 0], sizes = [32, 32], strides = [1, 1]} : vector<48x32xf32> to vector<32x32xf32>
    %34 = arith.addf %32, %33 : vector<32x32xf32>
    %35 = vector.extract_strided_slice %1 {offsets = [0, 0], sizes = [32, 32], strides = [1, 1]} : vector<48x32xf32> to vector<32x32xf32>
    %36 = arith.addf %34, %35 : vector<32x32xf32>
    %37 = vector.extract_strided_slice %1 {offsets = [16, 0], sizes = [32, 32], strides = [1, 1]} : vector<48x32xf32> to vector<32x32xf32>
    %38 = arith.addf %36, %37 : vector<32x32xf32>
    %cst_3 = arith.constant 0.0588235296 : f32
    %39 = vector.broadcast %cst_3 : f32 to vector<32x32xf32>
    %40 = arith.mulf %38, %39 : vector<32x32xf32>
    %c0_4 = arith.constant 0 : index
    %c0_5 = arith.constant 0 : index
    %41 = vector.load %arg1[%c0_4, %c0_5] : memref<1x1xf32, #tpu.memory_space<vmem>>, vector<1x1xf32>
    %42 = vector.broadcast %41 : vector<1x1xf32> to vector<32x32xf32>
    %43 = arith.mulf %2, %42 : vector<32x32xf32>
    %c0_6 = arith.constant 0 : index
    %c0_7 = arith.constant 0 : index
    %44 = vector.load %arg2[%c0_6, %c0_7] : memref<1x1xf32, #tpu.memory_space<vmem>>, vector<1x1xf32>
    %45 = vector.broadcast %44 : vector<1x1xf32> to vector<32x32xf32>
    %46 = arith.addf %43, %45 : vector<32x32xf32>
    %cst_8 = arith.constant 0.000000e+00 : f32
    %47 = vector.broadcast %cst_8 : f32 to vector<32x32xf32>
    %48 = arith.subf %47, %46 : vector<32x32xf32>
    %49 = math.exp %48 : vector<32x32xf32>
    %cst_9 = arith.constant 1.000000e+00 : f32
    %50 = vector.broadcast %cst_9 : f32 to vector<32x32xf32>
    %51 = arith.addf %50, %49 : vector<32x32xf32>
    %cst_10 = arith.constant 1.000000e+00 : f32
    %52 = vector.broadcast %cst_10 : f32 to vector<32x32xf32>
    %53 = arith.divf %52, %51 : vector<32x32xf32>
    %54 = arith.mulf %30, %53 : vector<32x32xf32>
    %cst_11 = arith.constant 1.000000e+00 : f32
    %55 = vector.broadcast %cst_11 : f32 to vector<32x32xf32>
    %56 = arith.subf %55, %53 : vector<32x32xf32>
    %57 = arith.mulf %40, %56 : vector<32x32xf32>
    %58 = arith.addf %54, %57 : vector<32x32xf32>
    %59 = arith.subf %2, %8 : vector<32x32xf32>
    %c0_12 = arith.constant 0 : index
    %c0_13 = arith.constant 0 : index
    %c0_14 = arith.constant 0 : index
    %60 = vector.load %arg4[%c0_12, %c0_13, %c0_14] : memref<2x32x32xf32, #tpu.memory_space<vmem>>, vector<1x32x32xf32>
    %61 = vector.shape_cast %60 : vector<1x32x32xf32> to vector<32x32xf32>
    %cst_15 = arith.constant dense<0.000000e+00> : vector<32x32xf32>
    %62 = tpu.matmul %59, %61, %cst_15 {dimension_numbers = #tpu.dot_dimension_numbers<[1], [0], [0], [1], [0, 0, 1, 1], [], []>} : vector<32x32xf32>, vector<32x32xf32>, vector<32x32xf32> -> vector<32x32xf32>
    %c1 = arith.constant 1 : index
    %c0_16 = arith.constant 0 : index
    %c0_17 = arith.constant 0 : index
    %63 = vector.load %arg4[%c1, %c0_16, %c0_17] : memref<2x32x32xf32, #tpu.memory_space<vmem>>, vector<1x32x32xf32>
    %64 = vector.shape_cast %63 : vector<1x32x32xf32> to vector<32x32xf32>
    %cst_18 = arith.constant dense<0.000000e+00> : vector<32x32xf32>
    %65 = tpu.matmul %59, %64, %cst_18 {dimension_numbers = #tpu.dot_dimension_numbers<[1], [0], [0], [1], [0, 0, 1, 1], [], []>} : vector<32x32xf32>, vector<32x32xf32>, vector<32x32xf32> -> vector<32x32xf32>
    %66 = tpu.iota {dimensions = array<i32: 0>} : vector<17x32xi32>
    %67 = tpu.iota {dimensions = array<i32: 1>} : vector<17x32xi32>
    %c2_i32 = arith.constant 2 : i32
    %68 = vector.broadcast %c2_i32 : i32 to vector<17x32xi32>
    %69 = arith.muli %68, %66 : vector<17x32xi32>
    %c1_i32 = arith.constant 1 : i32
    %70 = vector.broadcast %c1_i32 : i32 to vector<17x32xi32>
    %71 = arith.subi %69, %70 : vector<17x32xi32>
    %72 = arith.cmpi eq, %67, %71 : vector<17x32xi32>
    %cst_19 = arith.constant 1.000000e+00 : f32
    %cst_20 = arith.constant 0.000000e+00 : f32
    %73 = vector.broadcast %cst_19 : f32 to vector<17x32xf32>
    %74 = vector.broadcast %cst_20 : f32 to vector<17x32xf32>
    %75 = arith.select %72, %73, %74 : vector<17x32xi1>, vector<17x32xf32>
    %76 = tpu.iota {dimensions = array<i32: 0>} : vector<17x32xi32>
    %77 = tpu.iota {dimensions = array<i32: 1>} : vector<17x32xi32>
    %c2_i32_21 = arith.constant 2 : i32
    %78 = vector.broadcast %c2_i32_21 : i32 to vector<17x32xi32>
    %79 = arith.muli %78, %76 : vector<17x32xi32>
    %80 = arith.cmpi eq, %77, %79 : vector<17x32xi32>
    %cst_22 = arith.constant 1.000000e+00 : f32
    %cst_23 = arith.constant 0.000000e+00 : f32
    %81 = vector.broadcast %cst_22 : f32 to vector<17x32xf32>
    %82 = vector.broadcast %cst_23 : f32 to vector<17x32xf32>
    %83 = arith.select %80, %81, %82 : vector<17x32xi1>, vector<17x32xf32>
    %cst_24 = arith.constant dense<0.000000e+00> : vector<17x32xf32>
    %84 = tpu.matmul %75, %62, %cst_24 {dimension_numbers = #tpu.dot_dimension_numbers<[1], [0], [0], [1], [0, 0, 1, 1], [], []>} : vector<17x32xf32>, vector<32x32xf32>, vector<17x32xf32> -> vector<17x32xf32>
    %cst_25 = arith.constant dense<0.000000e+00> : vector<17x32xf32>
    %85 = tpu.matmul %83, %65, %cst_25 {dimension_numbers = #tpu.dot_dimension_numbers<[1], [0], [0], [1], [0, 0, 1, 1], [], []>} : vector<17x32xf32>, vector<32x32xf32>, vector<17x32xf32> -> vector<17x32xf32>
    %86 = arith.addf %84, %85 : vector<17x32xf32>
    %c0_26 = arith.constant 0 : index
    %c0_27 = arith.constant 0 : index
    %87 = vector.load %arg5[%c0_26, %c0_27] : memref<1x32xf32, #tpu.memory_space<vmem>>, vector<1x32xf32>
    %88 = vector.broadcast %87 : vector<1x32xf32> to vector<17x32xf32>
    %89 = arith.addf %86, %88 : vector<17x32xf32>
    %90 = math.tanh %89 : vector<17x32xf32>
    %cst_28 = arith.constant 0.000000e+00 : f32
    %91 = vector.broadcast %cst_28 : f32 to vector<16x32xf32>
    %c0_29 = arith.constant 0 : index
    %c0_30 = arith.constant 0 : index
    %92 = vector.load %arg26[%c0_29, %c0_30] : memref<33x32xf32, #tpu.memory_space<vmem>>, vector<16x32xf32>
    tpu.vector_store %arg26[%c0_29, %c0_30], %91 {strides = array<i32>} : memref<33x32xf32, #tpu.memory_space<vmem>>, vector<16x32xf32>,
    %c16 = arith.constant 16 : index
    %c0_31 = arith.constant 0 : index
    %93 = vector.load %arg26[%c16, %c0_31] : memref<33x32xf32, #tpu.memory_space<vmem>>, vector<17x32xf32>
    tpu.vector_store %arg26[%c16, %c0_31], %90 {strides = array<i32>} : memref<33x32xf32, #tpu.memory_space<vmem>>, vector<17x32xf32>,
    %cst_32 = arith.constant 0.000000e+00 : f32
    %94 = vector.broadcast %cst_32 : f32 to vector<16x32xf32>
    %c0_33 = arith.constant 0 : index
    %c0_34 = arith.constant 0 : index
    %95 = vector.load %arg26[%c0_33, %c0_34] : memref<33x32xf32, #tpu.memory_space<vmem>>, vector<16x32xf32>
    %c0_35 = arith.constant 0 : index
    %c0_36 = arith.constant 0 : index
    %c0_37 = arith.constant 0 : index
    %96 = vector.load %arg6[%c0_35, %c0_36, %c0_37] : memref<18x32x32xf32, #tpu.memory_space<vmem>>, vector<1x32x32xf32>
    %97 = vector.shape_cast %96 : vector<1x32x32xf32> to vector<32x32xf32>
    %cst_38 = arith.constant dense<0.000000e+00> : vector<16x32xf32>
    %98 = tpu.matmul %95, %97, %cst_38 {dimension_numbers = #tpu.dot_dimension_numbers<[1], [0], [0], [1], [0, 0, 1, 1], [], []>} : vector<16x32xf32>, vector<32x32xf32>, vector<16x32xf32> -> vector<16x32xf32>
    %99 = arith.addf %94, %98 : vector<16x32xf32>
    %c1_39 = arith.constant 1 : index
    %c0_40 = arith.constant 0 : index
    %100 = vector.load %arg26[%c1_39, %c0_40] : memref<33x32xf32, #tpu.memory_space<vmem>>, vector<16x32xf32>
    %c1_41 = arith.constant 1 : index
    %c0_42 = arith.constant 0 : index
    %c0_43 = arith.constant 0 : index
    %101 = vector.load %arg6[%c1_41, %c0_42, %c0_43] : memref<18x32x32xf32, #tpu.memory_space<vmem>>, vector<1x32x32xf32>
    %102 = vector.shape_cast %101 : vector<1x32x32xf32> to vector<32x32xf32>
    %cst_44 = arith.constant dense<0.000000e+00> : vector<16x32xf32>
    %103 = tpu.matmul %100, %102, %cst_44 {dimension_numbers = #tpu.dot_dimension_numbers<[1], [0], [0], [1], [0, 0, 1, 1], [], []>} : vector<16x32xf32>, vector<32x32xf32>, vector<16x32xf32> -> vector<16x32xf32>
    %104 = arith.addf %99, %103 : vector<16x32xf32>
    %c2 = arith.constant 2 : index
    %c0_45 = arith.constant 0 : index
    %105 = vector.load %arg26[%c2, %c0_45] : memref<33x32xf32, #tpu.memory_space<vmem>>, vector<16x32xf32>
    %c2_46 = arith.constant 2 : index
    %c0_47 = arith.constant 0 : index
    %c0_48 = arith.constant 0 : index
    %106 = vector.load %arg6[%c2_46, %c0_47, %c0_48] : memref<18x32x32xf32, #tpu.memory_space<vmem>>, vector<1x32x32xf32>
    %107 = vector.shape_cast %106 : vector<1x32x32xf32> to vector<32x32xf32>
    %cst_49 = arith.constant dense<0.000000e+00> : vector<16x32xf32>
    %108 = tpu.matmul %105, %107, %cst_49 {dimension_numbers = #tpu.dot_dimension_numbers<[1], [0], [0], [1], [0, 0, 1, 1], [], []>} : vector<16x32xf32>, vector<32x32xf32>, vector<16x32xf32> -> vector<16x32xf32>
    %109 = arith.addf %104, %108 : vector<16x32xf32>
    %c3 = arith.constant 3 : index
    %c0_50 = arith.constant 0 : index
    %110 = vector.load %arg26[%c3, %c0_50] : memref<33x32xf32, #tpu.memory_space<vmem>>, vector<16x32xf32>
    %c3_51 = arith.constant 3 : index
    %c0_52 = arith.constant 0 : index
    %c0_53 = arith.constant 0 : index
    %111 = vector.load %arg6[%c3_51, %c0_52, %c0_53] : memref<18x32x32xf32, #tpu.memory_space<vmem>>, vector<1x32x32xf32>
    %112 = vector.shape_cast %111 : vector<1x32x32xf32> to vector<32x32xf32>
    %cst_54 = arith.constant dense<0.000000e+00> : vector<16x32xf32>
    %113 = tpu.matmul %110, %112, %cst_54 {dimension_numbers = #tpu.dot_dimension_numbers<[1], [0], [0], [1], [0, 0, 1, 1], [], []>} : vector<16x32xf32>, vector<32x32xf32>, vector<16x32xf32> -> vector<16x32xf32>
    %114 = arith.addf %109, %113 : vector<16x32xf32>
    %c4 = arith.constant 4 : index
    %c0_55 = arith.constant 0 : index
    %115 = vector.load %arg26[%c4, %c0_55] : memref<33x32xf32, #tpu.memory_space<vmem>>, vector<16x32xf32>
    %c4_56 = arith.constant 4 : index
    %c0_57 = arith.constant 0 : index
    %c0_58 = arith.constant 0 : index
    %116 = vector.load %arg6[%c4_56, %c0_57, %c0_58] : memref<18x32x32xf32, #tpu.memory_space<vmem>>, vector<1x32x32xf32>
    %117 = vector.shape_cast %116 : vector<1x32x32xf32> to vector<32x32xf32>
    %cst_59 = arith.constant dense<0.000000e+00> : vector<16x32xf32>
    %118 = tpu.matmul %115, %117, %cst_59 {dimension_numbers = #tpu.dot_dimension_numbers<[1], [0], [0], [1], [0, 0, 1, 1], [], []>} : vector<16x32xf32>, vector<32x32xf32>, vector<16x32xf32> -> vector<16x32xf32>
    %119 = arith.addf %114, %118 : vector<16x32xf32>
    %c5 = arith.constant 5 : index
    %c0_60 = arith.constant 0 : index
    %120 = vector.load %arg26[%c5, %c0_60] : memref<33x32xf32, #tpu.memory_space<vmem>>, vector<16x32xf32>
    %c5_61 = arith.constant 5 : index
    %c0_62 = arith.constant 0 : index
    %c0_63 = arith.constant 0 : index
    %121 = vector.load %arg6[%c5_61, %c0_62, %c0_63] : memref<18x32x32xf32, #tpu.memory_space<vmem>>, vector<1x32x32xf32>
    %122 = vector.shape_cast %121 : vector<1x32x32xf32> to vector<32x32xf32>
    %cst_64 = arith.constant dense<0.000000e+00> : vector<16x32xf32>
    %123 = tpu.matmul %120, %122, %cst_64 {dimension_numbers = #tpu.dot_dimension_numbers<[1], [0], [0], [1], [0, 0, 1, 1], [], []>} : vector<16x32xf32>, vector<32x32xf32>, vector<16x32xf32> -> vector<16x32xf32>
    %124 = arith.addf %119, %123 : vector<16x32xf32>
    %c6 = arith.constant 6 : index
    %c0_65 = arith.constant 0 : index
    %125 = vector.load %arg26[%c6, %c0_65] : memref<33x32xf32, #tpu.memory_space<vmem>>, vector<16x32xf32>
    %c6_66 = arith.constant 6 : index
    %c0_67 = arith.constant 0 : index
    %c0_68 = arith.constant 0 : index
    %126 = vector.load %arg6[%c6_66, %c0_67, %c0_68] : memref<18x32x32xf32, #tpu.memory_space<vmem>>, vector<1x32x32xf32>
    %127 = vector.shape_cast %126 : vector<1x32x32xf32> to vector<32x32xf32>
    %cst_69 = arith.constant dense<0.000000e+00> : vector<16x32xf32>
    %128 = tpu.matmul %125, %127, %cst_69 {dimension_numbers = #tpu.dot_dimension_numbers<[1], [0], [0], [1], [0, 0, 1, 1], [], []>} : vector<16x32xf32>, vector<32x32xf32>, vector<16x32xf32> -> vector<16x32xf32>
    %129 = arith.addf %124, %128 : vector<16x32xf32>
    %c7 = arith.constant 7 : index
    %c0_70 = arith.constant 0 : index
    %130 = vector.load %arg26[%c7, %c0_70] : memref<33x32xf32, #tpu.memory_space<vmem>>, vector<16x32xf32>
    %c7_71 = arith.constant 7 : index
    %c0_72 = arith.constant 0 : index
    %c0_73 = arith.constant 0 : index
    %131 = vector.load %arg6[%c7_71, %c0_72, %c0_73] : memref<18x32x32xf32, #tpu.memory_space<vmem>>, vector<1x32x32xf32>
    %132 = vector.shape_cast %131 : vector<1x32x32xf32> to vector<32x32xf32>
    %cst_74 = arith.constant dense<0.000000e+00> : vector<16x32xf32>
    %133 = tpu.matmul %130, %132, %cst_74 {dimension_numbers = #tpu.dot_dimension_numbers<[1], [0], [0], [1], [0, 0, 1, 1], [], []>} : vector<16x32xf32>, vector<32x32xf32>, vector<16x32xf32> -> vector<16x32xf32>
    %134 = arith.addf %129, %133 : vector<16x32xf32>
    %c8 = arith.constant 8 : index
    %c0_75 = arith.constant 0 : index
    %135 = vector.load %arg26[%c8, %c0_75] : memref<33x32xf32, #tpu.memory_space<vmem>>, vector<16x32xf32>
    %c8_76 = arith.constant 8 : index
    %c0_77 = arith.constant 0 : index
    %c0_78 = arith.constant 0 : index
    %136 = vector.load %arg6[%c8_76, %c0_77, %c0_78] : memref<18x32x32xf32, #tpu.memory_space<vmem>>, vector<1x32x32xf32>
    %137 = vector.shape_cast %136 : vector<1x32x32xf32> to vector<32x32xf32>
    %cst_79 = arith.constant dense<0.000000e+00> : vector<16x32xf32>
    %138 = tpu.matmul %135, %137, %cst_79 {dimension_numbers = #tpu.dot_dimension_numbers<[1], [0], [0], [1], [0, 0, 1, 1], [], []>} : vector<16x32xf32>, vector<32x32xf32>, vector<16x32xf32> -> vector<16x32xf32>
    %139 = arith.addf %134, %138 : vector<16x32xf32>
    %c9 = arith.constant 9 : index
    %c0_80 = arith.constant 0 : index
    %140 = vector.load %arg26[%c9, %c0_80] : memref<33x32xf32, #tpu.memory_space<vmem>>, vector<16x32xf32>
    %c9_81 = arith.constant 9 : index
    %c0_82 = arith.constant 0 : index
    %c0_83 = arith.constant 0 : index
    %141 = vector.load %arg6[%c9_81, %c0_82, %c0_83] : memref<18x32x32xf32, #tpu.memory_space<vmem>>, vector<1x32x32xf32>
    %142 = vector.shape_cast %141 : vector<1x32x32xf32> to vector<32x32xf32>
    %cst_84 = arith.constant dense<0.000000e+00> : vector<16x32xf32>
    %143 = tpu.matmul %140, %142, %cst_84 {dimension_numbers = #tpu.dot_dimension_numbers<[1], [0], [0], [1], [0, 0, 1, 1], [], []>} : vector<16x32xf32>, vector<32x32xf32>, vector<16x32xf32> -> vector<16x32xf32>
    %144 = arith.addf %139, %143 : vector<16x32xf32>
    %c10 = arith.constant 10 : index
    %c0_85 = arith.constant 0 : index
    %145 = vector.load %arg26[%c10, %c0_85] : memref<33x32xf32, #tpu.memory_space<vmem>>, vector<16x32xf32>
    %c10_86 = arith.constant 10 : index
    %c0_87 = arith.constant 0 : index
    %c0_88 = arith.constant 0 : index
    %146 = vector.load %arg6[%c10_86, %c0_87, %c0_88] : memref<18x32x32xf32, #tpu.memory_space<vmem>>, vector<1x32x32xf32>
    %147 = vector.shape_cast %146 : vector<1x32x32xf32> to vector<32x32xf32>
    %cst_89 = arith.constant dense<0.000000e+00> : vector<16x32xf32>
    %148 = tpu.matmul %145, %147, %cst_89 {dimension_numbers = #tpu.dot_dimension_numbers<[1], [0], [0], [1], [0, 0, 1, 1], [], []>} : vector<16x32xf32>, vector<32x32xf32>, vector<16x32xf32> -> vector<16x32xf32>
    %149 = arith.addf %144, %148 : vector<16x32xf32>
    %c11 = arith.constant 11 : index
    %c0_90 = arith.constant 0 : index
    %150 = vector.load %arg26[%c11, %c0_90] : memref<33x32xf32, #tpu.memory_space<vmem>>, vector<16x32xf32>
    %c11_91 = arith.constant 11 : index
    %c0_92 = arith.constant 0 : index
    %c0_93 = arith.constant 0 : index
    %151 = vector.load %arg6[%c11_91, %c0_92, %c0_93] : memref<18x32x32xf32, #tpu.memory_space<vmem>>, vector<1x32x32xf32>
    %152 = vector.shape_cast %151 : vector<1x32x32xf32> to vector<32x32xf32>
    %cst_94 = arith.constant dense<0.000000e+00> : vector<16x32xf32>
    %153 = tpu.matmul %150, %152, %cst_94 {dimension_numbers = #tpu.dot_dimension_numbers<[1], [0], [0], [1], [0, 0, 1, 1], [], []>} : vector<16x32xf32>, vector<32x32xf32>, vector<16x32xf32> -> vector<16x32xf32>
    %154 = arith.addf %149, %153 : vector<16x32xf32>
    %c12 = arith.constant 12 : index
    %c0_95 = arith.constant 0 : index
    %155 = vector.load %arg26[%c12, %c0_95] : memref<33x32xf32, #tpu.memory_space<vmem>>, vector<16x32xf32>
    %c12_96 = arith.constant 12 : index
    %c0_97 = arith.constant 0 : index
    %c0_98 = arith.constant 0 : index
    %156 = vector.load %arg6[%c12_96, %c0_97, %c0_98] : memref<18x32x32xf32, #tpu.memory_space<vmem>>, vector<1x32x32xf32>
    %157 = vector.shape_cast %156 : vector<1x32x32xf32> to vector<32x32xf32>
    %cst_99 = arith.constant dense<0.000000e+00> : vector<16x32xf32>
    %158 = tpu.matmul %155, %157, %cst_99 {dimension_numbers = #tpu.dot_dimension_numbers<[1], [0], [0], [1], [0, 0, 1, 1], [], []>} : vector<16x32xf32>, vector<32x32xf32>, vector<16x32xf32> -> vector<16x32xf32>
    %159 = arith.addf %154, %158 : vector<16x32xf32>
    %c13 = arith.constant 13 : index
    %c0_100 = arith.constant 0 : index
    %160 = vector.load %arg26[%c13, %c0_100] : memref<33x32xf32, #tpu.memory_space<vmem>>, vector<16x32xf32>
    %c13_101 = arith.constant 13 : index
    %c0_102 = arith.constant 0 : index
    %c0_103 = arith.constant 0 : index
    %161 = vector.load %arg6[%c13_101, %c0_102, %c0_103] : memref<18x32x32xf32, #tpu.memory_space<vmem>>, vector<1x32x32xf32>
    %162 = vector.shape_cast %161 : vector<1x32x32xf32> to vector<32x32xf32>
    %cst_104 = arith.constant dense<0.000000e+00> : vector<16x32xf32>
    %163 = tpu.matmul %160, %162, %cst_104 {dimension_numbers = #tpu.dot_dimension_numbers<[1], [0], [0], [1], [0, 0, 1, 1], [], []>} : vector<16x32xf32>, vector<32x32xf32>, vector<16x32xf32> -> vector<16x32xf32>
    %164 = arith.addf %159, %163 : vector<16x32xf32>
    %c14 = arith.constant 14 : index
    %c0_105 = arith.constant 0 : index
    %165 = vector.load %arg26[%c14, %c0_105] : memref<33x32xf32, #tpu.memory_space<vmem>>, vector<16x32xf32>
    %c14_106 = arith.constant 14 : index
    %c0_107 = arith.constant 0 : index
    %c0_108 = arith.constant 0 : index
    %166 = vector.load %arg6[%c14_106, %c0_107, %c0_108] : memref<18x32x32xf32, #tpu.memory_space<vmem>>, vector<1x32x32xf32>
    %167 = vector.shape_cast %166 : vector<1x32x32xf32> to vector<32x32xf32>
    %cst_109 = arith.constant dense<0.000000e+00> : vector<16x32xf32>
    %168 = tpu.matmul %165, %167, %cst_109 {dimension_numbers = #tpu.dot_dimension_numbers<[1], [0], [0], [1], [0, 0, 1, 1], [], []>} : vector<16x32xf32>, vector<32x32xf32>, vector<16x32xf32> -> vector<16x32xf32>
    %169 = arith.addf %164, %168 : vector<16x32xf32>
    %c15 = arith.constant 15 : index
    %c0_110 = arith.constant 0 : index
    %170 = vector.load %arg26[%c15, %c0_110] : memref<33x32xf32, #tpu.memory_space<vmem>>, vector<16x32xf32>
    %c15_111 = arith.constant 15 : index
    %c0_112 = arith.constant 0 : index
    %c0_113 = arith.constant 0 : index
    %171 = vector.load %arg6[%c15_111, %c0_112, %c0_113] : memref<18x32x32xf32, #tpu.memory_space<vmem>>, vector<1x32x32xf32>
    %172 = vector.shape_cast %171 : vector<1x32x32xf32> to vector<32x32xf32>
    %cst_114 = arith.constant dense<0.000000e+00> : vector<16x32xf32>
    %173 = tpu.matmul %170, %172, %cst_114 {dimension_numbers = #tpu.dot_dimension_numbers<[1], [0], [0], [1], [0, 0, 1, 1], [], []>} : vector<16x32xf32>, vector<32x32xf32>, vector<16x32xf32> -> vector<16x32xf32>
    %174 = arith.addf %169, %173 : vector<16x32xf32>
    %c16_115 = arith.constant 16 : index
    %c0_116 = arith.constant 0 : index
    %175 = vector.load %arg26[%c16_115, %c0_116] : memref<33x32xf32, #tpu.memory_space<vmem>>, vector<16x32xf32>
    %c16_117 = arith.constant 16 : index
    %c0_118 = arith.constant 0 : index
    %c0_119 = arith.constant 0 : index
    %176 = vector.load %arg6[%c16_117, %c0_118, %c0_119] : memref<18x32x32xf32, #tpu.memory_space<vmem>>, vector<1x32x32xf32>
    %177 = vector.shape_cast %176 : vector<1x32x32xf32> to vector<32x32xf32>
    %cst_120 = arith.constant dense<0.000000e+00> : vector<16x32xf32>
    %178 = tpu.matmul %175, %177, %cst_120 {dimension_numbers = #tpu.dot_dimension_numbers<[1], [0], [0], [1], [0, 0, 1, 1], [], []>} : vector<16x32xf32>, vector<32x32xf32>, vector<16x32xf32> -> vector<16x32xf32>
    %179 = arith.addf %174, %178 : vector<16x32xf32>
    %c17 = arith.constant 17 : index
    %c0_121 = arith.constant 0 : index
    %180 = vector.load %arg26[%c17, %c0_121] : memref<33x32xf32, #tpu.memory_space<vmem>>, vector<16x32xf32>
    %c17_122 = arith.constant 17 : index
    %c0_123 = arith.constant 0 : index
    %c0_124 = arith.constant 0 : index
    %181 = vector.load %arg6[%c17_122, %c0_123, %c0_124] : memref<18x32x32xf32, #tpu.memory_space<vmem>>, vector<1x32x32xf32>
    %182 = vector.shape_cast %181 : vector<1x32x32xf32> to vector<32x32xf32>
    %cst_125 = arith.constant dense<0.000000e+00> : vector<16x32xf32>
    %183 = tpu.matmul %180, %182, %cst_125 {dimension_numbers = #tpu.dot_dimension_numbers<[1], [0], [0], [1], [0, 0, 1, 1], [], []>} : vector<16x32xf32>, vector<32x32xf32>, vector<16x32xf32> -> vector<16x32xf32>
    %184 = arith.addf %179, %183 : vector<16x32xf32>
    %c0_126 = arith.constant 0 : index
    %c0_127 = arith.constant 0 : index
    %185 = vector.load %arg7[%c0_126, %c0_127] : memref<1x32xf32, #tpu.memory_space<vmem>>, vector<1x32xf32>
    %186 = vector.broadcast %185 : vector<1x32xf32> to vector<16x32xf32>
    %187 = arith.addf %184, %186 : vector<16x32xf32>
    %188 = math.tanh %187 : vector<16x32xf32>
    %c0_128 = arith.constant 0 : index
    %c0_129 = arith.constant 0 : index
    %189 = vector.load %arg10[%c0_128, %c0_129] : memref<6x32xf32, #tpu.memory_space<vmem>>, vector<1x32xf32>
    %c1_130 = arith.constant 1 : index
    %c0_131 = arith.constant 0 : index
    %190 = vector.load %arg10[%c1_130, %c0_131] : memref<6x32xf32, #tpu.memory_space<vmem>>, vector<1x32xf32>
    %c2_132 = arith.constant 2 : index
    %c0_133 = arith.constant 0 : index
    %191 = vector.load %arg10[%c2_132, %c0_133] : memref<6x32xf32, #tpu.memory_space<vmem>>, vector<1x32xf32>
    %c3_134 = arith.constant 3 : index
    %c0_135 = arith.constant 0 : index
    %192 = vector.load %arg10[%c3_134, %c0_135] : memref<6x32xf32, #tpu.memory_space<vmem>>, vector<1x32xf32>
    %c4_136 = arith.constant 4 : index
    %c0_137 = arith.constant 0 : index
    %193 = vector.load %arg10[%c4_136, %c0_137] : memref<6x32xf32, #tpu.memory_space<vmem>>, vector<1x32xf32>
    %c5_138 = arith.constant 5 : index
    %c0_139 = arith.constant 0 : index
    %194 = vector.load %arg10[%c5_138, %c0_139] : memref<6x32xf32, #tpu.memory_space<vmem>>, vector<1x32xf32>
    %195 = arith.addf %188, %188 : vector<16x32xf32>
    %cst_140 = arith.constant dense<0.000000e+00> : vector<16xf32>
    %196 = vector.multi_reduction <add>, %195, %cst_140 [1] : vector<16x32xf32> to vector<16xf32>
    %197 = vector.shape_cast %196 : vector<16xf32> to vector<16x1xf32>
    %cst_141 = arith.constant 3.200000e+01 : f32
    %198 = vector.broadcast %cst_141 : f32 to vector<16x1xf32>
    %199 = arith.divf %197, %198 : vector<16x1xf32>
    %200 = vector.broadcast %199 : vector<16x1xf32> to vector<16x32xf32>
    %201 = arith.subf %195, %200 : vector<16x32xf32>
    %202 = arith.mulf %201, %201 : vector<16x32xf32>
    %cst_142 = arith.constant dense<0.000000e+00> : vector<16xf32>
    %203 = vector.multi_reduction <add>, %202, %cst_142 [1] : vector<16x32xf32> to vector<16xf32>
    %204 = vector.shape_cast %203 : vector<16xf32> to vector<16x1xf32>
    %cst_143 = arith.constant 3.200000e+01 : f32
    %205 = vector.broadcast %cst_143 : f32 to vector<16x1xf32>
    %206 = arith.divf %204, %205 : vector<16x1xf32>
    %207 = vector.broadcast %199 : vector<16x1xf32> to vector<16x32xf32>
    %208 = arith.subf %195, %207 : vector<16x32xf32>
    %cst_144 = arith.constant 9.99999974E-6 : f32
    %209 = vector.broadcast %cst_144 : f32 to vector<16x1xf32>
    %210 = arith.addf %206, %209 : vector<16x1xf32>
    %211 = math.rsqrt %210 : vector<16x1xf32>
    %212 = vector.broadcast %211 : vector<16x1xf32> to vector<16x32xf32>
    %213 = arith.mulf %208, %212 : vector<16x32xf32>
    %214 = vector.broadcast %189 : vector<1x32xf32> to vector<16x32xf32>
    %215 = arith.mulf %213, %214 : vector<16x32xf32>
    %216 = vector.broadcast %190 : vector<1x32xf32> to vector<16x32xf32>
    %217 = arith.addf %215, %216 : vector<16x32xf32>
    %c0_145 = arith.constant 0 : index
    %c0_146 = arith.constant 0 : index
    %c0_147 = arith.constant 0 : index
    %218 = vector.load %arg8[%c0_145, %c0_146, %c0_147] : memref<2x32x32xf32, #tpu.memory_space<vmem>>, vector<1x32x32xf32>
    %219 = vector.shape_cast %218 : vector<1x32x32xf32> to vector<32x32xf32>
    %cst_148 = arith.constant dense<0.000000e+00> : vector<16x32xf32>
    %220 = tpu.matmul %217, %219, %cst_148 {dimension_numbers = #tpu.dot_dimension_numbers<[1], [0], [0], [1], [0, 0, 1, 1], [], []>} : vector<16x32xf32>, vector<32x32xf32>, vector<16x32xf32> -> vector<16x32xf32>
    %c1_149 = arith.constant 1 : index
    %c0_150 = arith.constant 0 : index
    %c0_151 = arith.constant 0 : index
    %221 = vector.load %arg8[%c1_149, %c0_150, %c0_151] : memref<2x32x32xf32, #tpu.memory_space<vmem>>, vector<1x32x32xf32>
    %222 = vector.shape_cast %221 : vector<1x32x32xf32> to vector<32x32xf32>
    %cst_152 = arith.constant dense<0.000000e+00> : vector<16x32xf32>
    %223 = tpu.matmul %217, %222, %cst_152 {dimension_numbers = #tpu.dot_dimension_numbers<[1], [0], [0], [1], [0, 0, 1, 1], [], []>} : vector<16x32xf32>, vector<32x32xf32>, vector<16x32xf32> -> vector<16x32xf32>
    %224 = tpu.iota {dimensions = array<i32: 0>} : vector<32x16xi32>
    %225 = tpu.iota {dimensions = array<i32: 1>} : vector<32x16xi32>
    %c2_i32_153 = arith.constant 2 : i32
    %226 = vector.broadcast %c2_i32_153 : i32 to vector<32x16xi32>
    %227 = arith.muli %226, %225 : vector<32x16xi32>
    %228 = arith.cmpi eq, %224, %227 : vector<32x16xi32>
    %cst_154 = arith.constant 1.000000e+00 : f32
    %cst_155 = arith.constant 0.000000e+00 : f32
    %229 = vector.broadcast %cst_154 : f32 to vector<32x16xf32>
    %230 = vector.broadcast %cst_155 : f32 to vector<32x16xf32>
    %231 = arith.select %228, %229, %230 : vector<32x16xi1>, vector<32x16xf32>
    %232 = tpu.iota {dimensions = array<i32: 0>} : vector<32x16xi32>
    %233 = tpu.iota {dimensions = array<i32: 1>} : vector<32x16xi32>
    %c2_i32_156 = arith.constant 2 : i32
    %234 = vector.broadcast %c2_i32_156 : i32 to vector<32x16xi32>
    %235 = arith.muli %234, %233 : vector<32x16xi32>
    %c1_i32_157 = arith.constant 1 : i32
    %236 = vector.broadcast %c1_i32_157 : i32 to vector<32x16xi32>
    %237 = arith.addi %235, %236 : vector<32x16xi32>
    %238 = arith.cmpi eq, %232, %237 : vector<32x16xi32>
    %cst_158 = arith.constant 1.000000e+00 : f32
    %cst_159 = arith.constant 0.000000e+00 : f32
    %239 = vector.broadcast %cst_158 : f32 to vector<32x16xf32>
    %240 = vector.broadcast %cst_159 : f32 to vector<32x16xf32>
    %241 = arith.select %238, %239, %240 : vector<32x16xi1>, vector<32x16xf32>
    %cst_160 = arith.constant dense<0.000000e+00> : vector<32x32xf32>
    %242 = tpu.matmul %231, %220, %cst_160 {dimension_numbers = #tpu.dot_dimension_numbers<[1], [0], [0], [1], [0, 0, 1, 1], [], []>} : vector<32x16xf32>, vector<16x32xf32>, vector<32x32xf32> -> vector<32x32xf32>
    %cst_161 = arith.constant dense<0.000000e+00> : vector<32x32xf32>
    %243 = tpu.matmul %241, %223, %cst_161 {dimension_numbers = #tpu.dot_dimension_numbers<[1], [0], [0], [1], [0, 0, 1, 1], [], []>} : vector<32x16xf32>, vector<16x32xf32>, vector<32x32xf32> -> vector<32x32xf32>
    %244 = arith.addf %242, %243 : vector<32x32xf32>
    %c0_162 = arith.constant 0 : index
    %c0_163 = arith.constant 0 : index
    %245 = vector.load %arg9[%c0_162, %c0_163] : memref<1x32xf32, #tpu.memory_space<vmem>>, vector<1x32xf32>
    %246 = vector.broadcast %245 : vector<1x32xf32> to vector<32x32xf32>
    %247 = arith.addf %244, %246 : vector<32x32xf32>
    %248 = math.tanh %247 : vector<32x32xf32>
    %249 = arith.addf %248, %59 : vector<32x32xf32>
    %cst_164 = arith.constant dense<0.000000e+00> : vector<32xf32>
    %250 = vector.multi_reduction <add>, %249, %cst_164 [1] : vector<32x32xf32> to vector<32xf32>
    %251 = vector.shape_cast %250 : vector<32xf32> to vector<32x1xf32>
    %cst_165 = arith.constant 3.200000e+01 : f32
    %252 = vector.broadcast %cst_165 : f32 to vector<32x1xf32>
    %253 = arith.divf %251, %252 : vector<32x1xf32>
    %254 = vector.broadcast %253 : vector<32x1xf32> to vector<32x32xf32>
    %255 = arith.subf %249, %254 : vector<32x32xf32>
    %256 = arith.mulf %255, %255 : vector<32x32xf32>
    %cst_166 = arith.constant dense<0.000000e+00> : vector<32xf32>
    %257 = vector.multi_reduction <add>, %256, %cst_166 [1] : vector<32x32xf32> to vector<32xf32>
    %258 = vector.shape_cast %257 : vector<32xf32> to vector<32x1xf32>
    %cst_167 = arith.constant 3.200000e+01 : f32
    %259 = vector.broadcast %cst_167 : f32 to vector<32x1xf32>
    %260 = arith.divf %258, %259 : vector<32x1xf32>
    %261 = vector.broadcast %253 : vector<32x1xf32> to vector<32x32xf32>
    %262 = arith.subf %249, %261 : vector<32x32xf32>
    %cst_168 = arith.constant 9.99999974E-6 : f32
    %263 = vector.broadcast %cst_168 : f32 to vector<32x1xf32>
    %264 = arith.addf %260, %263 : vector<32x1xf32>
    %265 = math.rsqrt %264 : vector<32x1xf32>
    %266 = vector.broadcast %265 : vector<32x1xf32> to vector<32x32xf32>
    %267 = arith.mulf %262, %266 : vector<32x32xf32>
    %268 = vector.broadcast %189 : vector<1x32xf32> to vector<32x32xf32>
    %269 = arith.mulf %267, %268 : vector<32x32xf32>
    %270 = vector.broadcast %190 : vector<1x32xf32> to vector<32x32xf32>
    %271 = arith.addf %269, %270 : vector<32x32xf32>
    %c0_169 = arith.constant 0 : index
    %c0_170 = arith.constant 0 : index
    %272 = vector.load %arg11[%c0_169, %c0_170] : memref<32x32xf32, #tpu.memory_space<vmem>>, vector<32x32xf32>
    %cst_171 = arith.constant dense<0.000000e+00> : vector<32x32xf32>
    %273 = tpu.matmul %271, %272, %cst_171 {dimension_numbers = #tpu.dot_dimension_numbers<[1], [0], [0], [1], [0, 0, 1, 1], [], []>} : vector<32x32xf32>, vector<32x32xf32>, vector<32x32xf32> -> vector<32x32xf32>
    %c0_172 = arith.constant 0 : index
    %c0_173 = arith.constant 0 : index
    %274 = vector.load %arg12[%c0_172, %c0_173] : memref<1x32xf32, #tpu.memory_space<vmem>>, vector<1x32xf32>
    %275 = vector.broadcast %274 : vector<1x32xf32> to vector<32x32xf32>
    %276 = arith.addf %273, %275 : vector<32x32xf32>
    %cst_174 = arith.constant dense<0.000000e+00> : vector<32xf32>
    %277 = vector.multi_reduction <add>, %276, %cst_174 [1] : vector<32x32xf32> to vector<32xf32>
    %278 = vector.shape_cast %277 : vector<32xf32> to vector<32x1xf32>
    %cst_175 = arith.constant 3.200000e+01 : f32
    %279 = vector.broadcast %cst_175 : f32 to vector<32x1xf32>
    %280 = arith.divf %278, %279 : vector<32x1xf32>
    %281 = vector.broadcast %280 : vector<32x1xf32> to vector<32x32xf32>
    %282 = arith.subf %276, %281 : vector<32x32xf32>
    %283 = arith.mulf %282, %282 : vector<32x32xf32>
    %cst_176 = arith.constant dense<0.000000e+00> : vector<32xf32>
    %284 = vector.multi_reduction <add>, %283, %cst_176 [1] : vector<32x32xf32> to vector<32xf32>
    %285 = vector.shape_cast %284 : vector<32xf32> to vector<32x1xf32>
    %cst_177 = arith.constant 3.200000e+01 : f32
    %286 = vector.broadcast %cst_177 : f32 to vector<32x1xf32>
    %287 = arith.divf %285, %286 : vector<32x1xf32>
    %288 = vector.broadcast %280 : vector<32x1xf32> to vector<32x32xf32>
    %289 = arith.subf %276, %288 : vector<32x32xf32>
    %cst_178 = arith.constant 9.99999974E-6 : f32
    %290 = vector.broadcast %cst_178 : f32 to vector<32x1xf32>
    %291 = arith.addf %287, %290 : vector<32x1xf32>
    %292 = math.rsqrt %291 : vector<32x1xf32>
    %293 = vector.broadcast %292 : vector<32x1xf32> to vector<32x32xf32>
    %294 = arith.mulf %289, %293 : vector<32x32xf32>
    %295 = vector.broadcast %191 : vector<1x32xf32> to vector<32x32xf32>
    %296 = arith.mulf %294, %295 : vector<32x32xf32>
    %297 = vector.broadcast %192 : vector<1x32xf32> to vector<32x32xf32>
    %298 = arith.addf %296, %297 : vector<32x32xf32>
    %c0_179 = arith.constant 0 : index
    %c0_180 = arith.constant 0 : index
    %299 = vector.load %arg13[%c0_179, %c0_180] : memref<32x128xf32, #tpu.memory_space<vmem>>, vector<32x128xf32>
    %cst_181 = arith.constant dense<0.000000e+00> : vector<32x128xf32>
    %300 = tpu.matmul %298, %299, %cst_181 {dimension_numbers = #tpu.dot_dimension_numbers<[1], [0], [0], [1], [0, 0, 1, 1], [], []>} : vector<32x32xf32>, vector<32x128xf32>, vector<32x128xf32> -> vector<32x128xf32>
    %c0_182 = arith.constant 0 : index
    %c0_183 = arith.constant 0 : index
    %301 = vector.load %arg14[%c0_182, %c0_183] : memref<1x128xf32, #tpu.memory_space<vmem>>, vector<1x128xf32>
    %302 = vector.broadcast %301 : vector<1x128xf32> to vector<32x128xf32>
    %303 = arith.addf %300, %302 : vector<32x128xf32>
    %c0_184 = arith.constant 0 : index
    %c0_185 = arith.constant 0 : index
    %304 = vector.load %arg15[%c0_184, %c0_185] : memref<128x32xf32, #tpu.memory_space<vmem>>, vector<128x32xf32>
    %cst_186 = arith.constant dense<0.000000e+00> : vector<32x32xf32>
    %305 = tpu.matmul %303, %304, %cst_186 {dimension_numbers = #tpu.dot_dimension_numbers<[1], [0], [0], [1], [0, 0, 1, 1], [], []>} : vector<32x128xf32>, vector<128x32xf32>, vector<32x32xf32> -> vector<32x32xf32>
    %c0_187 = arith.constant 0 : index
    %c0_188 = arith.constant 0 : index
    %306 = vector.load %arg16[%c0_187, %c0_188] : memref<1x32xf32, #tpu.memory_space<vmem>>, vector<1x32xf32>
    %307 = vector.broadcast %306 : vector<1x32xf32> to vector<32x32xf32>
    %308 = arith.addf %305, %307 : vector<32x32xf32>
    %309 = arith.addf %276, %308 : vector<32x32xf32>
    %cst_189 = arith.constant dense<0.000000e+00> : vector<32xf32>
    %310 = vector.multi_reduction <add>, %309, %cst_189 [1] : vector<32x32xf32> to vector<32xf32>
    %311 = vector.shape_cast %310 : vector<32xf32> to vector<32x1xf32>
    %cst_190 = arith.constant 3.200000e+01 : f32
    %312 = vector.broadcast %cst_190 : f32 to vector<32x1xf32>
    %313 = arith.divf %311, %312 : vector<32x1xf32>
    %314 = vector.broadcast %313 : vector<32x1xf32> to vector<32x32xf32>
    %315 = arith.subf %309, %314 : vector<32x32xf32>
    %316 = arith.mulf %315, %315 : vector<32x32xf32>
    %cst_191 = arith.constant dense<0.000000e+00> : vector<32xf32>
    %317 = vector.multi_reduction <add>, %316, %cst_191 [1] : vector<32x32xf32> to vector<32xf32>
    %318 = vector.shape_cast %317 : vector<32xf32> to vector<32x1xf32>
    %cst_192 = arith.constant 3.200000e+01 : f32
    %319 = vector.broadcast %cst_192 : f32 to vector<32x1xf32>
    %320 = arith.divf %318, %319 : vector<32x1xf32>
    %321 = vector.broadcast %313 : vector<32x1xf32> to vector<32x32xf32>
    %322 = arith.subf %309, %321 : vector<32x32xf32>
    %cst_193 = arith.constant 9.99999974E-6 : f32
    %323 = vector.broadcast %cst_193 : f32 to vector<32x1xf32>
    %324 = arith.addf %320, %323 : vector<32x1xf32>
    %325 = math.rsqrt %324 : vector<32x1xf32>
    %326 = vector.broadcast %325 : vector<32x1xf32> to vector<32x32xf32>
    %327 = arith.mulf %322, %326 : vector<32x32xf32>
    %328 = vector.broadcast %193 : vector<1x32xf32> to vector<32x32xf32>
    %329 = arith.mulf %327, %328 : vector<32x32xf32>
    %330 = vector.broadcast %194 : vector<1x32xf32> to vector<32x32xf32>
    %331 = arith.addf %329, %330 : vector<32x32xf32>
    %c0_194 = arith.constant 0 : index
    %c0_195 = arith.constant 0 : index
    %332 = vector.load %arg17[%c0_194, %c0_195] : memref<32x4xf32, #tpu.memory_space<vmem>>, vector<32x4xf32>
    %cst_196 = arith.constant dense<0.000000e+00> : vector<32x4xf32>
    %333 = tpu.matmul %331, %332, %cst_196 {dimension_numbers = #tpu.dot_dimension_numbers<[1], [0], [0], [1], [0, 0, 1, 1], [], []>} : vector<32x32xf32>, vector<32x4xf32>, vector<32x4xf32> -> vector<32x4xf32>
    %c0_197 = arith.constant 0 : index
    %c0_198 = arith.constant 0 : index
    %334 = vector.load %arg18[%c0_197, %c0_198] : memref<1x4xf32, #tpu.memory_space<vmem>>, vector<1x4xf32>
    %335 = vector.broadcast %334 : vector<1x4xf32> to vector<32x4xf32>
    %336 = arith.addf %333, %335 : vector<32x4xf32>
    %c0_199 = arith.constant 0 : index
    %c0_200 = arith.constant 0 : index
    %337 = vector.load %arg19[%c0_199, %c0_200] : memref<8x32xf32, #tpu.memory_space<vmem>>, vector<8x32xf32>
    %cst_201 = arith.constant dense<0.000000e+00> : vector<8x32xf32>
    %338 = tpu.matmul %337, %58, %cst_201 {dimension_numbers = #tpu.dot_dimension_numbers<[1], [0], [0], [1], [0, 0, 1, 1], [], []>} : vector<8x32xf32>, vector<32x32xf32>, vector<8x32xf32> -> vector<8x32xf32>
    %c0_202 = arith.constant 0 : index
    %c0_203 = arith.constant 0 : index
    %339 = vector.load %arg20[%c0_202, %c0_203] : memref<8x1xf32, #tpu.memory_space<vmem>>, vector<8x1xf32>
    %340 = vector.broadcast %339 : vector<8x1xf32> to vector<8x32xf32>
    %341 = arith.addf %338, %340 : vector<8x32xf32>
    %c0_204 = arith.constant 0 : index
    %c0_205 = arith.constant 0 : index
    %342 = vector.load %arg21[%c0_204, %c0_205] : memref<32x4xf32, #tpu.memory_space<vmem>>, vector<32x4xf32>
    %cst_206 = arith.constant dense<0.000000e+00> : vector<8x4xf32>
    %343 = tpu.matmul %341, %342, %cst_206 {dimension_numbers = #tpu.dot_dimension_numbers<[1], [0], [0], [1], [0, 0, 1, 1], [], []>} : vector<8x32xf32>, vector<32x4xf32>, vector<8x4xf32> -> vector<8x4xf32>
    %c0_207 = arith.constant 0 : index
    %c0_208 = arith.constant 0 : index
    %344 = vector.load %arg22[%c0_207, %c0_208] : memref<1x4xf32, #tpu.memory_space<vmem>>, vector<1x4xf32>
    %345 = vector.broadcast %344 : vector<1x4xf32> to vector<8x4xf32>
    %346 = arith.addf %343, %345 : vector<8x4xf32>
    %c0_209 = arith.constant 0 : index
    %c0_210 = arith.constant 0 : index
    %347 = vector.load %arg23[%c0_209, %c0_210] : memref<8x32xf32, #tpu.memory_space<vmem>>, vector<8x32xf32>
    %cst_211 = arith.constant dense<0.000000e+00> : vector<8x4xf32>
    %348 = tpu.matmul %347, %336, %cst_211 {dimension_numbers = #tpu.dot_dimension_numbers<[1], [0], [0], [1], [0, 0, 1, 1], [], []>} : vector<8x32xf32>, vector<32x4xf32>, vector<8x4xf32> -> vector<8x4xf32>
    %c0_212 = arith.constant 0 : index
    %c0_213 = arith.constant 0 : index
    %349 = vector.load %arg24[%c0_212, %c0_213] : memref<8x1xf32, #tpu.memory_space<vmem>>, vector<8x1xf32>
    %350 = vector.broadcast %349 : vector<8x1xf32> to vector<8x4xf32>
    %351 = arith.addf %348, %350 : vector<8x4xf32>
    %352 = arith.addf %346, %351 : vector<8x4xf32>
    %c0_214 = arith.constant 0 : index
    %c0_215 = arith.constant 0 : index
    %c0_216 = arith.constant 0 : index
    %353 = vector.load %arg25[%c0_214, %c0_215, %c0_216] : memref<1x8x4xf32, #tpu.memory_space<vmem>>, vector<1x8x4xf32>
    %354 = vector.shape_cast %353 : vector<1x8x4xf32> to vector<8x4xf32>
    %355 = vector.shape_cast %352 : vector<8x4xf32> to vector<1x8x4xf32>
    tpu.vector_store %arg25[%c0_214, %c0_215, %c0_216], %355 {strides = array<i32>} : memref<1x8x4xf32, #tpu.memory_space<vmem>>, vector<1x8x4xf32>,
    return
  }
  func.func @transform_0(%arg0: i32) -> (i32, i32) {
    %c0_i32 = arith.constant 0 : i32
    %c0_i32_0 = arith.constant 0 : i32
    %c0_i32_1 = arith.constant 0 : i32
    return %c0_i32, %c0_i32_0 : i32, i32
  }
  func.func @transform_1(%arg0: i32) -> (i32, i32) {
    %c0_i32 = arith.constant 0 : i32
    %c0_i32_0 = arith.constant 0 : i32
    %c0_i32_1 = arith.constant 0 : i32
    return %c0_i32, %c0_i32_0 : i32, i32
  }
  func.func @transform_2(%arg0: i32) -> (i32, i32, i32) {
    %c0_i32 = arith.constant 0 : i32
    %c0_i32_0 = arith.constant 0 : i32
    %c0_i32_1 = arith.constant 0 : i32
    return %arg0, %c0_i32, %c0_i32_0 : i32, i32, i32
  }
  func.func @transform_3(%arg0: i32) -> (i32, i32, i32) {
    %c0_i32 = arith.constant 0 : i32
    %c0_i32_0 = arith.constant 0 : i32
    %c0_i32_1 = arith.constant 0 : i32
    %c0_i32_2 = arith.constant 0 : i32
    return %c0_i32, %c0_i32_0, %c0_i32_1 : i32, i32, i32
  }
  func.func @transform_4(%arg0: i32) -> (i32, i32) {
    %c0_i32 = arith.constant 0 : i32
    %c0_i32_0 = arith.constant 0 : i32
    %c0_i32_1 = arith.constant 0 : i32
    return %c0_i32, %c0_i32_0 : i32, i32
  }
  func.func @transform_5(%arg0: i32) -> (i32, i32, i32) {
    %c0_i32 = arith.constant 0 : i32
    %c0_i32_0 = arith.constant 0 : i32
    %c0_i32_1 = arith.constant 0 : i32
    %c0_i32_2 = arith.constant 0 : i32
    return %c0_i32, %c0_i32_0, %c0_i32_1 : i32, i32, i32
  }
  func.func @transform_6(%arg0: i32) -> (i32, i32) {
    %c0_i32 = arith.constant 0 : i32
    %c0_i32_0 = arith.constant 0 : i32
    %c0_i32_1 = arith.constant 0 : i32
    return %c0_i32, %c0_i32_0 : i32, i32
  }
  func.func @transform_7(%arg0: i32) -> (i32, i32, i32) {
    %c0_i32 = arith.constant 0 : i32
    %c0_i32_0 = arith.constant 0 : i32
    %c0_i32_1 = arith.constant 0 : i32
    %c0_i32_2 = arith.constant 0 : i32
    return %c0_i32, %c0_i32_0, %c0_i32_1 : i32, i32, i32
  }
  func.func @transform_8(%arg0: i32) -> (i32, i32) {
    %c0_i32 = arith.constant 0 : i32
    %c0_i32_0 = arith.constant 0 : i32
    %c0_i32_1 = arith.constant 0 : i32
    return %c0_i32, %c0_i32_0 : i32, i32
  }
  func.func @transform_9(%arg0: i32) -> (i32, i32) {
    %c0_i32 = arith.constant 0 : i32
    %c0_i32_0 = arith.constant 0 : i32
    %c0_i32_1 = arith.constant 0 : i32
    return %c0_i32, %c0_i32_0 : i32, i32
  }
  func.func @transform_10(%arg0: i32) -> (i32, i32) {
    %c0_i32 = arith.constant 0 : i32
    %c0_i32_0 = arith.constant 0 : i32
    %c0_i32_1 = arith.constant 0 : i32
    return %c0_i32, %c0_i32_0 : i32, i32
  }
  func.func @transform_11(%arg0: i32) -> (i32, i32) {
    %c0_i32 = arith.constant 0 : i32
    %c0_i32_0 = arith.constant 0 : i32
    %c0_i32_1 = arith.constant 0 : i32
    return %c0_i32, %c0_i32_0 : i32, i32
  }
  func.func @transform_12(%arg0: i32) -> (i32, i32) {
    %c0_i32 = arith.constant 0 : i32
    %c0_i32_0 = arith.constant 0 : i32
    %c0_i32_1 = arith.constant 0 : i32
    return %c0_i32, %c0_i32_0 : i32, i32
  }
  func.func @transform_13(%arg0: i32) -> (i32, i32) {
    %c0_i32 = arith.constant 0 : i32
    %c0_i32_0 = arith.constant 0 : i32
    %c0_i32_1 = arith.constant 0 : i32
    return %c0_i32, %c0_i32_0 : i32, i32
  }
  func.func @transform_14(%arg0: i32) -> (i32, i32) {
    %c0_i32 = arith.constant 0 : i32
    %c0_i32_0 = arith.constant 0 : i32
    %c0_i32_1 = arith.constant 0 : i32
    return %c0_i32, %c0_i32_0 : i32, i32
  }
  func.func @transform_15(%arg0: i32) -> (i32, i32) {
    %c0_i32 = arith.constant 0 : i32
    %c0_i32_0 = arith.constant 0 : i32
    %c0_i32_1 = arith.constant 0 : i32
    return %c0_i32, %c0_i32_0 : i32, i32
  }
  func.func @transform_16(%arg0: i32) -> (i32, i32) {
    %c0_i32 = arith.constant 0 : i32
    %c0_i32_0 = arith.constant 0 : i32
    %c0_i32_1 = arith.constant 0 : i32
    return %c0_i32, %c0_i32_0 : i32, i32
  }
  func.func @transform_17(%arg0: i32) -> (i32, i32) {
    %c0_i32 = arith.constant 0 : i32
    %c0_i32_0 = arith.constant 0 : i32
    %c0_i32_1 = arith.constant 0 : i32
    return %c0_i32, %c0_i32_0 : i32, i32
  }
  func.func @transform_18(%arg0: i32) -> (i32, i32) {
    %c0_i32 = arith.constant 0 : i32
    %c0_i32_0 = arith.constant 0 : i32
    %c0_i32_1 = arith.constant 0 : i32
    return %c0_i32, %c0_i32_0 : i32, i32
  }
  func.func @transform_19(%arg0: i32) -> (i32, i32) {
    %c0_i32 = arith.constant 0 : i32
    %c0_i32_0 = arith.constant 0 : i32
    %c0_i32_1 = arith.constant 0 : i32
    return %c0_i32, %c0_i32_0 : i32, i32
  }
  func.func @transform_20(%arg0: i32) -> (i32, i32) {
    %c0_i32 = arith.constant 0 : i32
    %c0_i32_0 = arith.constant 0 : i32
    %c0_i32_1 = arith.constant 0 : i32
    return %c0_i32, %c0_i32_0 : i32, i32
  }
  func.func @transform_21(%arg0: i32) -> (i32, i32) {
    %c0_i32 = arith.constant 0 : i32
    %c0_i32_0 = arith.constant 0 : i32
    %c0_i32_1 = arith.constant 0 : i32
    return %c0_i32, %c0_i32_0 : i32, i32
  }
  func.func @transform_22(%arg0: i32) -> (i32, i32) {
    %c0_i32 = arith.constant 0 : i32
    %c0_i32_0 = arith.constant 0 : i32
    %c0_i32_1 = arith.constant 0 : i32
    return %c0_i32, %c0_i32_0 : i32, i32
  }
  func.func @transform_23(%arg0: i32) -> (i32, i32) {
    %c0_i32 = arith.constant 0 : i32
    %c0_i32_0 = arith.constant 0 : i32
    %c0_i32_1 = arith.constant 0 : i32
    return %c0_i32, %c0_i32_0 : i32, i32
  }
  func.func @transform_24(%arg0: i32) -> (i32, i32, i32) {
    %c0_i32 = arith.constant 0 : i32
    %c0_i32_0 = arith.constant 0 : i32
    %c0_i32_1 = arith.constant 0 : i32
    return %arg0, %c0_i32, %c0_i32_0 : i32, i32, i32
  }
}

</mosaic_0001>

<bundles_post_ra>
// kernel: micn_forward.1
= control target key start
LH: loop header
LB: loop body
LE: loop exit
PB: predicated region body
PF: predicated region fallthrough
CT: control target
= control target key end

     0   :  { %s6321_s0 = inlined_call_operand.<no memory space> [shape: f32[1,1], index: 0, kind: input, shape index: {}]   ;;  %s6322_s2 = inlined_call_operand.vmem [shape: f32[2,48,32], index: 2, kind: input, shape index: {}]   ;;  %s6323_s3 = inlined_call_operand.vmem [shape: f32[2,32,32], index: 3, kind: input, shape index: {}]   ;;  %s6324_s4 = inlined_call_operand.vmem [shape: f32[1,32], index: 4, kind: input, shape index: {}]   ;;  %s6325_s5 = inlined_call_operand.hbm [shape: f32[18,32,32], index: 5, kind: input, shape index: {}]   ;;  %s6326_s6 = inlined_call_operand.vmem [shape: f32[1,32], index: 6, kind: input, shape index: {}]   ;;  %s6327_s7 = inlined_call_operand.vmem [shape: f32[2,32,32], index: 7, kind: input, shape index: {}]   ;;  %s6328_s8 = inlined_call_operand.vmem [shape: f32[1,32], index: 8, kind: input, shape index: {}]   ;;  %s6329_s9 = inlined_call_operand.vmem [shape: f32[6,32], index: 9, kind: input, shape index: {}]   ;;  %s6330_s10 = inlined_call_operand.vmem [shape: f32[32,32], index: 10, kind: input, shape index: {}]   ;;  %s6331_s11 = inlined_call_operand.vmem [shape: f32[1,32], index: 11, kind: input, shape index: {}]   ;;  %s6332_s12 = inlined_call_operand.vmem [shape: f32[32,128], index: 12, kind: input, shape index: {}]   ;;  %s6333_s13 = inlined_call_operand.vmem [shape: f32[1,128], index: 13, kind: input, shape index: {}]   ;;  %s6334_s14 = inlined_call_operand.vmem [shape: f32[128,32], index: 14, kind: input, shape index: {}]   ;;  %s6335_s15 = inlined_call_operand.vmem [shape: f32[1,32], index: 15, kind: input, shape index: {}]   ;;  %s6336_s16 = inlined_call_operand.vmem [shape: f32[32,4], index: 16, kind: input, shape index: {}]   ;;  %s6337_s17 = inlined_call_operand.vmem [shape: f32[1,4], index: 17, kind: input, shape index: {}]   ;;  %s6338_s18 = inlined_call_operand.vmem [shape: f32[8,32], index: 18, kind: input, shape index: {}]   ;;  %s6339_s19 = inlined_call_operand.vmem [shape: f32[8,1], index: 19, kind: input, shape index: {}]   ;;  %s6340_s20 = inlined_call_operand.vmem [shape: f32[32,4], index: 20, kind: input, shape index: {}]   ;;  %s6341_s21 = inlined_call_operand.vmem [shape: f32[1,4], index: 21, kind: input, shape index: {}]   ;;  %s6342_s22 = inlined_call_operand.vmem [shape: f32[8,32], index: 22, kind: input, shape index: {}]   ;;  %s6343_s23 = inlined_call_operand.vmem [shape: f32[8,1], index: 23, kind: input, shape index: {}]   ;;  %s6344_s24 = inlined_call_operand.vmem [shape: f32[2,8,4], index: 24, kind: output, shape index: {}]   ;;  %s6345_s1 = inlined_call_operand.<no memory space> [shape: f32[1,1], index: 1, kind: input, shape index: {}]  }
   0x1   :  { %6354 = sst [smem:[#allocation8_spill]] %s6321_s0  ;;  %v31_v1 = vstv %s6345_s1 }
   0x2   :  { %6355 = sst [smem:[#allocation9_spill]] %s6322_s2  ;;  %32 = vst [vmem:[#allocation4] sm:$0x1] %v31_v1 }
   0x3   :  { %6356 = sst [smem:[#allocation10_spill]] %s6323_s3 }
   0x4   :  { %6357 = sst [smem:[#allocation11_spill]] %s6324_s4 }
   0x5   :  { %6358 = sst [smem:[#allocation12_spill]] %s6325_s5 }
   0x6   :  { %6359 = sst [smem:[#allocation13_spill]] %s6326_s6 }
   0x7   :  { %6360 = sst [smem:[#allocation14_spill]] %s6327_s7 }
   0x8   :  { %6361 = sst [smem:[#allocation15_spill]] %s6328_s8 }
   0x9   :  { %6362 = sst [smem:[#allocation16_spill]] %s6329_s9 }
   0xa   :  { %s6363_s27 = sld [smem:[#allocation8_spill]] }
  0x10   :  { %v29_v0 = vstv %s6363_s27 }
  0x11   :  { %30 = vst [vmem:[#allocation3] sm:$0x1] %v29_v0 }
  0x12   :  { %33 = vsyncpa [#allocation6], 0  ;;  %s5483_s3 = smov 0  }
  0x13 LB: > { %s4462_s29 = sadd.s32 4294967295, %s5344_s3   ;;  %p4464_p0 = scmp.ge.s32.totalorder %s5344_s3, 1  ;;  %s5344_s3 = sphi %s5483_s3, %s39_s3  }
  0x14   : > { %p579_p1 = scmp.lt.s32.totalorder %s5344_s3, 3  ;;  %s5346_s0 = smov [#allocation5]  }
  0x15   : > { %s603_s8 = sshll.u32 %s5346_s0, 4  ;;  %p5222_p3 = scmp.eq.s32.totalorder %s4462_s29, 0  ;;  %s604_s8 = int_to_ptr.vmem [resolvable:$true] %s603_s8 }
  0x16   : > { %p5491_p2 = pnand %p4464_p0, %p579_p1  ;;  %s5319_s30 = scalar_lea.vmem %s604_s8, 9216 }
  0x17   : > { %p5320_p7 = scmp.ne.s32.totalorder %s604_s8, %s5319_s30  ;;  %p5327_p10 = scmp.lt.s32.totalorder %s604_s8, %s604_s8 }
  0x18   : > { %p5218_p4 = pneg %p5491_p2  ;;  %p5328_p11 = scmp.lt.s32.totalorder %s5319_s30, %s5319_s30 }
  0x1a   : > { %p5219_p5 = pnand %p5222_p3, %p5218_p4  ;;  %p5329_p12 = por %p5328_p11, %p5327_p10 }
  0x1c   : > { %p5310_p6 = pneg %p5219_p5 }
  0x1e   : > { %p5322_p8 = pnand %p5320_p7, %p5310_p6 }
  0x20   : > { %p5323_p9 = pneg %p5322_p8 }
  0x22   : > { %p5330_p13 = pnand %p5329_p12, %p5323_p9 }
  0x24   : > { %5333 = shalt.err (!%p5330_p13)
}
  0x25   : > { %s5347_s4 = smov 128   ;;  %s5348_s25 = smov 8  }
  0x26   : > { %s6365_s2 = sld [smem:[#allocation12_spill]] }
  0x28   : > { %681 = sbr.rel (%p5491_p2) target bundleno = 3449 (0xd79), region = 116 }
  0x2c   : > { %5221 = dma.hbm_to_vmem [thread:$0]  (!%p5219_p5), %s6365_s2, 9216, %s604_s8, [#allocation6], %s5347_s4, %s5347_s4, %s5348_s25  }
  0x2d   : > { %5339 = dma.done.wait (%p5222_p3), [#allocation6], 9216  }
  0x2e   : > { %5341 = vsyncadd (%p5222_p3), [#allocation6], 4294958080  ;;  %p746_p0 = scmp.lt.s32.totalorder %s4462_s29, 1  ;;  %s6366_s28 = sld [smem:[#allocation9_spill]]  ;;  %vm766_vm0 = vcmask 1040384   ;;  %vm785_vm1 = vcmask 1046528  }
  0x2f   : > { %s6367_s8 = sld [smem:[#allocation10_spill]]  ;;  %vm807_vm2 = vcmask 1041408   ;;  %vm825_vm3 = vcmask 1045504   ;;  %vm843_vm4 = vcmask 1042432   ;;  %vm861_vm5 = vcmask 1044480  }
  0x30   : > { %s6379_s29 = smov (!%p746_p0, %s4462_s29), 1  ;;  %vm879_vm6 = vcmask 1043456   ;;  %vm1038_vm7 = vcmask 261120   ;;  %vm5350_vm8 = vmmov 0   ;;  %s6368_s5 = sld [smem:[#allocation11_spill]]  ;;  %vm1445_vm15 = vcmask 253952  }
  0x31   : > { %s5213_s6 = smul.u32 48, %s6379_s29  ;;  %s6369_s26 = sld [smem:[#allocation13_spill]] }
  0x32   : > { %s6370_s0 = sld [smem:[#allocation14_spill]]  ;;  %s4470_s27 = sshll.u32 %s6379_s29, 3 }
  0x33   : > { %s754_s30 = scalar_lea.vmem %s6344_s24, %s4470_s27 }
  0x34   : > { %s5511_s7 = scalar_lea.vmem %s6366_s28, %s5213_s6  ;;  %s6372_s28 = sld [smem:[#allocation15_spill]] }
  0x35   : > { %v1037_v2 = vld [vmem:[%s6367_s8 + $0x18] sm:$0xff]  ;;  %v1036_v4 = vld [vmem:[%s6367_s8 + $0x10] sm:$0xff]  ;;  %v1035_v6 = vld [vmem:[%s6367_s8 + $0x8] sm:$0xff] }
  0x36   : > { %v4480_v3 = vld [vmem:[%s6367_s8 + $0x38] sm:$0xff]  ;;  %4798 = vmatprep.subr.mxu0 %v1037_v2  ;;  %v4479_v5 = vld [vmem:[%s6367_s8 + $0x30] sm:$0xff]  ;;  %v4478_v7 = vld [vmem:[%s6367_s8 + $0x28] sm:$0xff] }
  0x37   : > { %4812 = vmatprep.subr.mxu1 %v4480_v3  ;;  %4799 = vmatpush3.msra.mxu0 %v1037_v2  ;;  %v755_v8 = vld [vmem:[%s5511_s7] sm:$0xff]  ;;  %v5533_v9 = vld [vmem:[%s5511_s7 + $0x8] sm:$0xff]  ;;  %v5536_v10 = vld [vmem:[%s5511_s7 + $0x10] sm:$0xff] }
  0x38   : > { %4813 = vmatpush3.msra.mxu1 %v4480_v3  ;;  %4800 = vmatprep.subr.mxu0 %v1036_v4  ;;  %v5539_v11 = vld [vmem:[%s5511_s7 + $0x18] sm:$0xff]  ;;  %v767_v12 = vrot.slane %v755_v8, 7  ;;  %v1034_v13 = vld [vmem:[%s6367_s8] sm:$0xff]  ;;  %v768_v15 = vrot.slane %v5533_v9, 7  ;;  %v770_v16 = vrot.slane %v5536_v10, 7  ;;  %v6349_v17 = vrot.slane %v5533_v9, 1 }
  0x39   : > { %4814 = vmatprep.subr.mxu1 %v4479_v5  ;;  %4801 = vmatpush3.msra.mxu0 %v1036_v4  ;;  %v4477_v14 = vld [vmem:[%s6367_s8 + $0x20] sm:$0xff]  ;;  %v787_v18 = vrot.slane %v5536_v10, 1  ;;  %v789_v19 = vrot.slane %v5539_v11, 1  ;;  %v809_v20 = vrot.slane %v5533_v9, 6  ;;  %v811_v21 = vrot.slane %v5536_v10, 6  ;;  %v760_v52 = vld [vmem:[%s5511_s7 + $0x28] sm:$0xff] }
  0x3a   : > { %4815 = vmatpush3.msra.mxu1 %v4479_v5  ;;  %4802 = vmatprep.subr.mxu0 %v1035_v6  ;;  %v769_v22 = vsel %vm766_vm0, %v767_v12, %v768_v15  ;;  %v5556_v23 = vsel %vm766_vm0, %v768_v15, %v770_v16  ;;  %v827_v31 = vrot.slane %v5536_v10, 2  ;;  %v829_v32 = vrot.slane %v5539_v11, 2  ;;  %v5610_v48 = vld [vmem:[%s5511_s7 + $0x20] sm:$0xff] }
  0x3b   : > { %4816 = vmatprep.subr.mxu1 %v4478_v7  ;;  %4803 = vmatpush3.msra.mxu0 %v1035_v6  ;;  %v780_v24 = vadd.f32 %v769_v22, %v5533_v9  ;;  %v781_v25 = vadd.f32 %v5556_v23, %v5536_v10  ;;  %v5564_v26 = vsel %vm785_vm1, %v6349_v17, %v787_v18  ;;  %v772_v33 = vrot.slane %v5539_v11, 7 }
  0x3c   : > { %4817 = vmatpush3.msra.mxu1 %v4478_v7  ;;  %4804 = vmatprep.subr.mxu0 %v1034_v13  ;;  %v5567_v27 = vsel %vm785_vm1, %v787_v18, %v789_v19  ;;  %v5574_v28 = vsel %vm807_vm2, %v809_v20, %v811_v21  ;;  %v845_v34 = vrot.slane %v5533_v9, 5  ;;  %v847_v35 = vrot.slane %v5536_v10, 5 }
  0x3d   : > { %4818 = vmatprep.subr.mxu1 %v4477_v14  ;;  %4805 = vmatpush3.msra.mxu0 %v1034_v13  ;;  %v5577_v29 = vadd.f32 %v5564_v26, %v780_v24  ;;  %v800_v30 = vadd.f32 %v5567_v27, %v781_v25  ;;  %v5590_v38 = vsel %vm825_vm3, %v827_v31, %v829_v32  ;;  %v863_v41 = vrot.slane %v5536_v10, 3 }
  0x3e   : > { %4819 = vmatpush3.msra.mxu1 %v4477_v14  ;;  %v5595_v39 = vsel %vm843_vm4, %v845_v34, %v847_v35  ;;  %v865_v42 = vrot.slane %v5539_v11, 3  ;;  %v773_v43 = vsel %vm766_vm0, %v770_v16, %v772_v33  ;;  %v6353_v44 = vrot.slane %v5533_v9, 4 }
  0x3f   : > { %v822_v36 = vadd.f32 %v5574_v28, %v800_v30  ;;  %v803_v37 = vmul.f32 0.33333334, %v5577_v29  ;;  %v883_v45 = vrot.slane %v5536_v10, 4  ;;  %v885_v50 = vrot.slane %v5539_v11, 4 }
  0x40   : > { %v5607_v47 = vsel %vm861_vm5, %v863_v41, %v865_v42  ;;  %v804_v54 = vmul.f32 0.33333334, %v800_v30  ;;  %v782_v55 = vadd.f32 %v773_v43, %v5539_v11  ;;  %v6352_v56 = vrot.slane %v5533_v9, 3 }
  0x41   : > { %v840_v40 = vadd.f32 %v5590_v38, %v822_v36  ;;  %v5615_v49 = vsel %vm879_vm6, %v6353_v44, %v883_v45  ;;  %v5619_v51 = vsub.f32 %v5533_v9, %v803_v37  ;;  %v791_v57 = vrot.slane %v5610_v48, 1 }
  0x42   : > { %v6350_v58 = vrot.slane %v5610_v48, 7  ;;  %v5633_v60 = vsub.f32 %v5536_v10, %v804_v54  ;;  %v793_v61 = vrot.slane %v760_v52, 1  ;;  %v849_v62 = vrot.slane %v5539_v11, 5 }
  0x43   : > { %v858_v46 = vadd.f32 %v5595_v39, %v840_v40  ;;  %4806 = vmatprep.mubr.msk.f32.mxu0 %vm1038_vm7, %v5619_v51  ;;  %4820 = vmatprep.mubr.msk.f32.mxu1 %vm1038_vm7, %v5619_v51  ;;  %v5639_v63 = vsel %vm879_vm6, %v883_v45, %v885_v50  ;;  %v5642_v0 = vsel %vm785_vm1, %v789_v19, %v791_v57  ;;  %v6351_v4 = vrot.slane %v5533_v9, 2 }
  0x44   : > { %v5647_v1 = vsel %vm766_vm0, %v772_v33, %v6350_v58  ;;  %4807 = vmatmul.mubr.msk.f32.vlgmr.msra.gmra.mxu0 %vm1038_vm7, %v5633_v60  ;;  %4821 = vmatmul.mubr.msk.f32.vlgmr.msra.gmra.mxu1 %vm1038_vm7, %v5633_v60  ;;  %v5655_v3 = vadd.f32 %v5642_v0, %v782_v55  ;;  %v5661_v5 = vsel %vm861_vm5, %v6352_v56, %v863_v41  ;;  %v813_v13 = vrot.slane %v5539_v11, 6 }
  0x45   : > { %v876_v53 = vadd.f32 %v5607_v47, %v858_v46  ;;  %v783_v6 = vadd.f32 %v5647_v1, %v5610_v48  ;;  %v794_v7 = vsel %vm785_vm1, %v791_v57, %v793_v61  ;;  %v5672_v14 = vsel %vm843_vm4, %v847_v35, %v849_v62 }
  0x46   : > { %v805_v12 = vmul.f32 0.33333334, %v5655_v3  ;;  %v5683_v19 = vsel %vm825_vm3, %v6351_v4, %v827_v31  ;;  %v5696_v25 = vsel %vm807_vm2, %v811_v21, %v813_v13  ;;  %v5349_v10 = vmov 0.0  }
  0x47   : > { %v894_v59 = vadd.f32 %v5615_v49, %v876_v53  ;;  %v5674_v15 = vadd.f32 %v794_v7, %v783_v6  ;;  %4826 = vmatprep.subr.mxu0 %v5349_v10  ;;  %1441 = vst.msk [vmem:[#allocation2] sm:$0xff] %vm1038_vm7, %v5349_v10  ;;  %1442 = vst.msk [vmem:[#allocation2 + $0x8] sm:$0xff] %vm1038_vm7, %v5349_v10  ;;  %4843 = vmatprep.subr.mxu1 %v5349_v10  ;;  %v1226_v21 = vlaneseq }
  0x48   : > { %v5678_v18 = vsub.f32 %v5539_v11, %v805_v12  ;;  %v6373_v11 = vrot.slane %v5533_v9, 4 }
  0x49   : > { %v901_v2 = vadd.f32 %v894_v59, %v5639_v63  ;;  %v806_v22 = vmul.f32 0.33333334, %v5674_v15  ;;  %v5728_v46 = vand.u32 127, %v1226_v21 }
  0x4a   : > { %4809 = vmatprep.mubr.msk.f32.mxu0 %vm1038_vm7, %v5678_v18  ;;  %4823 = vmatprep.mubr.msk.f32.mxu1 %vm1038_vm7, %v5678_v18 }
  0x4b   : > { %v908_v8 = vadd.f32 %v901_v2, %v5661_v5  ;;  %v5699_v30 = vsub.f32 %v5610_v48, %v806_v22 }
  0x4d   : > { %v915_v16 = vadd.f32 %v908_v8, %v5672_v14  ;;  %4810 = vmatmul.mubr.msk.f32.gmra.mxu0 %vm1038_vm7, %v5699_v30  ;;  %4824 = vmatmul.mubr.msk.f32.gmra.mxu1 %vm1038_vm7, %v5699_v30 }
  0x4e   : > { %4834 = vmatprep.mubr.msk.f32.mxu0 %vm5350_vm8, %v5349_v10  ;;  %4851 = vmatprep.mubr.msk.f32.mxu1 %vm5350_vm8, %v5349_v10 }
  0x4f   : > { %v922_v24 = vadd.f32 %v915_v16, %v5683_v19 }
  0x51   : > { %v5702_v31 = vadd.f32 %v922_v24, %v5696_v25 }
  0x53   : > { %v940_v33 = vadd.f32 %v5702_v31, %v5564_v26  ;;  %v5722_v26 = vshrl.u32 %v1226_v21, 7  ;;  %v1452_v21 = vld [vmem:[#allocation5 + $0x18] sm:$0xff] }
  0x55   : > { %v5710_v35 = vadd.f32 %v940_v33, %v773_v43  ;;  %v1232_v40 = vmul.u32 2, %v5722_v26  ;;  %v5726_v41 = vadd.s32 8, %v5722_v26  ;;  %v5732_v54 = vadd.s32 16, %v5722_v26 }
  0x57   : > { %v4485_v52 = vadd.s32 4294967295, %v1232_v40  ;;  %v1233_v53 = vmul.u32 2, %v5726_v41  ;;  %vm1244_vm9 = vcmp.eq.s32.totalorder %v5728_v46, %v1232_v40  ;;  %v1234_v6 = vmul.u32 2, %v5732_v54  ;;  %v1449_v40 = vld [vmem:[#allocation5] sm:$0xff] }
  0x58   : > { %v1247_v7 = vsel %vm1244_vm9, 1.0, %v5349_v10 }
  0x59   : > { %vm1238_vm10 = vcmp.eq.s32.totalorder %v5728_v46, %v4485_v52  ;;  %v4486_v2 = vadd.s32 4294967295, %v1233_v53  ;;  %vm1245_vm11 = vcmp.eq.s32.totalorder %v5728_v46, %v1233_v53  ;;  %v4487_v12 = vadd.s32 4294967295, %v1234_v6  ;;  %v1718_v52 = vld [vmem:[#allocation5 + $0x78] sm:$0xff] }
  0x5a   : > { %v1241_v8 = vsel %vm1238_vm10, 1.0, %v5349_v10  ;;  %v1248_v16 = vsel %vm1245_vm11, 1.0, %v5349_v10  ;;  %vm1246_vm13 = vcmp.eq.s32.totalorder %v5728_v46, %v1234_v6  ;;  %v5768_v53 = vld [vmem:[#allocation2 + $0x8] sm:$0xff]  ;;  %vm3304_vm11 = vcmask 130048  }
  0x5b   : > { %vm1239_vm12 = vcmp.eq.s32.totalorder %v5728_v46, %v4486_v2  ;;  %vm1240_vm14 = vcmp.eq.s32.totalorder %v5728_v46, %v4487_v12  ;;  %v1249_v24 = vsel %vm1246_vm13, 1.0, %v5349_v10  ;;  %v1456_v2 = vld [vmem:[#allocation5 + $0x20] sm:$0xff] }
  0x5c   : > { %v1242_v22 = vsel %vm1239_vm12, 1.0, %v5349_v10  ;;  %v1243_v33 = vsel %vm1240_vm14, 1.0, %v5349_v10  ;;  %v1715_v6 = vld [vmem:[#allocation5 + $0x60] sm:$0xff] }
  0x5d   : > { %v1712_v12 = vld [vmem:[#allocation2 + $0x3] sm:$0xff] }
 0x104   : > { %v4808_v36 = vpop.f32.mrf.mxu0  ;;  %v4822_v37 = vpop.f32.mrf.mxu1 }
 0x106   : > { %v1117_v43 = vpop.f32.mrf.mxu0  ;;  %v1207_v45 = vpop.f32.mrf.mxu1 }
 0x10d   : > { %v4811_v55 = vpop.f32.mrf.mxu0  ;;  %v4825_v57 = vpop.f32.mrf.mxu1 }
 0x10e   : > { %4827 = vmatpush3.msra.mxu0 %v4825_v57  ;;  %4844 = vmatpush3.msra.mxu1 %v4811_v55  ;;  %v1458_v55 = vld [vmem:[#allocation5 + $0x30] sm:$0xff] }
 0x10f   : > { %v1127_v59 = vpop.f32.mrf.mxu0  ;;  %v1217_v61 = vpop.f32.mrf.mxu1  ;;  %4828 = vmatprep.subr.mxu0 %v5349_v10  ;;  %4845 = vmatprep.subr.mxu1 %v5349_v10  ;;  %v1717_v57 = vld [vmem:[#allocation5 + $0x70] sm:$0xff] }
 0x110   : > { %4829 = vmatpush3.msra.mxu0 %v1217_v61  ;;  %4846 = vmatpush3.msra.mxu1 %v1127_v59  ;;  %v1457_v59 = vld [vmem:[#allocation5 + $0x28] sm:$0xff] }
 0x111   : > { %4830 = vmatprep.subr.mxu0 %v5349_v10  ;;  %4847 = vmatprep.subr.mxu1 %v5349_v10  ;;  %v1716_v61 = vld [vmem:[#allocation5 + $0x68] sm:$0xff] }
 0x112   : > { %4831 = vmatpush3.msra.mxu0 %v4822_v37  ;;  %4848 = vmatpush3.msra.mxu1 %v4808_v36  ;;  %v1451_v36 = vld [vmem:[#allocation5 + $0x10] sm:$0xff]  ;;  %v1450_v37 = vld [vmem:[#allocation5 + $0x8] sm:$0xff] }
 0x113   : > { %4832 = vmatprep.subr.mxu0 %v5349_v10  ;;  %4849 = vmatprep.subr.mxu1 %v5349_v10 }
 0x114   : > { %4833 = vmatpush3.msra.mxu0 %v1207_v45  ;;  %4850 = vmatpush3.msra.mxu1 %v1117_v43  ;;  %v1459_v43 = vld [vmem:[#allocation5 + $0x38] sm:$0xff] }
 0x115   : > { %4835 = vmatmul.mubr.msk.f32.vlgmr.msra.gmra.mxu0 %vm1038_vm7, %v1247_v7  ;;  %4852 = vmatmul.mubr.msk.f32.vlgmr.msra.gmra.mxu1 %vm1038_vm7, %v1241_v8  ;;  %v1447_v45 = vld [vmem:[#allocation2] sm:$0xff] }
 0x116   : > { %4837 = vmatprep.mubr.msk.f32.mxu0 %vm5350_vm8, %v5349_v10  ;;  %4854 = vmatprep.mubr.msk.f32.mxu1 %vm5350_vm8, %v5349_v10  ;;  %v1453_v7 = vld [vmem:[#allocation2 + $0x1] sm:$0xff] }
 0x117   : > { %4871 = vmatprep.subr.mxu1 %v1452_v21  ;;  %4860 = vmatprep.subr.mxu0 %v1459_v43  ;;  %v1628_v8 = vld [vmem:[#allocation5 + $0x58] sm:$0xff] }
 0x118   : > { %4872 = vmatpush3.msra.mxu1 %v1452_v21  ;;  %4861 = vmatpush3.msra.mxu0 %v1459_v43 }
 0x119   : > { %4838 = vmatmul.mubr.msk.f32.gmra.mxu0 %vm1038_vm7, %v1248_v16  ;;  %4855 = vmatmul.mubr.msk.f32.gmra.mxu1 %vm1038_vm7, %v1242_v22  ;;  %v1898_v16 = vld [vmem:[#allocation5 + $0xb8] sm:$0xff] }
 0x11a   : > { %4840 = vmatprep.mubr.msk.f32.mxu0 %vm5350_vm8, %v5349_v10  ;;  %4857 = vmatprep.mubr.msk.f32.mxu1 %vm5350_vm8, %v5349_v10 }
 0x11b   : > { %4873 = vmatprep.subr.mxu1 %v1451_v36  ;;  %4862 = vmatprep.subr.mxu0 %v1458_v55 }
 0x11c   : > { %4874 = vmatpush3.msra.mxu1 %v1451_v36  ;;  %4863 = vmatpush3.msra.mxu0 %v1458_v55 }
 0x11d   : > { %4841 = vmatmul.mubr.msk.f32.gmra.mxu0 %vm1038_vm7, %v1249_v24  ;;  %4858 = vmatmul.mubr.msk.f32.gmra.mxu1 %vm1038_vm7, %v1243_v33  ;;  %v4494_v33 = vld [vmem:[%s6368_s5] ss:$0 sm:$0xff]  ;;  %s6371_s5 = sld [smem:[#allocation16_spill]] }
 0x11e   : > { %4875 = vmatprep.subr.mxu1 %v1450_v37  ;;  %4879 = vmatprep.mubr.msk.f32.mxu1 %vm1038_vm7, %v1447_v45 }
 0x11f   : > { %4876 = vmatpush3.msra.mxu1 %v1450_v37  ;;  %4864 = vmatprep.subr.mxu0 %v1457_v59 }
 0x120   : > { %4877 = vmatprep.subr.mxu1 %v1449_v40  ;;  %4865 = vmatpush3.msra.mxu0 %v1457_v59 }
 0x121   : > { %4878 = vmatpush3.msra.mxu1 %v1449_v40  ;;  %4866 = vmatprep.subr.mxu0 %v1456_v2 }
 0x122   : > { %4893 = vmatprep.subr.mxu1 %v1718_v52  ;;  %4880 = vmatmul.mubr.msk.f32.vlgmr.msra.gmra.mxu1 %vm1038_vm7, %v5768_v53 }
 0x123   : > { %4894 = vmatpush3.msra.mxu1 %v1718_v52  ;;  %4867 = vmatpush3.msra.mxu0 %v1456_v2 }
 0x124   : > { %4895 = vmatprep.subr.mxu1 %v1717_v57  ;;  %4868 = vmatprep.mubr.msk.f32.mxu0 %vm1038_vm7, %v1453_v7 }
 0x125   : > { %4896 = vmatpush3.msra.mxu1 %v1717_v57  ;;  %4882 = vmatprep.subr.mxu0 %v1628_v8 }
 0x126   : > { %4897 = vmatprep.subr.mxu1 %v1716_v61  ;;  %4901 = vmatprep.mubr.msk.f32.mxu1 %vm1038_vm7, %v1712_v12 }
 0x127   : > { %4898 = vmatpush3.msra.mxu1 %v1716_v61 }
 0x128   : > { %4899 = vmatprep.subr.mxu1 %v1715_v6 }
 0x129   : > { %4900 = vmatpush3.msra.mxu1 %v1715_v6 }
 0x12a   : > { %4915 = vmatprep.subr.mxu1 %v1898_v16 }
 0x1d5   : > { %v1325_v22 = vpop.f32.mrf.mxu0  ;;  %v1414_v24 = vpop.f32.mrf.mxu1 }
 0x1d6   : > { %v1415_v21 = vadd.f32 %v1414_v24, %v1325_v22  ;;  %v1627_v24 = vld [vmem:[#allocation5 + $0x50] sm:$0xff] }
 0x1d7   : > { %v4836_v36 = vpop.f32.mrf.mxu0  ;;  %v4853_v37 = vpop.f32.mrf.mxu1 }
 0x1d8   : > { %v1435_v40 = vadd.f32 %v4494_v33, %v1415_v21 }
 0x1d9   : > { %v1330_v43 = vpop.f32.mrf.mxu0  ;;  %v1419_v45 = vpop.f32.mrf.mxu1 }
 0x1da   : > { %5240 = vtanh.f32 %v1435_v40  ;;  %v1420_v52 = vadd.f32 %v1419_v45, %v1330_v43  ;;  %v1897_v40 = vld [vmem:[#allocation5 + $0xb0] sm:$0xff]  ;;  %v1895_v43 = vld [vmem:[#allocation5 + $0xa0] sm:$0xff]  ;;  %v1622_v45 = vld [vmem:[#allocation2 + $0x2] sm:$0xff] }
 0x1db   : > { %v4839_v55 = vpop.f32.mrf.mxu0  ;;  %v4856_v57 = vpop.f32.mrf.mxu1 }
 0x1dc   : > { %v1436_v59 = vadd.f32 %v4494_v33, %v1420_v52  ;;  %v1892_v52 = vld [vmem:[#allocation2 + $0x5] sm:$0xff] }
 0x1dd   : > { %v1335_v61 = vpop.f32.mrf.mxu0  ;;  %v1424_v2 = vpop.f32.mrf.mxu1  ;;  %v1808_v55 = vld [vmem:[#allocation5 + $0x98] sm:$0xff] }
 0x1de   : > { %5242 = vtanh.f32 %v1436_v59  ;;  %v1425_v6 = vadd.f32 %v1424_v2, %v1335_v61  ;;  %v1807_v59 = vld [vmem:[#allocation5 + $0x90] sm:$0xff]  ;;  %v1806_v2 = vld [vmem:[#allocation5 + $0x88] sm:$0xff] }
 0x1df   : > { %v4842_v7 = vpop.f32.mrf.mxu0  ;;  %v4859_v12 = vpop.f32.mrf.mxu1  ;;  %v2077_v61 = vld [vmem:[#allocation5 + $0xf0] sm:$0xff] }
 0x1e0   : > { %v1437_v17 = vadd.f32 %v4494_v33, %v1425_v6  ;;  %v1625_v33 = vld [vmem:[#allocation5 + $0x40] sm:$0xff]  ;;  %v2076_v6 = vld [vmem:[#allocation5 + $0xe8] sm:$0xff] }
 0x1e1   : > { %v1805_v7 = vld [vmem:[#allocation5 + $0x80] sm:$0xff] }
 0x1e2   : > { %5244 = vtanh.f32 %v1437_v17  ;;  %v1626_v17 = vld [vmem:[#allocation5 + $0x48] sm:$0xff]  ;;  %v2075_v12 = vld [vmem:[#allocation5 + $0xe0] sm:$0xff] }
 0x1e7   : > { %v5241_v58 = vpop.eup %5240 }
 0x1e8   : > { %1443 = vst.msk [vmem:[#allocation2 + $0x10] sm:$0xff] %vm1038_vm7, %v5241_v58  ;;  %v1896_v58 = vld [vmem:[#allocation5 + $0xa8] sm:$0xff] }
 0x1eb   : > { %v5243_v22 = vpop.eup %5242 }
 0x1ec   : > { %1444 = vst.msk [vmem:[#allocation2 + $0x18] sm:$0xff] %vm1038_vm7, %v5243_v22  ;;  %v1802_v22 = vld [vmem:[#allocation2 + $0x4] sm:$0xff] }
 0x1ef   : > { %v5245_v21 = vpop.eup %5244  ;;  %v5779_v36 = vld [vmem:[#allocation2 + $0x9] sm:$0xff] }
 0x1f0   : > { %v5781_v37 = vld [vmem:[#allocation2 + $0xb] sm:$0xff]  ;;  %4869 = vmatmul.mubr.msk.f32.vlgmr.msra.gmra.mxu0 %vm1038_vm7, %v5779_v36  ;;  %1446 = vst.msk [vmem:[#allocation2 + $0x20] sm:$0x1] %vm1445_vm15, %v5245_v21  ;;  %v1988_v21 = vld [vmem:[#allocation5 + $0xd8] sm:$0xff] }
 0x1f1   : > { %4902 = vmatmul.mubr.msk.f32.vlgmr.msra.gmra.mxu1 %vm1038_vm7, %v5781_v37  ;;  %4883 = vmatpush3.msra.mxu0 %v1628_v8  ;;  %v2078_v8 = vld [vmem:[#allocation5 + $0xf8] sm:$0xff]  ;;  %v5793_v57 = vld [vmem:[#allocation2 + $0xd] sm:$0xff] }
 0x1f2   : > { %4916 = vmatpush3.msra.mxu1 %v1898_v16  ;;  %4884 = vmatprep.subr.mxu0 %v1627_v24  ;;  %v5789_v16 = vld [vmem:[#allocation2 + $0xa] sm:$0xff] }
 0x1f3   : > { %4917 = vmatprep.subr.mxu1 %v1897_v40  ;;  %4885 = vmatpush3.msra.mxu0 %v1627_v24  ;;  %v2072_v24 = vld [vmem:[#allocation2 + $0x7] sm:$0xff] }
 0x1f4   : > { %4918 = vmatpush3.msra.mxu1 %v1897_v40  ;;  %4886 = vmatprep.subr.mxu0 %v1626_v17  ;;  %v2258_v40 = vld [vmem:[#allocation5 + $0x138] sm:$0xff] }
 0x1f5   : > { %4919 = vmatprep.subr.mxu1 %v1896_v58  ;;  %4887 = vmatpush3.msra.mxu0 %v1626_v17  ;;  %v5799_v17 = vld [vmem:[#allocation2 + $0xc] sm:$0xff] }
 0x1f6   : > { %4920 = vmatpush3.msra.mxu1 %v1896_v58  ;;  %4888 = vmatprep.subr.mxu0 %v1625_v33  ;;  %v5803_v58 = vld [vmem:[#allocation2 + $0xf] sm:$0xff] }
 0x1f7   : > { %4921 = vmatprep.subr.mxu1 %v1895_v43  ;;  %4889 = vmatpush3.msra.mxu0 %v1625_v33  ;;  %v1987_v33 = vld [vmem:[#allocation5 + $0xd0] sm:$0xff] }
 0x1f8   : > { %4890 = vmatprep.mubr.msk.f32.mxu0 %vm1038_vm7, %v1622_v45  ;;  %4922 = vmatpush3.msra.mxu1 %v1895_v43  ;;  %v2257_v43 = vld [vmem:[#allocation5 + $0x130] sm:$0xff]  ;;  %v1986_v45 = vld [vmem:[#allocation5 + $0xc8] sm:$0xff] }
 0x1f9   : > { %4923 = vmatprep.mubr.msk.f32.mxu1 %vm1038_vm7, %v1892_v52  ;;  %4891 = vmatmul.mubr.msk.f32.vlgmr.msra.gmra.mxu0 %vm1038_vm7, %v5789_v16  ;;  %v2256_v52 = vld [vmem:[#allocation5 + $0x128] sm:$0xff] }
 0x1fa   : > { %4904 = vmatprep.subr.mxu0 %v1808_v55  ;;  %4924 = vmatmul.mubr.msk.f32.vlgmr.msra.gmra.mxu1 %vm1038_vm7, %v5793_v57 }
 0x1fb   : > { %4937 = vmatprep.subr.mxu1 %v2078_v8  ;;  %4905 = vmatpush3.msra.mxu0 %v1808_v55  ;;  %v1985_v55 = vld [vmem:[#allocation5 + $0xc0] sm:$0xff] }
 0x1fc   : > { %4938 = vmatpush3.msra.mxu1 %v2078_v8  ;;  %4906 = vmatprep.subr.mxu0 %v1807_v59  ;;  %v2255_v8 = vld [vmem:[#allocation5 + $0x120] sm:$0xff] }
 0x1fd   : > { %4939 = vmatprep.subr.mxu1 %v2077_v61  ;;  %4907 = vmatpush3.msra.mxu0 %v1807_v59  ;;  %v1982_v59 = vld [vmem:[#allocation2 + $0x6] sm:$0xff] }
 0x1fe   : > { %4940 = vmatpush3.msra.mxu1 %v2077_v61  ;;  %4908 = vmatprep.subr.mxu0 %v1806_v2  ;;  %v2168_v61 = vld [vmem:[#allocation5 + $0x118] sm:$0xff] }
 0x1ff   : > { %4941 = vmatprep.subr.mxu1 %v2076_v6  ;;  %4909 = vmatpush3.msra.mxu0 %v1806_v2  ;;  %v2438_v2 = vld [vmem:[#allocation5 + $0x178] sm:$0xff] }
 0x200   : > { %4942 = vmatpush3.msra.mxu1 %v2076_v6  ;;  %4910 = vmatprep.subr.mxu0 %v1805_v7  ;;  %v5814_v6 = vld [vmem:[#allocation2 + $0x11] sm:$0xff] }
 0x201   : > { %4943 = vmatprep.subr.mxu1 %v2075_v12  ;;  %4911 = vmatpush3.msra.mxu0 %v1805_v7  ;;  %v2167_v7 = vld [vmem:[#allocation5 + $0x110] sm:$0xff] }
 0x202   : > { %4912 = vmatprep.mubr.msk.f32.mxu0 %vm1038_vm7, %v1802_v22  ;;  %4944 = vmatpush3.msra.mxu1 %v2075_v12  ;;  %v2437_v12 = vld [vmem:[#allocation5 + $0x170] sm:$0xff]  ;;  %v2166_v22 = vld [vmem:[#allocation5 + $0x108] sm:$0xff] }
 0x203   : > { %4945 = vmatprep.mubr.msk.f32.mxu1 %vm1038_vm7, %v2072_v24  ;;  %4913 = vmatmul.mubr.msk.f32.vlgmr.msra.gmra.mxu0 %vm1038_vm7, %v5799_v17  ;;  %v2436_v24 = vld [vmem:[#allocation5 + $0x168] sm:$0xff] }
 0x204   : > { %4926 = vmatprep.subr.mxu0 %v1988_v21  ;;  %4946 = vmatmul.mubr.msk.f32.vlgmr.msra.gmra.mxu1 %vm1038_vm7, %v5803_v58 }
 0x205   : > { %4959 = vmatprep.subr.mxu1 %v2258_v40  ;;  %4927 = vmatpush3.msra.mxu0 %v1988_v21  ;;  %v2165_v21 = vld [vmem:[#allocation5 + $0x100] sm:$0xff] }
 0x206   : > { %4960 = vmatpush3.msra.mxu1 %v2258_v40  ;;  %4967 = vmatprep.mubr.msk.f32.mxu1 %vm1038_vm7, %v5779_v36  ;;  %v5810_v36 = vld [vmem:[#allocation2 + $0xe] sm:$0xff] }
 0x207   : > { %4928 = vmatprep.subr.mxu0 %v1987_v33  ;;  %4961 = vmatprep.subr.mxu1 %v2257_v43  ;;  %v2435_v40 = vld [vmem:[#allocation5 + $0x160] sm:$0xff] }
 0x208   : > { %4929 = vmatpush3.msra.mxu0 %v1987_v33  ;;  %4962 = vmatpush3.msra.mxu1 %v2257_v43  ;;  %v2348_v33 = vld [vmem:[#allocation5 + $0x158] sm:$0xff] }
 0x209   : > { %4930 = vmatprep.subr.mxu0 %v1986_v45  ;;  %4963 = vmatprep.subr.mxu1 %v2256_v52  ;;  %v2618_v43 = vld [vmem:[#allocation5 + $0x1b8] sm:$0xff] }
 0x20a   : > { %4931 = vmatpush3.msra.mxu0 %v1986_v45  ;;  %4964 = vmatpush3.msra.mxu1 %v2256_v52  ;;  %v2433_v45 = vld [vmem:[#allocation2 + $0x13] sm:$0xff] }
 0x20b   : > { %4932 = vmatprep.subr.mxu0 %v1985_v55  ;;  %4965 = vmatprep.subr.mxu1 %v2255_v8  ;;  %v2347_v52 = vld [vmem:[#allocation5 + $0x150] sm:$0xff] }
 0x20c   : > { %4933 = vmatpush3.msra.mxu0 %v1985_v55  ;;  %4934 = vmatprep.mubr.msk.f32.mxu0 %vm1038_vm7, %v1982_v59  ;;  %v2617_v55 = vld [vmem:[#allocation5 + $0x1b0] sm:$0xff]  ;;  %v2345_v59 = vld [vmem:[#allocation5 + $0x140] sm:$0xff] }
 0x20d   : > { %4966 = vmatpush3.msra.mxu1 %v2255_v8  ;;  %4935 = vmatmul.mubr.msk.f32.vlgmr.msra.gmra.mxu0 %vm1038_vm7, %v5810_v36  ;;  %v2616_v8 = vld [vmem:[#allocation5 + $0x1a8] sm:$0xff] }
 0x20e   : > { %4948 = vmatprep.subr.mxu0 %v2168_v61  ;;  %4968 = vmatmul.mubr.msk.f32.vlgmr.msra.gmra.mxu1 %vm1038_vm7, %v5814_v6 }
 0x20f   : > { %4981 = vmatprep.subr.mxu1 %v2438_v2  ;;  %4949 = vmatpush3.msra.mxu0 %v2168_v61  ;;  %v2615_v61 = vld [vmem:[#allocation5 + $0x1a0] sm:$0xff] }
 0x210   : > { %4982 = vmatpush3.msra.mxu1 %v2438_v2  ;;  %4989 = vmatprep.mubr.msk.f32.mxu1 %vm1038_vm7, %v5781_v37  ;;  %v5822_v37 = vld [vmem:[#allocation2 + $0x10] sm:$0xff]  ;;  %v2528_v2 = vld [vmem:[#allocation5 + $0x198] sm:$0xff] }
 0x211   : > { %4950 = vmatprep.subr.mxu0 %v2167_v7  ;;  %4983 = vmatprep.subr.mxu1 %v2437_v12 }
 0x212   : > { %4951 = vmatpush3.msra.mxu0 %v2167_v7  ;;  %4984 = vmatpush3.msra.mxu1 %v2437_v12  ;;  %v2343_v7 = vld [vmem:[#allocation2 + $0x12] sm:$0xff]  ;;  %v2527_v12 = vld [vmem:[#allocation5 + $0x190] sm:$0xff] }
 0x213   : > { %4952 = vmatprep.subr.mxu0 %v2166_v22  ;;  %4985 = vmatprep.subr.mxu1 %v2436_v24 }
 0x214   : > { %4953 = vmatpush3.msra.mxu0 %v2166_v22  ;;  %4986 = vmatpush3.msra.mxu1 %v2436_v24  ;;  %v2797_v22 = vld [vmem:[#allocation5 + $0x1f0] sm:$0xff]  ;;  %v2526_v24 = vld [vmem:[#allocation5 + $0x188] sm:$0xff] }
 0x215   : > { %4954 = vmatprep.subr.mxu0 %v2165_v21  ;;  %4987 = vmatprep.subr.mxu1 %v2435_v40 }
 0x216   : > { %4955 = vmatpush3.msra.mxu0 %v2165_v21  ;;  %4956 = vmatprep.mubr.msk.f32.mxu0 %vm1038_vm7, %v5768_v53  ;;  %v2346_v53 = vld [vmem:[#allocation5 + $0x148] sm:$0xff] }
 0x217   : > { %4988 = vmatpush3.msra.mxu1 %v2435_v40  ;;  %4957 = vmatmul.mubr.msk.f32.vlgmr.msra.gmra.mxu0 %vm1038_vm7, %v5822_v37  ;;  %v2796_v21 = vld [vmem:[#allocation5 + $0x1e8] sm:$0xff]  ;;  %v2525_v40 = vld [vmem:[#allocation5 + $0x180] sm:$0xff] }
 0x218   : > { %4970 = vmatprep.subr.mxu0 %v2348_v33  ;;  %4990 = vmatmul.mubr.msk.f32.vlgmr.msra.gmra.mxu1 %vm1038_vm7, %v2433_v45  ;;  %v2523_v45 = vld [vmem:[#allocation2 + $0x14] sm:$0xff] }
 0x219   : > { %5003 = vmatprep.subr.mxu1 %v2618_v43  ;;  %4971 = vmatpush3.msra.mxu0 %v2348_v33  ;;  %v2795_v33 = vld [vmem:[#allocation5 + $0x1e0] sm:$0xff] }
 0x21a   : > { %4978 = vmatprep.mubr.msk.f32.mxu0 %vm1038_vm7, %v5789_v16  ;;  %5004 = vmatpush3.msra.mxu1 %v2618_v43  ;;  %v2798_v16 = vld [vmem:[#allocation5 + $0x1f8] sm:$0xff] }
 0x21b   : > { %5011 = vmatprep.mubr.msk.f32.mxu1 %vm1038_vm7, %v5793_v57  ;;  %4972 = vmatprep.subr.mxu0 %v2347_v52  ;;  %v2613_v57 = vld [vmem:[#allocation2 + $0x15] sm:$0xff]  ;;  %v2708_v43 = vld [vmem:[#allocation5 + $0x1d8] sm:$0xff] }
 0x21c   : > { %5005 = vmatprep.subr.mxu1 %v2617_v55  ;;  %4973 = vmatpush3.msra.mxu0 %v2347_v52  ;;  %v2707_v52 = vld [vmem:[#allocation5 + $0x1d0] sm:$0xff] }
 0x21d   : > { %5006 = vmatpush3.msra.mxu1 %v2617_v55  ;;  %4974 = vmatprep.subr.mxu0 %v2346_v53  ;;  %v2977_v55 = vld [vmem:[#allocation5 + $0x230] sm:$0xff] }
 0x21e   : > { %5007 = vmatprep.subr.mxu1 %v2616_v8  ;;  %4975 = vmatpush3.msra.mxu0 %v2346_v53  ;;  %v2706_v53 = vld [vmem:[#allocation5 + $0x1c8] sm:$0xff] }
 0x21f   : > { %5008 = vmatpush3.msra.mxu1 %v2616_v8  ;;  %4976 = vmatprep.subr.mxu0 %v2345_v59  ;;  %v2976_v8 = vld [vmem:[#allocation5 + $0x228] sm:$0xff] }
 0x220   : > { %5009 = vmatprep.subr.mxu1 %v2615_v61  ;;  %4977 = vmatpush3.msra.mxu0 %v2345_v59  ;;  %v2705_v59 = vld [vmem:[#allocation5 + $0x1c0] sm:$0xff] }
 0x221   : > { %5010 = vmatpush3.msra.mxu1 %v2615_v61  ;;  %4979 = vmatmul.mubr.msk.f32.vlgmr.msra.gmra.mxu0 %vm1038_vm7, %v2343_v7  ;;  %v2975_v61 = vld [vmem:[#allocation5 + $0x220] sm:$0xff]  ;;  %v2886_v7 = vld [vmem:[#allocation5 + $0x208] sm:$0xff] }
 0x222   : > { %4992 = vmatprep.subr.mxu0 %v2528_v2  ;;  %5012 = vmatmul.mubr.msk.f32.vlgmr.msra.gmra.mxu1 %vm1038_vm7, %v2613_v57  ;;  %v2885_v57 = vld [vmem:[#allocation5 + $0x200] sm:$0xff] }
 0x223   : > { %5025 = vmatprep.subr.mxu1 %v2798_v16  ;;  %4993 = vmatpush3.msra.mxu0 %v2528_v2  ;;  %v2888_v2 = vld [vmem:[#allocation5 + $0x218] sm:$0xff] }
 0x224   : > { %5000 = vmatprep.mubr.msk.f32.mxu0 %vm1038_vm7, %v5799_v17  ;;  %5026 = vmatpush3.msra.mxu1 %v2798_v16  ;;  %v2978_v17 = vld [vmem:[#allocation5 + $0x238] sm:$0xff]  ;;  %v2887_v16 = vld [vmem:[#allocation5 + $0x210] sm:$0xff] }
 0x225   : > { %5033 = vmatprep.mubr.msk.f32.mxu1 %vm1038_vm7, %v5803_v58  ;;  %4994 = vmatprep.subr.mxu0 %v2527_v12  ;;  %v2793_v58 = vld [vmem:[#allocation2 + $0x17] sm:$0xff] }
 0x226   : > { %5027 = vmatprep.subr.mxu1 %v2797_v22  ;;  %4995 = vmatpush3.msra.mxu0 %v2527_v12  ;;  %v2883_v12 = vld [vmem:[#allocation2 + $0x18] sm:$0xff] }
 0x227   : > { %5028 = vmatpush3.msra.mxu1 %v2797_v22  ;;  %4996 = vmatprep.subr.mxu0 %v2526_v24 }
 0x228   : > { %5029 = vmatprep.subr.mxu1 %v2796_v21  ;;  %4997 = vmatpush3.msra.mxu0 %v2526_v24  ;;  %v4881_v24 = vpop.f32.mrf.mxu1 }
 0x229   : > { %5030 = vmatpush3.msra.mxu1 %v2796_v21  ;;  %4998 = vmatprep.subr.mxu0 %v2525_v40 }
 0x22a   : > { %5031 = vmatprep.subr.mxu1 %v2795_v33  ;;  %4999 = vmatpush3.msra.mxu0 %v2525_v40  ;;  %v1613_v40 = vpop.f32.mrf.mxu1 }
 0x22b   : > { %5032 = vmatpush3.msra.mxu1 %v2795_v33  ;;  %5001 = vmatmul.mubr.msk.f32.vlgmr.msra.gmra.mxu0 %vm1038_vm7, %v2523_v45 }
 0x22c   : > { %5014 = vmatprep.subr.mxu0 %v2708_v43  ;;  %5034 = vmatmul.mubr.msk.f32.vlgmr.msra.gmra.mxu1 %vm1038_vm7, %v2793_v58 }
 0x22d   : > { %5047 = vmatprep.subr.mxu1 %v2978_v17  ;;  %5015 = vmatpush3.msra.mxu0 %v2708_v43 }
 0x22e   : > { %5022 = vmatprep.mubr.msk.f32.mxu0 %vm1038_vm7, %v5810_v36  ;;  %5048 = vmatpush3.msra.mxu1 %v2978_v17  ;;  %v2703_v36 = vld [vmem:[#allocation2 + $0x16] sm:$0xff] }
 0x22f   : > { %5055 = vmatprep.mubr.msk.f32.mxu1 %vm1038_vm7, %v5814_v6  ;;  %5016 = vmatprep.subr.mxu0 %v2707_v52  ;;  %v2973_v6 = vld [vmem:[#allocation2 + $0x19] sm:$0xff] }
 0x230   : > { %5049 = vmatprep.subr.mxu1 %v2977_v55  ;;  %5017 = vmatpush3.msra.mxu0 %v2707_v52 }
 0x231   : > { %5050 = vmatpush3.msra.mxu1 %v2977_v55  ;;  %5018 = vmatprep.subr.mxu0 %v2706_v53 }
 0x232   : > { %5051 = vmatprep.subr.mxu1 %v2976_v8  ;;  %5019 = vmatpush3.msra.mxu0 %v2706_v53 }
 0x233   : > { %5052 = vmatpush3.msra.mxu1 %v2976_v8  ;;  %5020 = vmatprep.subr.mxu0 %v2705_v59 }
 0x234   : > { %5053 = vmatprep.subr.mxu1 %v2975_v61  ;;  %5021 = vmatpush3.msra.mxu0 %v2705_v59 }
 0x235   : > { %5054 = vmatpush3.msra.mxu1 %v2975_v61  ;;  %5023 = vmatmul.mubr.msk.f32.vlgmr.msra.gmra.mxu0 %vm1038_vm7, %v2703_v36 }
 0x236   : > { %5036 = vmatprep.subr.mxu0 %v2888_v2  ;;  %5056 = vmatmul.mubr.msk.f32.vlgmr.msra.gmra.mxu1 %vm1038_vm7, %v2973_v6 }
 0x237   : > { %5037 = vmatpush3.msra.mxu0 %v2888_v2  ;;  %5044 = vmatprep.mubr.msk.f32.mxu0 %vm1038_vm7, %v5822_v37 }
 0x238   : > { %5038 = vmatprep.subr.mxu0 %v2887_v16 }
 0x239   : > { %5039 = vmatpush3.msra.mxu0 %v2887_v16 }
 0x23a   : > { %5040 = vmatprep.subr.mxu0 %v2886_v7 }
 0x23b   : > { %5041 = vmatpush3.msra.mxu0 %v2886_v7 }
 0x23c   : > { %5042 = vmatprep.subr.mxu0 %v2885_v57 }
 0x23d   : > { %5043 = vmatpush3.msra.mxu0 %v2885_v57 }
 0x23e   : > { %5045 = vmatmul.mubr.msk.f32.vlgmr.msra.gmra.mxu0 %vm1038_vm7, %v2883_v12 }
 0x2b0   : > { %v4870_v22 = vpop.f32.mrf.mxu0 }
 0x2b1   : > { %v1619_v43 = vadd.f32 %v4881_v24, %v4870_v22  ;;  %v4903_v17 = vpop.f32.mrf.mxu1 }
 0x2b2   : > { %v1532_v21 = vpop.f32.mrf.mxu0 }
 0x2b3   : > { %v1614_v58 = vadd.f32 %v1613_v40, %v1532_v21  ;;  %v1791_v53 = vpop.f32.mrf.mxu1 }
 0x2b9   : > { %v4892_v33 = vpop.f32.mrf.mxu0 }
 0x2ba   : > { %v1711_v37 = vadd.f32 %v4892_v33, %v1619_v43  ;;  %v4925_v59 = vpop.f32.mrf.mxu1 }
 0x2bb   : > { %v1701_v45 = vpop.f32.mrf.mxu0 }
 0x2bc   : > { %v1710_v55 = vadd.f32 %v1701_v45, %v1614_v58  ;;  %v1801_v8 = vadd.f32 %v4903_v17, %v1711_v37  ;;  %v1971_v7 = vpop.f32.mrf.mxu1 }
 0x2be   : > { %v1800_v36 = vadd.f32 %v1791_v53, %v1710_v55 }
 0x2c3   : > { %v4914_v52 = vpop.f32.mrf.mxu0 }
 0x2c4   : > { %v1891_v2 = vadd.f32 %v4914_v52, %v1801_v8  ;;  %v4947_v12 = vpop.f32.mrf.mxu1 }
 0x2c5   : > { %v1881_v61 = vpop.f32.mrf.mxu0 }
 0x2c6   : > { %v1890_v6 = vadd.f32 %v1881_v61, %v1800_v36  ;;  %v1981_v57 = vadd.f32 %v4925_v59, %v1891_v2  ;;  %v2151_v21 = vpop.f32.mrf.mxu1 }
 0x2c8   : > { %v1980_v22 = vadd.f32 %v1971_v7, %v1890_v6 }
 0x2cd   : > { %v4936_v16 = vpop.f32.mrf.mxu0 }
 0x2ce   : > { %v2071_v56 = vadd.f32 %v4936_v16, %v1981_v57  ;;  %v4969_v33 = vpop.f32.mrf.mxu1 }
 0x2cf   : > { %v2061_v4 = vpop.f32.mrf.mxu0 }
 0x2d0   : > { %v2070_v44 = vadd.f32 %v2061_v4, %v1980_v22  ;;  %v2161_v40 = vadd.f32 %v4947_v12, %v2071_v56  ;;  %v2331_v52 = vpop.f32.mrf.mxu1 }
 0x2d2   : > { %v2160_v17 = vadd.f32 %v2151_v21, %v2070_v44 }
 0x2d7   : > { %v4958_v24 = vpop.f32.mrf.mxu0 }
 0x2d8   : > { %v2251_v45 = vadd.f32 %v4958_v24, %v2161_v40  ;;  %v4991_v53 = vpop.f32.mrf.mxu1 }
 0x2d9   : > { %v2241_v43 = vpop.f32.mrf.mxu0 }
 0x2da   : > { %v2250_v37 = vadd.f32 %v2241_v43, %v2160_v17  ;;  %v2341_v55 = vadd.f32 %v4969_v33, %v2251_v45  ;;  %v2511_v16 = vpop.f32.mrf.mxu1 }
 0x2dc   : > { %v2340_v59 = vadd.f32 %v2331_v52, %v2250_v37 }
 0x2e1   : > { %v4980_v58 = vpop.f32.mrf.mxu0 }
 0x2e2   : > { %v2431_v61 = vadd.f32 %v4980_v58, %v2341_v55  ;;  %v5013_v7 = vpop.f32.mrf.mxu1 }
 0x2e3   : > { %v2421_v8 = vpop.f32.mrf.mxu0 }
 0x2e4   : > { %v2430_v36 = vadd.f32 %v2421_v8, %v2340_v59  ;;  %v2521_v6 = vadd.f32 %v4991_v53, %v2431_v61  ;;  %v2691_v22 = vpop.f32.mrf.mxu1  ;;  %v4531_v53 = vld [vmem:[%s6369_s26] ss:$0 sm:$0xff] }
 0x2e6   : > { %v2520_v56 = vadd.f32 %v2511_v16, %v2430_v36 }
 0x2eb   : > { %v5002_v2 = vpop.f32.mrf.mxu0 }
 0x2ec   : > { %v2611_v57 = vadd.f32 %v5002_v2, %v2521_v6  ;;  %v5035_v21 = vpop.f32.mrf.mxu1 }
 0x2ed   : > { %v2601_v4 = vpop.f32.mrf.mxu0 }
 0x2ee   : > { %v2610_v12 = vadd.f32 %v2601_v4, %v2520_v56  ;;  %v2701_v44 = vadd.f32 %v5013_v7, %v2611_v57  ;;  %v2871_v17 = vpop.f32.mrf.mxu1 }
 0x2f0   : > { %v2700_v33 = vadd.f32 %v2691_v22, %v2610_v12 }
 0x2f5   : > { %v5024_v24 = vpop.f32.mrf.mxu0 }
 0x2f6   : > { %v2791_v43 = vadd.f32 %v5024_v24, %v2701_v44  ;;  %v5057_v37 = vpop.f32.mrf.mxu1 }
 0x2f7   : > { %v2781_v40 = vpop.f32.mrf.mxu0 }
 0x2f8   : > { %v2790_v45 = vadd.f32 %v2781_v40, %v2700_v33  ;;  %v2881_v58 = vadd.f32 %v5035_v21, %v2791_v43  ;;  %v3051_v36 = vpop.f32.mrf.mxu1 }
 0x2fa   : > { %v2880_v8 = vadd.f32 %v2871_v17, %v2790_v45 }
 0x2fe   : > { %v5046_v52 = vpop.f32.mrf.mxu0 }
 0x2ff   : > { %v2971_v55 = vadd.f32 %v5046_v52, %v2881_v58 }
 0x300   : > { %v2961_v61 = vpop.f32.mrf.mxu0 }
 0x301   : > { %v3061_v59 = vadd.f32 %v5057_v37, %v2971_v55  ;;  %v2970_v2 = vadd.f32 %v2961_v61, %v2880_v8  ;;  %v3123_v55 = vld [vmem:[%s6370_s0 + $0x18] sm:$0xff]  ;;  %v4538_v61 = vld [vmem:[%s6370_s0 + $0x30] sm:$0xff] }
 0x302   : > { %v4539_v8 = vld [vmem:[%s6370_s0 + $0x38] sm:$0xff]  ;;  %5058 = vmatprep.subr.mxu0 %v3123_v55 }
 0x303   : > { %v3070_v16 = vadd.f32 %v4531_v53, %v3061_v59  ;;  %v3060_v6 = vadd.f32 %v3051_v36, %v2970_v2  ;;  %5069 = vmatprep.subr.mxu1 %v4539_v8  ;;  %5059 = vmatpush3.msra.mxu0 %v3123_v55  ;;  %v3121_v59 = vld [vmem:[%s6370_s0 + $0x8] sm:$0xff]  ;;  %v3120_v36 = vld [vmem:[%s6370_s0] sm:$0xff] }
 0x304   : > { %5070 = vmatpush3.msra.mxu1 %v4539_v8  ;;  %v4537_v2 = vld [vmem:[%s6370_s0 + $0x28] sm:$0xff] }
 0x305   : > { %v3069_v7 = vadd.f32 %v4531_v53, %v3060_v6  ;;  %5246 = vtanh.f32 %v3070_v16  ;;  %v3122_v53 = vld [vmem:[%s6370_s0 + $0x10] sm:$0xff]  ;;  %5071 = vmatprep.subr.mxu1 %v4538_v61  ;;  %v4536_v16 = vld [vmem:[%s6370_s0 + $0x20] sm:$0xff] }
 0x306   : > { %5060 = vmatprep.subr.mxu0 %v3122_v53  ;;  %5072 = vmatpush3.msra.mxu1 %v4538_v61 }
 0x307   : > { %5248 = vtanh.f32 %v3069_v7  ;;  %5061 = vmatpush3.msra.mxu0 %v3122_v53  ;;  %5073 = vmatprep.subr.mxu1 %v4537_v2 }
 0x308   : > { %5062 = vmatprep.subr.mxu0 %v3121_v59  ;;  %5074 = vmatpush3.msra.mxu1 %v4537_v2 }
 0x309   : > { %5063 = vmatpush3.msra.mxu0 %v3121_v59  ;;  %5075 = vmatprep.subr.mxu1 %v4536_v16 }
 0x30a   : > { %5064 = vmatprep.subr.mxu0 %v3120_v36  ;;  %5076 = vmatpush3.msra.mxu1 %v4536_v16 }
 0x30b   : > { %5065 = vmatpush3.msra.mxu0 %v3120_v36 }
 0x312   : > { %v5247_v4 = vpop.eup %5246 }
 0x313   : > { %v3080_v22 = vadd.f32 %v5247_v4, %v5247_v4 }
 0x314   : > { %v5249_v57 = vpop.eup %5248 }
 0x315   : > { %v3079_v56 = vadd.f32 %v5249_v57, %v5249_v57  ;;  %v3084_v24 = vsel %vm1038_vm7, %v3080_v22, 0.0 }
 0x317   : > { %v3081_v12 = vsel %vm1038_vm7, %v3079_v56, 0.0 }
 0x318   : > { %3082 = vadd.xlane.f32.xlu0 %v3081_v12 }
 0x31c   : > { %3085 = vadd.xlane.f32.xlu0 %v3084_v24  ;;  %v5882_v24 = vld [vmem:[%s6371_s5] ss:$0 sm:$0xff] }
 0x3a1   : > { %v3083_v44 = vpop.xlane.xlu0 %3082 }
 0x3a2   : > { %v3088_v21 = vmul.f32 0.03125, %v3083_v44 }
 0x3a4   : > { %v3090_v40 = vsub.f32 %v3079_v56, %v3088_v21  ;;  %v5887_v21 = vld [vmem:[%s6371_s5 + $0x1] ss:$0 sm:$0xff] }
 0x3a5   : > { %v3086_v43 = vpop.xlane.xlu0 %3085 }
 0x3a6   : > { %v3089_v33 = vmul.f32 0.03125, %v3086_v43  ;;  %v3092_v45 = vmul.f32 %v3090_v40, %v3090_v40 }
 0x3a8   : > { %v3091_v17 = vsub.f32 %v3080_v22, %v3089_v33  ;;  %v3094_v58 = vsel %vm1038_vm7, %v3092_v45, 0.0 }
 0x3a9   : > { %3095 = vadd.xlane.f32.xlu1 %v3094_v58 }
 0x3aa   : > { %v3093_v37 = vmul.f32 %v3091_v17, %v3091_v17 }
 0x3ac   : > { %v3097_v52 = vsel %vm1038_vm7, %v3093_v37, 0.0 }
 0x3ad   : > { %3098 = vadd.xlane.f32.xlu1 %v3097_v52 }
 0x432   : > { %v3096_v6 = vpop.xlane.xlu1 %3095 }
 0x433   : > { %v3100_v7 = vmul.f32 0.03125, %v3096_v6 }
 0x435   : > { %v3102_v4 = vadd.f32 1e-05, %v3100_v7 }
 0x436   : > { %v3099_v57 = vpop.xlane.xlu1 %3098 }
 0x437   : > { %5250 = vrsqrt.f32 %v3102_v4  ;;  %v3101_v56 = vmul.f32 0.03125, %v3099_v57  ;;  %v4550_v57 = vld [vmem:[%s6372_s28] ss:$0 sm:$0xff] }
 0x439   : > { %v3103_v12 = vadd.f32 1e-05, %v3101_v56 }
 0x43b   : > { %5252 = vrsqrt.f32 %v3103_v12 }
 0x444   : > { %v5251_v22 = vpop.eup %5250 }
 0x445   : > { %v3106_v44 = vmul.f32 %v5251_v22, %v3090_v40  ;;  %v3286_v40 = vmul.u32 2, %v5728_v46  ;;  %v3285_v46 = vadd.s32 24, %v5722_v26 }
 0x447   : > { %v3112_v43 = vmul.f32 %v5882_v24, %v3106_v44  ;;  %v3295_v55 = vadd.s32 1, %v3286_v40  ;;  %vm3287_vm10 = vcmp.eq.s32.totalorder %v5722_v26, %v3286_v40  ;;  %vm3288_vm13 = vcmp.eq.s32.totalorder %v5726_v41, %v3286_v40 }
 0x448   : > { %v5253_v33 = vpop.eup %5252  ;;  %v3291_v8 = vsel %vm3287_vm10, 1.0, %v5349_v10  ;;  %vm3289_vm15 = vcmp.eq.s32.totalorder %v5732_v54, %v3286_v40  ;;  %v3292_v16 = vsel %vm3288_vm13, 1.0, %v5349_v10  ;;  %vm3290_vm10 = vcmp.eq.s32.totalorder %v3285_v46, %v3286_v40 }
 0x449   : > { %v3107_v45 = vmul.f32 %v5253_v33, %v3091_v17  ;;  %v3118_v58 = vadd.f32 %v5887_v21, %v3112_v43  ;;  %vm3296_vm9 = vcmp.eq.s32.totalorder %v5722_v26, %v3295_v55  ;;  %vm3297_vm12 = vcmp.eq.s32.totalorder %v5726_v41, %v3295_v55 }
 0x44a   : > { %v3300_v17 = vsel %vm3296_vm9, 1.0, %v5349_v10  ;;  %vm3298_vm14 = vcmp.eq.s32.totalorder %v5732_v54, %v3295_v55  ;;  %v3301_v36 = vsel %vm3297_vm12, 1.0, %v5349_v10  ;;  %v3293_v41 = vsel %vm3289_vm15, 1.0, %v5349_v10 }
 0x44b   : > { %5066 = vmatprep.mubr.msk.f32.mxu0 %vm1038_vm7, %v3118_v58  ;;  %5077 = vmatprep.mubr.msk.f32.mxu1 %vm1038_vm7, %v3118_v58  ;;  %v3113_v37 = vmul.f32 %v5882_v24, %v3107_v45  ;;  %v3302_v26 = vsel %vm3298_vm14, 1.0, %v5349_v10  ;;  %vm3299_vm9 = vcmp.eq.s32.totalorder %v3285_v46, %v3295_v55  ;;  %v3294_v6 = vsel %vm3290_vm10, 1.0, %v5349_v10 }
 0x44c   : > { %v3303_v54 = vsel %vm3299_vm9, 1.0, %v5349_v10 }
 0x44d   : > { %v3119_v52 = vadd.f32 %v5887_v21, %v3113_v37 }
 0x44f   : > { %5067 = vmatmul.mubr.msk.f32.vlgmr.msra.gmra.mxu0 %vm1038_vm7, %v3119_v52  ;;  %5078 = vmatmul.mubr.msk.f32.vlgmr.msra.gmra.mxu1 %vm1038_vm7, %v3119_v52 }
 0x450   : > { %5084 = vmatprep.mubr.msk.f32.mxu0 %vm3304_vm11, %v3300_v17  ;;  %5094 = vmatprep.mubr.msk.f32.mxu1 %vm3304_vm11, %v3291_v8 }
 0x50f   : > { %v5068_v53 = vpop.f32.mrf.mxu0  ;;  %v5079_v61 = vpop.f32.mrf.mxu1 }
 0x510   : > { %5080 = vmatprep.subr.mxu0 %v5079_v61  ;;  %5090 = vmatprep.subr.mxu1 %v5068_v53 }
 0x511   : > { %v3196_v59 = vpop.f32.mrf.mxu0  ;;  %v3276_v2 = vpop.f32.mrf.mxu1  ;;  %5081 = vmatpush3.msra.mxu0 %v5079_v61  ;;  %5091 = vmatpush3.msra.mxu1 %v5068_v53 }
 0x512   : > { %5082 = vmatprep.subr.mxu0 %v3276_v2  ;;  %5092 = vmatprep.subr.mxu1 %v3196_v59 }
 0x513   : > { %5083 = vmatpush3.msra.mxu0 %v3276_v2  ;;  %5093 = vmatpush3.msra.mxu1 %v3196_v59 }
 0x514   : > { %5085 = vmatmul.mubr.msk.f32.vlgmr.msra.gmra.mxu0 %vm3304_vm11, %v3301_v36  ;;  %5095 = vmatmul.mubr.msk.f32.vlgmr.msra.gmra.mxu1 %vm3304_vm11, %v3292_v16 }
 0x515   : > { %5087 = vmatprep.mubr.msk.f32.mxu0 %vm3304_vm11, %v3302_v26  ;;  %5097 = vmatprep.mubr.msk.f32.mxu1 %vm3304_vm11, %v3293_v41 }
 0x518   : > { %5088 = vmatmul.mubr.msk.f32.gmra.mxu0 %vm3304_vm11, %v3303_v54  ;;  %5098 = vmatmul.mubr.msk.f32.gmra.mxu1 %vm3304_vm11, %v3294_v6 }
 0x5d4   : > { %v5086_v7 = vpop.f32.mrf.mxu0  ;;  %v5096_v4 = vpop.f32.mrf.mxu1 }
 0x5d5   : > { %v3486_v56 = vadd.f32 %v5096_v4, %v5086_v7 }
 0x5d6   : > { %v3383_v12 = vpop.f32.mrf.mxu0  ;;  %v3480_v22 = vpop.f32.mrf.mxu1 }
 0x5d7   : > { %v3507_v44 = vadd.f32 %v4550_v57, %v3486_v56  ;;  %v3481_v43 = vadd.f32 %v3480_v22, %v3383_v12 }
 0x5d8   : > { %v5089_v33 = vpop.f32.mrf.mxu0  ;;  %v5099_v45 = vpop.f32.mrf.mxu1 }
 0x5d9   : > { %5254 = vtanh.f32 %v3507_v44  ;;  %v3506_v58 = vadd.f32 %v4550_v57, %v3481_v43  ;;  %v3496_v37 = vadd.f32 %v5099_v45, %v5089_v33 }
 0x5da   : > { %v3393_v52 = vpop.f32.mrf.mxu0  ;;  %v3490_v40 = vpop.f32.mrf.mxu1 }
 0x5db   : > { %5256 = vtanh.f32 %v3506_v58  ;;  %v3509_v55 = vadd.f32 %v4550_v57, %v3496_v37  ;;  %v3491_v17 = vadd.f32 %v3490_v40, %v3393_v52 }
 0x5dd   : > { %5258 = vtanh.f32 %v3509_v55  ;;  %v3508_v8 = vadd.f32 %v4550_v57, %v3491_v17 }
 0x5df   : > { %5260 = vtanh.f32 %v3508_v8 }
 0x5e6   : > { %v5255_v46 = vpop.eup %5254 }
 0x5e7   : > { %v3515_v53 = vadd.f32 %v5255_v46, %v5633_v60  ;;  %v3581_v46 = vld [vmem:[%s6330_s10 + $0x18] sm:$0xff] }
 0x5e8   : > { %v5257_v61 = vpop.eup %5256  ;;  %5100 = vmatprep.subr.mxu0 %v3581_v46 }
 0x5e9   : > { %v3521_v59 = vsel %vm1038_vm7, %v3515_v53, 0.0  ;;  %v3514_v2 = vadd.f32 %v5257_v61, %v5619_v51  ;;  %5101 = vmatpush3.msra.mxu0 %v3581_v46  ;;  %v3579_v61 = vld [vmem:[%s6330_s10 + $0x8] sm:$0xff] }
 0x5ea   : > { %v5259_v36 = vpop.eup %5258  ;;  %3522 = vadd.xlane.f32.xlu1 %v3521_v59  ;;  %v3578_v59 = vld [vmem:[%s6330_s10] sm:$0xff] }
 0x5eb   : > { %v3518_v16 = vsel %vm1038_vm7, %v3514_v2, 0.0  ;;  %v3517_v26 = vadd.f32 %v5259_v36, %v5699_v30 }
 0x5ec   : > { %v5261_v41 = vpop.eup %5260  ;;  %3519 = vadd.xlane.f32.xlu0 %v3518_v16 }
 0x5ed   : > { %v3527_v54 = vsel %vm1038_vm7, %v3517_v26, 0.0  ;;  %v3516_v6 = vadd.f32 %v5261_v41, %v5678_v18 }
 0x5ee   : > { %3528 = vadd.xlane.f32.xlu1 %v3527_v54 }
 0x5ef   : > { %v3524_v60 = vsel %vm1038_vm7, %v3516_v6, 0.0 }
 0x5f0   : > { %3525 = vadd.xlane.f32.xlu0 %v3524_v60 }
 0x673   : > { %v3523_v7 = vpop.xlane.xlu1 %3522 }
 0x674   : > { %v3531_v4 = vmul.f32 0.03125, %v3523_v7 }
 0x675   : > { %v3520_v57 = vpop.xlane.xlu0 %3519 }
 0x676   : > { %v3535_v51 = vsub.f32 %v3515_v53, %v3531_v4  ;;  %v3530_v56 = vmul.f32 0.03125, %v3520_v57  ;;  %v3580_v53 = vld [vmem:[%s6330_s10 + $0x10] sm:$0xff] }
 0x677   : > { %v3529_v12 = vpop.xlane.xlu1 %3528  ;;  %5102 = vmatprep.subr.mxu0 %v3580_v53 }
 0x678   : > { %v3534_v22 = vsub.f32 %v3514_v2, %v3530_v56  ;;  %v3533_v44 = vmul.f32 0.03125, %v3529_v12  ;;  %v3539_v43 = vmul.f32 %v3535_v51, %v3535_v51  ;;  %5103 = vmatpush3.msra.mxu0 %v3580_v53 }
 0x679   : > { %v3526_v30 = vpop.xlane.xlu0 %3525  ;;  %5104 = vmatprep.subr.mxu0 %v3579_v61 }
 0x67a   : > { %v3537_v33 = vsub.f32 %v3517_v26, %v3533_v44  ;;  %v3532_v45 = vmul.f32 0.03125, %v3526_v30  ;;  %v3545_v58 = vsel %vm1038_vm7, %v3539_v43, 0.0  ;;  %v3538_v37 = vmul.f32 %v3534_v22, %v3534_v22  ;;  %5105 = vmatpush3.msra.mxu0 %v3579_v61 }
 0x67b   : > { %3546 = vadd.xlane.f32.xlu1 %v3545_v58  ;;  %5106 = vmatprep.subr.mxu0 %v3578_v59 }
 0x67c   : > { %v3536_v18 = vsub.f32 %v3516_v6, %v3532_v45  ;;  %v3542_v52 = vsel %vm1038_vm7, %v3538_v37, 0.0  ;;  %v3541_v40 = vmul.f32 %v3537_v33, %v3537_v33  ;;  %5107 = vmatpush3.msra.mxu0 %v3578_v59 }
 0x67d   : > { %3543 = vadd.xlane.f32.xlu0 %v3542_v52 }
 0x67e   : > { %v3551_v55 = vsel %vm1038_vm7, %v3541_v40, 0.0  ;;  %v3540_v17 = vmul.f32 %v3536_v18, %v3536_v18 }
 0x67f   : > { %3552 = vadd.xlane.f32.xlu1 %v3551_v55 }
 0x680   : > { %v3548_v8 = vsel %vm1038_vm7, %v3540_v17, 0.0 }
 0x681   : > { %3549 = vadd.xlane.f32.xlu0 %v3548_v8 }
 0x704   : > { %v3547_v2 = vpop.xlane.xlu1 %3546 }
 0x705   : > { %v3555_v36 = vmul.f32 0.03125, %v3547_v2 }
 0x706   : > { %v3544_v16 = vpop.xlane.xlu0 %3543 }
 0x707   : > { %v3559_v26 = vadd.f32 1e-05, %v3555_v36  ;;  %v3554_v41 = vmul.f32 0.03125, %v3544_v16 }
 0x708   : > { %v3553_v54 = vpop.xlane.xlu1 %3552 }
 0x709   : > { %5262 = vrsqrt.f32 %v3559_v26  ;;  %v3558_v6 = vadd.f32 1e-05, %v3554_v41  ;;  %v3557_v60 = vmul.f32 0.03125, %v3553_v54 }
 0x70a   : > { %v3550_v7 = vpop.xlane.xlu0 %3549 }
 0x70b   : > { %5264 = vrsqrt.f32 %v3558_v6  ;;  %v3561_v4 = vadd.f32 1e-05, %v3557_v60  ;;  %v3556_v57 = vmul.f32 0.03125, %v3550_v7 }
 0x70d   : > { %5266 = vrsqrt.f32 %v3561_v4  ;;  %v3560_v56 = vadd.f32 1e-05, %v3556_v57 }
 0x70f   : > { %5268 = vrsqrt.f32 %v3560_v56 }
 0x716   : > { %v5263_v12 = vpop.eup %5262 }
 0x717   : > { %v3567_v44 = vmul.f32 %v5263_v12, %v3535_v51 }
 0x718   : > { %v5265_v43 = vpop.eup %5264 }
 0x719   : > { %v3566_v30 = vmul.f32 %v5265_v43, %v3534_v22  ;;  %v3571_v58 = vmul.f32 %v5882_v24, %v3567_v44 }
 0x71a   : > { %v5267_v45 = vpop.eup %5266 }
 0x71b   : > { %v3570_v37 = vmul.f32 %v5882_v24, %v3566_v30  ;;  %v3569_v52 = vmul.f32 %v5267_v45, %v3537_v33  ;;  %v3575_v8 = vadd.f32 %v5887_v21, %v3571_v58  ;;  %v4551_v33 = vld [vmem:[%s6331_s11] ss:$0 sm:$0xff] }
 0x71c   : > { %v5269_v40 = vpop.eup %5268 }
 0x71d   : > { %v3574_v55 = vadd.f32 %v5887_v21, %v3570_v37  ;;  %v3568_v17 = vmul.f32 %v5269_v40, %v3536_v18  ;;  %v3573_v46 = vmul.f32 %v5882_v24, %v3569_v52 }
 0x71f   : > { %5108 = vmatprep.mubr.msk.f32.mxu0 %vm1038_vm7, %v3574_v55  ;;  %v3572_v51 = vmul.f32 %v5882_v24, %v3568_v17  ;;  %v3577_v53 = vadd.f32 %v5887_v21, %v3573_v46 }
 0x720   : > { %5109 = vmatmul.mubr.msk.f32.vlgmr.msra.gmra.mxu0 %vm1038_vm7, %v3575_v8 }
 0x721   : > { %v3576_v22 = vadd.f32 %v5887_v21, %v3572_v51 }
 0x723   : > { %5111 = vmatprep.mubr.msk.f32.mxu0 %vm1038_vm7, %v3576_v22 }
 0x724   : > { %5112 = vmatmul.mubr.msk.f32.gmra.mxu0 %vm1038_vm7, %v3577_v53  ;;  %v3757_v53 = vld [vmem:[%s6332_s12 + $0x18] sm:$0xff] }
 0x725   : > { %5114 = vmatprep.subr.mxu1 %v3757_v53 }
 0x726   : > { %5115 = vmatpush3.msra.mxu1 %v3757_v53 }
 0x7e0   : > { %v5110_v18 = vpop.f32.mrf.mxu0 }
 0x7e1   : > { %v5963_v61 = vadd.f32 %v5110_v18, %v4551_v33  ;;  %v3755_v18 = vld [vmem:[%s6332_s12 + $0x8] sm:$0xff] }
 0x7e2   : > { %v3667_v59 = vpop.f32.mrf.mxu0 }
 0x7e3   : > { %v5965_v2 = vadd.f32 %v4551_v33, %v3667_v59  ;;  %v3689_v24 = vsel %vm1038_vm7, %v5963_v61, 0.0  ;;  %v3754_v59 = vld [vmem:[%s6332_s12] sm:$0xff] }
 0x7e4   : > { %3690 = vadd.xlane.f32.xlu1 %v3689_v24  ;;  %v5113_v36 = vpop.f32.mrf.mxu0  ;;  %v3877_v24 = vld [vmem:[%s6334_s14 + $0x78] sm:$0xff] }
 0x7e5   : > { %v5969_v21 = vadd.f32 %v5113_v36, %v4551_v33  ;;  %v3686_v16 = vsel %vm1038_vm7, %v5965_v2, 0.0  ;;  %v3876_v36 = vld [vmem:[%s6334_s14 + $0x70] sm:$0xff]  ;;  %5128 = vmatprep.subr.mxu0 %v3877_v24 }
 0x7e6   : > { %3687 = vadd.xlane.f32.xlu0 %v3686_v16  ;;  %v3677_v26 = vpop.f32.mrf.mxu0  ;;  %5129 = vmatpush3.msra.mxu0 %v3877_v24  ;;  %v3875_v16 = vld [vmem:[%s6334_s14 + $0x68] sm:$0xff] }
 0x7e7   : > { %v5973_v41 = vadd.f32 %v4551_v33, %v3677_v26  ;;  %v3695_v54 = vsel %vm1038_vm7, %v5969_v21, 0.0  ;;  %v3756_v33 = vld [vmem:[%s6332_s12 + $0x10] sm:$0xff]  ;;  %5130 = vmatprep.subr.mxu0 %v3876_v36  ;;  %v3874_v26 = vld [vmem:[%s6334_s14 + $0x60] sm:$0xff] }
 0x7e8   : > { %3696 = vadd.xlane.f32.xlu1 %v3695_v54  ;;  %5116 = vmatprep.subr.mxu1 %v3756_v33  ;;  %v3873_v54 = vld [vmem:[%s6334_s14 + $0x58] sm:$0xff] }
 0x7e9   : > { %v3692_v6 = vsel %vm1038_vm7, %v5973_v41, 0.0  ;;  %5117 = vmatpush3.msra.mxu1 %v3756_v33  ;;  %5131 = vmatpush3.msra.mxu0 %v3876_v36  ;;  %v4556_v36 = vld [vmem:[%s6371_s5 + $0x2] ss:$0 sm:$0xff] }
 0x7ea   : > { %3693 = vadd.xlane.f32.xlu0 %v3692_v6  ;;  %5118 = vmatprep.subr.mxu1 %v3755_v18  ;;  %v3872_v6 = vld [vmem:[%s6334_s14 + $0x50] sm:$0xff] }
 0x7eb   : > { %5119 = vmatpush3.msra.mxu1 %v3755_v18  ;;  %5132 = vmatprep.subr.mxu0 %v3875_v16 }
 0x7ec   : > { %5120 = vmatprep.subr.mxu1 %v3754_v59  ;;  %5133 = vmatpush3.msra.mxu0 %v3875_v16 }
 0x7ed   : > { %5121 = vmatpush3.msra.mxu1 %v3754_v59  ;;  %5134 = vmatprep.subr.mxu0 %v3874_v26 }
 0x7ee   : > { %5135 = vmatpush3.msra.mxu0 %v3874_v26 }
 0x7ef   : > { %5136 = vmatprep.subr.mxu0 %v3873_v54 }
 0x7f0   : > { %5137 = vmatpush3.msra.mxu0 %v3873_v54 }
 0x7f1   : > { %5138 = vmatprep.subr.mxu0 %v3872_v6 }
 0x7f2   : > { %5139 = vmatpush3.msra.mxu0 %v3872_v6 }
 0x86d   : > { %v3691_v60 = vpop.xlane.xlu1 %3690 }
 0x86e   : > { %v3699_v7 = vmul.f32 0.03125, %v3691_v60  ;;  %v3871_v60 = vld [vmem:[%s6334_s14 + $0x48] sm:$0xff] }
 0x86f   : > { %v3688_v4 = vpop.xlane.xlu0 %3687  ;;  %5140 = vmatprep.subr.mxu0 %v3871_v60 }
 0x870   : > { %v5980_v57 = vsub.f32 %v5963_v61, %v3699_v7  ;;  %v3698_v56 = vmul.f32 0.03125, %v3688_v4  ;;  %v3870_v7 = vld [vmem:[%s6334_s14 + $0x40] sm:$0xff]  ;;  %5141 = vmatpush3.msra.mxu0 %v3871_v60  ;;  %v3869_v4 = vld [vmem:[%s6334_s14 + $0x38] sm:$0xff] }
 0x871   : > { %v3697_v12 = vpop.xlane.xlu1 %3696  ;;  %5142 = vmatprep.subr.mxu0 %v3870_v7  ;;  %v4557_v60 = vld [vmem:[%s6371_s5 + $0x3] ss:$0 sm:$0xff] }
 0x872   : > { %v5983_v44 = vsub.f32 %v5965_v2, %v3698_v56  ;;  %v3701_v43 = vmul.f32 0.03125, %v3697_v12  ;;  %v3707_v30 = vmul.f32 %v5980_v57, %v5980_v57  ;;  %5143 = vmatpush3.msra.mxu0 %v3870_v7  ;;  %v3868_v56 = vld [vmem:[%s6334_s14 + $0x30] sm:$0xff]  ;;  %v3867_v12 = vld [vmem:[%s6334_s14 + $0x28] sm:$0xff] }
 0x873   : > { %v3694_v45 = vpop.xlane.xlu0 %3693  ;;  %5144 = vmatprep.subr.mxu0 %v3869_v4 }
 0x874   : > { %v5988_v58 = vsub.f32 %v5969_v21, %v3701_v43  ;;  %v3700_v37 = vmul.f32 0.03125, %v3694_v45  ;;  %v3713_v52 = vsel %vm1038_vm7, %v3707_v30, 0.0  ;;  %v3706_v40 = vmul.f32 %v5983_v44, %v5983_v44  ;;  %5145 = vmatpush3.msra.mxu0 %v3869_v4  ;;  %v3866_v43 = vld [vmem:[%s6334_s14 + $0x20] sm:$0xff]  ;;  %v3865_v30 = vld [vmem:[%s6334_s14 + $0x18] sm:$0xff] }
 0x875   : > { %3714 = vadd.xlane.f32.xlu1 %v3713_v52  ;;  %5146 = vmatprep.subr.mxu0 %v3868_v56 }
 0x876   : > { %v5994_v55 = vsub.f32 %v5973_v41, %v3700_v37  ;;  %v3710_v17 = vsel %vm1038_vm7, %v3706_v40, 0.0  ;;  %v3709_v8 = vmul.f32 %v5988_v58, %v5988_v58  ;;  %5147 = vmatpush3.msra.mxu0 %v3868_v56 }
 0x877   : > { %3711 = vadd.xlane.f32.xlu0 %v3710_v17  ;;  %5148 = vmatprep.subr.mxu0 %v3867_v12 }
 0x878   : > { %v3719_v46 = vsel %vm1038_vm7, %v3709_v8, 0.0  ;;  %v3708_v51 = vmul.f32 %v5994_v55, %v5994_v55  ;;  %5149 = vmatpush3.msra.mxu0 %v3867_v12 }
 0x879   : > { %3720 = vadd.xlane.f32.xlu1 %v3719_v46  ;;  %5150 = vmatprep.subr.mxu0 %v3866_v43 }
 0x87a   : > { %v3716_v22 = vsel %vm1038_vm7, %v3708_v51, 0.0  ;;  %5151 = vmatpush3.msra.mxu0 %v3866_v43 }
 0x87b   : > { %3717 = vadd.xlane.f32.xlu0 %v3716_v22  ;;  %5152 = vmatprep.subr.mxu0 %v3865_v30 }
 0x87c   : > { %5153 = vmatpush3.msra.mxu0 %v3865_v30 }
 0x8fe   : > { %v3715_v45 = vpop.xlane.xlu1 %3714 }
 0x8ff   : > { %v3723_v37 = vmul.f32 0.03125, %v3715_v45 }
 0x900   : > { %v3712_v52 = vpop.xlane.xlu0 %3711 }
 0x901   : > { %v3727_v40 = vadd.f32 1e-05, %v3723_v37  ;;  %v3722_v17 = vmul.f32 0.03125, %v3712_v52  ;;  %v3862_v52 = vld [vmem:[%s6334_s14] sm:$0xff] }
 0x902   : > { %v3721_v8 = vpop.xlane.xlu1 %3720 }
 0x903   : > { %5270 = vrsqrt.f32 %v3727_v40  ;;  %v3726_v46 = vadd.f32 1e-05, %v3722_v17  ;;  %v3725_v51 = vmul.f32 0.03125, %v3721_v8  ;;  %v4558_v17 = vld [vmem:[%s6333_s13] ss:$0 sm:$0xff] }
 0x904   : > { %v3718_v22 = vpop.xlane.xlu0 %3717 }
 0x905   : > { %5272 = vrsqrt.f32 %v3726_v46  ;;  %v3729_v53 = vadd.f32 1e-05, %v3725_v51  ;;  %v3724_v33 = vmul.f32 0.03125, %v3718_v22 }
 0x907   : > { %5274 = vrsqrt.f32 %v3729_v53  ;;  %v3728_v18 = vadd.f32 1e-05, %v3724_v33 }
 0x909   : > { %5276 = vrsqrt.f32 %v3728_v18 }
 0x910   : > { %v5271_v59 = vpop.eup %5270 }
 0x911   : > { %v3735_v24 = vmul.f32 %v5271_v59, %v5980_v57  ;;  %v5351_v59 = vmov 0  }
 0x912   : > { %v5273_v16 = vpop.eup %5272  ;;  %5238 = vset.pattern.permute.xlu0 %v5351_v59  ;;  %5239 = vset.pattern.permute.xlu1 %v5351_v59 }
 0x913   : > { %v3734_v26 = vmul.f32 %v5273_v16, %v5983_v44  ;;  %v3743_v6 = vmul.f32 %v4556_v36, %v3735_v24  ;;  %v4563_v24 = vld [vmem:[%s6335_s15] ss:$0 sm:$0xff] }
 0x914   : > { %v5275_v54 = vpop.eup %5274 }
 0x915   : > { %v3742_v7 = vmul.f32 %v4556_v36, %v3734_v26  ;;  %v3737_v4 = vmul.f32 %v5275_v54, %v5988_v58  ;;  %v3751_v43 = vadd.f32 %v4557_v60, %v3743_v6  ;;  %v3864_v58 = vld [vmem:[%s6334_s14 + $0x10] sm:$0xff] }
 0x916   : > { %v5277_v56 = vpop.eup %5276  ;;  %5154 = vmatprep.subr.mxu0 %v3864_v58 }
 0x917   : > { %v3750_v12 = vadd.f32 %v4557_v60, %v3742_v7  ;;  %v3736_v57 = vmul.f32 %v5277_v56, %v5994_v55  ;;  %v3745_v30 = vmul.f32 %v4556_v36, %v3737_v4  ;;  %5155 = vmatpush3.msra.mxu0 %v3864_v58  ;;  %v3863_v55 = vld [vmem:[%s6334_s14 + $0x8] sm:$0xff] }
 0x918   : > { %5156 = vmatprep.subr.mxu0 %v3863_v55  ;;  %v4471_v58 = vld [vmem:[#allocation3] ss:$0 sm:$0xff] }
 0x919   : > { %5122 = vmatprep.mubr.msk.f32.mxu1 %vm1038_vm7, %v3750_v12  ;;  %v3744_v45 = vmul.f32 %v4556_v36, %v3736_v57  ;;  %v3753_v37 = vadd.f32 %v4557_v60, %v3745_v30  ;;  %5157 = vmatpush3.msra.mxu0 %v3863_v55 }
 0x91a   : > { %5123 = vmatmul.mubr.msk.f32.vlgmr.msra.gmra.mxu1 %vm1038_vm7, %v3751_v43  ;;  %5158 = vmatprep.subr.mxu0 %v3862_v52 }
 0x91b   : > { %v3752_v44 = vadd.f32 %v4557_v60, %v3744_v45  ;;  %5159 = vmatpush3.msra.mxu0 %v3862_v52 }
 0x91d   : > { %5125 = vmatprep.mubr.msk.f32.mxu1 %vm1038_vm7, %v3752_v44 }
 0x91e   : > { %5126 = vmatmul.mubr.msk.f32.gmra.mxu1 %vm1038_vm7, %v3753_v37  ;;  %v4472_v37 = vld [vmem:[#allocation4] ss:$0 sm:$0xff] }
 0x9da   : > { %v5124_v40 = vpop.f32.mrf.mxu1 }
 0x9db   : > { %v3849_v51 = vadd.f32 %v5124_v40, %v4558_v17 }
 0x9dc   : > { %v3843_v8 = vpop.f32.mrf.mxu1 }
 0x9dd   : > { %v3844_v46 = vadd.f32 %v4558_v17, %v3843_v8 }
 0x9de   : > { %v5127_v22 = vpop.f32.mrf.mxu1 }
 0x9df   : > { %5160 = vmatprep.mubr.f32.mxu0 %v3844_v46  ;;  %v3859_v18 = vadd.f32 %v5127_v22, %v4558_v17 }
 0x9e0   : > { %v3853_v53 = vpop.f32.mrf.mxu1  ;;  %5161 = vmatmul.mubr.f32.vlgmr.msra.gmra.mxu0 %v3849_v51 }
 0x9e1   : > { %v3854_v33 = vadd.f32 %v4558_v17, %v3853_v53 }
 0x9e3   : > { %5163 = vmatprep.mubr.f32.mxu0 %v3854_v33 }
 0x9e4   : > { %5164 = vmatmul.mubr.f32.gmra.mxu0 %v3859_v18 }
 0xaa0   : > { %v5162_v36 = vpop.f32.mrf.mxu0 }
 0xaa1   : > { %v3957_v16 = vadd.f32 %v5162_v36, %v4563_v24 }
 0xaa2   : > { %v3951_v26 = vpop.f32.mrf.mxu0 }
 0xaa3   : > { %v3952_v54 = vadd.f32 %v4563_v24, %v3951_v26  ;;  %v3971_v6 = vadd.f32 %v3957_v16, %v5963_v61 }
 0xaa4   : > { %v5165_v60 = vpop.f32.mrf.mxu0 }
 0xaa5   : > { %v3967_v7 = vadd.f32 %v5165_v60, %v4563_v24  ;;  %v3977_v4 = vsel %vm1038_vm7, %v3971_v6, 0.0  ;;  %v3970_v56 = vadd.f32 %v3952_v54, %v5965_v2  ;;  %v6115_v60 = vld [vmem:[%s5511_s7 + $0x10] sm:$0xff] }
 0xaa6   : > { %3978 = vadd.xlane.f32.xlu1 %v3977_v4  ;;  %v3961_v12 = vpop.f32.mrf.mxu0 }
 0xaa7   : > { %v3962_v57 = vadd.f32 %v4563_v24, %v3961_v12  ;;  %v3974_v43 = vsel %vm1038_vm7, %v3970_v56, 0.0  ;;  %v3973_v30 = vadd.f32 %v3967_v7, %v5969_v21 }
 0xaa8   : > { %3975 = vadd.xlane.f32.xlu0 %v3974_v43  ;;  %v4315_v43 = vld [vmem:[%s6343_s23] sm:$0xff] }
 0xaa9   : > { %v3983_v45 = vsel %vm1038_vm7, %v3973_v30, 0.0  ;;  %v3972_v44 = vadd.f32 %v3962_v57, %v5973_v41 }
 0xaaa   : > { %3984 = vadd.xlane.f32.xlu1 %v3983_v45  ;;  %v4045_v45 = vld [vmem:[%s6336_s16 + $0x18] sm:$0xff] }
 0xaab   : > { %v3980_v61 = vsel %vm1038_vm7, %v3972_v44, 0.0  ;;  %5166 = vmatprep.subr.mxu1 %v4045_v45 }
 0xaac   : > { %3981 = vadd.xlane.f32.xlu0 %v3980_v61  ;;  %5167 = vmatpush3.msra.mxu1 %v4045_v45  ;;  %v823_v45 = vadd.f32 %v5696_v25, %v5655_v3 }
 0xabb   : > { %983 = vperm.xlu1 %5239, %v4472_v37  }
 0xac2   : > { %969 = vperm.xlu0 %5238, %v4471_v58   ;;  %v4043_v58 = vld [vmem:[%s6336_s16 + $0x8] sm:$0xff] }
 0xb2f   : > { %v3979_v2 = vpop.xlane.xlu1 %3978 }
 0xb30   : > { %v3987_v55 = vmul.f32 0.03125, %v3979_v2  ;;  %v4042_v2 = vld [vmem:[%s6336_s16] sm:$0xff] }
 0xb31   : > { %v3976_v52 = vpop.xlane.xlu0 %3975 }
 0xb32   : > { %v6091_v40 = vsub.f32 %v3971_v6, %v3987_v55  ;;  %v3986_v17 = vmul.f32 0.03125, %v3976_v52  ;;  %v5303_v55 = vld [vmem:[%s5511_s7 + $0x8] sm:$0xff] }
 0xb33   : > { %v3985_v21 = vpop.xlane.xlu1 %3984  ;;  %v951_v52 = vadd.f32 %v5303_v55, %v5710_v35 }
 0xb34   : > { %v6093_v8 = vsub.f32 %v3970_v56, %v3986_v17  ;;  %v3989_v46 = vmul.f32 0.03125, %v3985_v21  ;;  %v3995_v41 = vmul.f32 %v6091_v40, %v6091_v40  ;;  %v6143_v17 = vld [vmem:[%s5511_s7 + $0x18] sm:$0xff] }
 0xb35   : > { %v3982_v51 = vpop.xlane.xlu0 %3981  ;;  %v955_v21 = vadd.f32 %v6143_v17, %v951_v52 }
 0xb36   : > { %v3988_v22 = vmul.f32 0.03125, %v3982_v51  ;;  %v4001_v53 = vsel %vm1038_vm7, %v3995_v41, 0.0  ;;  %v3994_v33 = vmul.f32 %v6093_v8, %v6093_v8  ;;  %v6100_v18 = vsub.f32 %v3973_v30, %v3989_v46  ;;  %v4151_v30 = vld [vmem:[%s6339_s19] sm:$0xff] }
 0xb37   : > { %4002 = vadd.xlane.f32.xlu0 %v4001_v53  ;;  %v6112_v6 = vpop.permute.xlu1 %983  ;;  %v933_v46 = vmul.f32 0.07692308, %v5702_v31  ;;  %v959_v41 = vmul.f32 0.05882353, %v955_v21 }
 0xb38   : > { %v6102_v59 = vsub.f32 %v3972_v44, %v3988_v22  ;;  %v3998_v24 = vsel %vm1038_vm7, %v3994_v33, 0.0  ;;  %v3997_v26 = vmul.f32 %v6100_v18, %v6100_v18  ;;  %v4044_v44 = vld [vmem:[%s6336_s16 + $0x10] sm:$0xff] }
 0xb39   : > { %3999 = vadd.xlane.f32.xlu1 %v3998_v24  ;;  %5168 = vmatprep.subr.mxu1 %v4044_v44 }
 0xb3a   : > { %v3996_v36 = vmul.f32 %v6102_v59, %v6102_v59  ;;  %v4007_v4 = vsel %vm1038_vm7, %v3997_v26, 0.0  ;;  %5169 = vmatpush3.msra.mxu1 %v4044_v44 }
 0xb3b   : > { %5170 = vmatprep.subr.mxu1 %v4043_v58 }
 0xb3c   : > { %v4004_v16 = vsel %vm1038_vm7, %v3996_v36, 0.0  ;;  %5171 = vmatpush3.msra.mxu1 %v4043_v58  ;;  %v6150_v36 = vld [vmem:[%s5511_s7 + $0x20] sm:$0xff] }
 0xb3d   : > { %4005 = vadd.xlane.f32.xlu1 %v4004_v16  ;;  %v6110_v54 = vpop.permute.xlu0 %969  ;;  %5172 = vmatprep.subr.mxu1 %v4042_v2  ;;  %v815_v35 = vrot.slane %v6150_v36, 6  ;;  %v6154_v16 = vld [vmem:[%s5511_s7] sm:$0xff] }
 0xb3e   : > { %v973_v7 = vmul.f32 %v6115_v60, %v6110_v54  ;;  %5173 = vmatpush3.msra.mxu1 %v4042_v2  ;;  %v808_v26 = vrot.slane %v6154_v16, 6  ;;  %v974_v25 = vmul.f32 %v6143_v17, %v6110_v54 }
 0xb3f   : > { %5180 = vmatprep.subr.mxu1 %v5349_v10  ;;  %v6163_v31 = vsel %vm807_vm2, %v813_v13, %v815_v35 }
 0xb40   : > { %v987_v56 = vadd.f32 %v6112_v6, %v973_v7  ;;  %v831_v7 = vrot.slane %v6150_v36, 2 }
 0xb41   : > { %4008 = vadd.xlane.f32.xlu1 %v4007_v4  ;;  %v6166_v4 = vld [vmem:[%s5511_s7 + $0x28] sm:$0xff] }
 0xb42   : > { %v991_v12 = vsub.f32 0.0, %v987_v56  ;;  %v833_v56 = vrot.slane %v6166_v4, 2  ;;  %v832_v13 = vsel %vm825_vm3, %v829_v32, %v831_v7  ;;  %v869_v3 = vrot.slane %v6166_v4, 3 }
 0xb43   : > { %v841_v32 = vadd.f32 %v832_v13, %v823_v45 }
 0xb44   : > { %v996_v57 = vmul.f32 1.442695, %v991_v12  ;;  %v824_v12 = vadd.f32 %v6163_v31, %v5674_v15 }
 0xb46   : > { %5278 = vpow2.f32 %v996_v57  ;;  %v810_v57 = vsel %vm807_vm2, %v808_v26, %v809_v20  ;;  %v867_v20 = vrot.slane %v6150_v36, 3 }
 0xb47   : > { %v821_v44 = vadd.f32 %v810_v57, %v5577_v29 }
 0xb49   : > { %v839_v29 = vadd.f32 %v5683_v19, %v821_v44  ;;  %v868_v19 = vsel %vm861_vm5, %v865_v42, %v867_v20 }
 0xb4d   : > { %4318 = vperm.xlu0 %5238, %v4315_v43   ;;  %v834_v43 = vsel %vm825_vm3, %v831_v7, %v833_v56 }
 0xb4e   : > { %v842_v15 = vadd.f32 %v834_v43, %v824_v12 }
 0xb52   : > { %4154 = vperm.xlu1 %5239, %v4151_v30   ;;  %v851_v30 = vrot.slane %v6150_v36, 5 }
 0xb53   : > { %v5279_v61 = vpop.eup %5278 }
 0xb54   : > { %v1003_v37 = vadd.f32 1.0, %v5279_v61  ;;  %v844_v61 = vrot.slane %v6154_v16, 5  ;;  %v852_v58 = vsel %vm843_vm4, %v849_v62, %v851_v30  ;;  %v972_v62 = vmul.f32 %v5303_v55, %v6110_v54 }
 0xb55   : > { %v860_v52 = vadd.f32 %v852_v58, %v842_v15  ;;  %v880_v55 = vrot.slane %v6154_v16, 4 }
 0xb56   : > { %5280 = vrcp.f32 %v1003_v37  ;;  %v975_v37 = vmul.f32 %v6150_v36, %v6110_v54  ;;  %v846_v2 = vsel %vm843_vm4, %v844_v61, %v845_v34  ;;  %v986_v7 = vadd.f32 %v6112_v6, %v972_v62 }
 0xb57   : > { %v897_v54 = vrot.slane %v6166_v4, 4 }
 0xb58   : > { %v989_v21 = vadd.f32 %v6112_v6, %v975_v37  ;;  %v990_v42 = vsub.f32 0.0, %v986_v7 }
 0xb5a   : > { %v993_v34 = vsub.f32 0.0, %v989_v21  ;;  %v994_v37 = vmul.f32 1.442695, %v990_v42 }
 0xb5c   : > { %v1000_v57 = vmul.f32 1.442695, %v993_v34 }
 0xb5e   : > { %5282 = vpow2.f32 %v1000_v57 }
 0xb63   : > { %v5281_v51 = vpop.eup %5280 }
 0xb64   : > { %v1015_v22 = vmul.f32 %v5281_v51, %v933_v46  ;;  %v1019_v53 = vsub.f32 1.0, %v5281_v51  ;;  %v870_v46 = vsel %vm861_vm5, %v867_v20, %v869_v3  ;;  %v988_v51 = vadd.f32 %v6112_v6, %v974_v25 }
 0xb65   : > { %v911_v20 = vrot.slane %v6166_v4, 5 }
 0xb66   : > { %v1023_v33 = vmul.f32 %v1019_v53, %v959_v41  ;;  %v887_v41 = vrot.slane %v6150_v36, 4  ;;  %v857_v53 = vadd.f32 %v846_v2, %v839_v29  ;;  %v992_v56 = vsub.f32 0.0, %v988_v51 }
 0xb67   : > { %v912_v29 = vsel %vm843_vm4, %v851_v30, %v911_v20  ;;  %v918_v51 = vrot.slane %v6154_v16, 2 }
 0xb68   : > { %v6147_v24 = vadd.f32 %v1023_v33, %v1015_v22  ;;  %v859_v22 = vadd.f32 %v5672_v14, %v841_v32  ;;  %v878_v33 = vadd.f32 %v870_v46, %v860_v52  ;;  %v888_v26 = vsel %vm879_vm6, %v885_v50, %v887_v41 }
 0xb69   : > { %v875_v43 = vadd.f32 %v5661_v5, %v857_v53  ;;  %v998_v45 = vmul.f32 1.442695, %v992_v56  ;;  %v898_v44 = vsel %vm879_vm6, %v887_v41, %v897_v54  ;;  %v882_v50 = vsel %vm879_vm6, %v880_v55, %v6373_v11 }
 0xb6a   : > { %v877_v12 = vadd.f32 %v868_v19, %v859_v22  ;;  %v896_v14 = vadd.f32 %v888_v26, %v878_v33  ;;  %v904_v5 = vrot.slane %v6154_v16, 3  ;;  %v925_v46 = vrot.slane %v6166_v4, 6 }
 0xb6b   : > { %v893_v15 = vadd.f32 %v882_v50, %v875_v43  ;;  %5284 = vpow2.f32 %v998_v45  ;;  %v6375_v33 = vrot.slane %v5533_v9, 2  ;;  %v6376_v45 = vrot.slane %v5610_v48, 7 }
 0xb6c   : > { %v895_v6 = vadd.f32 %v5639_v63, %v877_v12  ;;  %v903_v61 = vadd.f32 %v898_v44, %v896_v14  ;;  %5286 = vpow2.f32 %v994_v37  ;;  %v6374_v63 = vrot.slane %v5533_v9, 3 }
 0xb6d   : > { %v900_v32 = vadd.f32 %v893_v15, %v5615_v49  ;;  %v926_v49 = vsel %vm807_vm2, %v815_v35, %v925_v46  ;;  %v919_v34 = vsel %vm825_vm3, %v918_v51, %v6375_v33 }
 0xb6e   : > { %v902_v3 = vadd.f32 %v895_v6, %v888_v26  ;;  %v910_v25 = vadd.f32 %v903_v61, %v868_v19  ;;  %v905_v52 = vsel %vm861_vm5, %v904_v5, %v6374_v63  ;;  %v5283_v19 = vpop.eup %5282  ;;  %v6377_v6 = vrot.slane %v5533_v9, 1 }
 0xb6f   : > { %v907_v41 = vadd.f32 %v905_v52, %v900_v32  ;;  %v1005_v26 = vadd.f32 1.0, %v5283_v19 }
 0xb70   : > { %v909_v2 = vadd.f32 %v902_v3, %v5607_v47  ;;  %v917_v21 = vadd.f32 %v912_v29, %v910_v25 }
 0xb71   : > { %v914_v30 = vadd.f32 %v907_v41, %v5595_v39  ;;  %v936_v39 = vrot.slane %v6154_v16, 1  ;;  %5288 = vrcp.f32 %v1005_v26 }
 0xb72   : > { %v916_v62 = vadd.f32 %v909_v2, %v852_v58  ;;  %v924_v22 = vadd.f32 %v917_v21, %v832_v13  ;;  %v943_v13 = vrot.slane %v6166_v4, 7 }
 0xb73   : > { %v921_v54 = vadd.f32 %v919_v34, %v914_v30  ;;  %v937_v61 = vsel %vm785_vm1, %v936_v39, %v6377_v6 }
 0xb74   : > { %v923_v53 = vadd.f32 %v916_v62, %v5590_v38  ;;  %v931_v7 = vadd.f32 %v926_v49, %v924_v22  ;;  %v944_v44 = vsel %vm766_vm0, %v6376_v45, %v943_v13  ;;  %vm4395_vm0 = vcmask 31744  }
 0xb75   : > { %v928_v11 = vadd.f32 %v921_v54, %v5574_v28 }
 0xb76   : > { %v930_v35 = vadd.f32 %v923_v53, %v6163_v31  ;;  %v942_v43 = vadd.f32 %v931_v7, %v5642_v0  ;;  %v935_v46 = vmul.f32 0.07692308, %v931_v7 }
 0xb77   : > { %v939_v20 = vadd.f32 %v937_v61, %v928_v11  ;;  %v932_v26 = vmul.f32 0.07692308, %v928_v11  ;;  %v4231_v11 = vld [vmem:[%s6340_s20 + $0x8] sm:$0xff] }
 0xb78   : > { %v5285_v47 = vpop.eup %5284  ;;  %v941_v31 = vadd.f32 %v930_v35, %v5567_v27  ;;  %v949_v0 = vadd.f32 %v944_v44, %v942_v43  ;;  %v4232_v44 = vld [vmem:[%s6340_s20 + $0x10] sm:$0xff] }
 0xb79   : > { %v1004_v58 = vadd.f32 1.0, %v5285_v47  ;;  %v5287_v55 = vpop.eup %5286  ;;  %v946_v27 = vadd.f32 %v939_v20, %v5556_v23  ;;  %v4564_v23 = vld [vmem:[%s6371_s5 + $0x4] ss:$0 sm:$0xff]  ;;  %v4566_v20 = vld [vmem:[%s6337_s17] ss:$0 sm:$0xff] }
 0xb7a   : > { %v1002_v42 = vadd.f32 1.0, %v5287_v55  ;;  %v948_v48 = vadd.f32 %v941_v31, %v5647_v1  ;;  %v953_v25 = vadd.f32 %v6143_v17, %v949_v0 }
 0xb7b   : > { %5290 = vrcp.f32 %v1004_v58  ;;  %v950_v63 = vadd.f32 %v6154_v16, %v946_v27  ;;  %v934_v16 = vmul.f32 0.07692308, %v930_v35 }
 0xb7c   : > { %v952_v9 = vadd.f32 %v6115_v60, %v948_v48  ;;  %v957_v29 = vadd.f32 %v6166_v4, %v953_v25 }
 0xb7d   : > { %v954_v22 = vadd.f32 %v6115_v60, %v950_v63 }
 0xb7e   : > { %v5289_v2 = vpop.eup %5288  ;;  %v956_v21 = vadd.f32 %v6150_v36, %v952_v9  ;;  %v961_v17 = vmul.f32 0.05882353, %v957_v29 }
 0xb7f   : > { %v1021_v62 = vsub.f32 1.0, %v5289_v2  ;;  %v1017_v53 = vmul.f32 %v5289_v2, %v935_v46  ;;  %v958_v7 = vmul.f32 0.05882353, %v954_v22  ;;  %v4572_v2 = vld [vmem:[%s6341_s21] ss:$0 sm:$0xff] }
 0xb80   : > { %v960_v49 = vmul.f32 0.05882353, %v956_v21 }
 0xb81   : > { %v1025_v33 = vmul.f32 %v1021_v62, %v961_v17 }
 0xb83   : > { %v1029_v55 = vadd.f32 %v1025_v33, %v1017_v53 }
 0xb88   : > { %v5291_v52 = vpop.eup %5290 }
 0xb89   : > { %v1020_v30 = vsub.f32 1.0, %v5291_v52  ;;  %v1016_v60 = vmul.f32 %v5291_v52, %v934_v16 }
 0xb8b   : > { %v1024_v13 = vmul.f32 %v1020_v30, %v960_v49 }
 0xbc0   : > { %v4003_v56 = vpop.xlane.xlu0 %4002 }
 0xbc1   : > { %v4011_v12 = vmul.f32 0.03125, %v4003_v56 }
 0xbc2   : > { %v4000_v14 = vpop.xlane.xlu1 %3999 }
 0xbc3   : > { %v4015_v38 = vadd.f32 1e-05, %v4011_v12  ;;  %v4010_v57 = vmul.f32 0.03125, %v4000_v14  ;;  %v1028_v14 = vadd.f32 %v1024_v13, %v1016_v60 }
 0xbc5   : > { %5292 = vrsqrt.f32 %v4015_v38  ;;  %v4014_v50 = vadd.f32 1e-05, %v4010_v57 }
 0xbc6   : > { %v4006_v15 = vpop.xlane.xlu1 %4005 }
 0xbc7   : > { %5294 = vrsqrt.f32 %v4014_v50  ;;  %v4012_v37 = vmul.f32 0.03125, %v4006_v15  ;;  %v4230_v50 = vld [vmem:[%s6340_s20] sm:$0xff] }
 0xbc8   : > { %5296 = vrcp.f32 %v1002_v42  ;;  %v4319_v63 = vpop.permute.xlu0 %4318 }
 0xbc9   : > { %v4016_v3 = vadd.f32 1e-05, %v4012_v37 }
 0xbca   : > { %v4009_v5 = vpop.xlane.xlu1 %4008 }
 0xbcb   : > { %5298 = vrsqrt.f32 %v4016_v3  ;;  %v4013_v28 = vmul.f32 0.03125, %v4009_v5 }
 0xbcd   : > { %v4017_v32 = vadd.f32 1e-05, %v4013_v28 }
 0xbce   : > { %v4155_v37 = vpop.permute.xlu1 %4154 }
 0xbcf   : > { %5300 = vrsqrt.f32 %v4017_v32  ;;  %v4314_v32 = vld [vmem:[%s6342_s22] sm:$0xff] }
 0xbd2   : > { %v5293_v1 = vpop.eup %5292 }
 0xbd3   : > { %v4023_v41 = vmul.f32 %v5293_v1, %v6091_v40  ;;  %v4565_v40 = vld [vmem:[%s6371_s5 + $0x5] ss:$0 sm:$0xff] }
 0xbd4   : > { %v5295_v51 = vpop.eup %5294 }
 0xbd5   : > { %v5297_v4 = vpop.eup %5296  ;;  %v4022_v19 = vmul.f32 %v5295_v51, %v6093_v8  ;;  %v4031_v36 = vmul.f32 %v4564_v23, %v4023_v41 }
 0xbd6   : > { %v1018_v58 = vsub.f32 1.0, %v5297_v4  ;;  %v1014_v39 = vmul.f32 %v5297_v4, %v932_v26 }
 0xbd7   : > { %v4030_v47 = vmul.f32 %v4564_v23, %v4022_v19  ;;  %v4039_v54 = vadd.f32 %v4565_v40, %v4031_v36 }
 0xbd8   : > { %v5299_v34 = vpop.eup %5298  ;;  %v1022_v57 = vmul.f32 %v1018_v58, %v958_v7 }
 0xbd9   : > { %v4038_v56 = vadd.f32 %v4565_v40, %v4030_v47  ;;  %v4024_v8 = vmul.f32 %v5299_v34, %v6102_v59 }
 0xbda   : > { %v1026_v42 = vadd.f32 %v1022_v57, %v1014_v39 }
 0xbdb   : > { %5174 = vmatprep.mubr.msk.f32.mxu1 %vm1038_vm7, %v4038_v56  ;;  %v4032_v12 = vmul.f32 %v4564_v23, %v4024_v8 }
 0xbdc   : > { %v5301_v35 = vpop.eup %5300  ;;  %5175 = vmatmul.mubr.msk.f32.vlgmr.msra.gmra.mxu1 %vm1038_vm7, %v4039_v54 }
 0xbdd   : > { %5181 = vmatpush3.msra.mxu1 %v1029_v55  ;;  %v4040_v38 = vadd.f32 %v4565_v40, %v4032_v12  ;;  %v4025_v43 = vmul.f32 %v5301_v35, %v6100_v18  ;;  %v4150_v18 = vld [vmem:[%s6338_s18] sm:$0xff] }
 0xbde   : > { %5182 = vmatprep.subr.mxu1 %v5349_v10 }
 0xbdf   : > { %5183 = vmatpush3.msra.mxu1 %v1028_v14  ;;  %5177 = vmatprep.mubr.msk.f32.mxu1 %vm1038_vm7, %v4040_v38  ;;  %v4033_v59 = vmul.f32 %v4564_v23, %v4025_v43 }
 0xbe0   : > { %5184 = vmatprep.subr.mxu1 %v5349_v10 }
 0xbe1   : > { %5185 = vmatpush3.msra.mxu1 %v6147_v24  ;;  %v4041_v45 = vadd.f32 %v4565_v40, %v4033_v59  ;;  %v4233_v24 = vld [vmem:[%s6340_s20 + $0x18] sm:$0xff] }
 0xbe2   : > { %5186 = vmatprep.subr.mxu1 %v5349_v10 }
 0xbe3   : > { %5187 = vmatpush3.msra.mxu1 %v1026_v42 }
 0xbe4   : > { %5178 = vmatmul.mubr.msk.f32.gmra.mxu1 %vm1038_vm7, %v4041_v45  ;;  %5191 = vmatprep.subr.mxu1 %v5349_v10 }
 0xbe5   : > { %5188 = vmatprep.mubr.msk.f32.mxu1 %vm5350_vm8, %v5349_v10 }
 0xbe8   : > { %5189 = vmatmul.mubr.msk.f32.vlgmr.msra.gmra.mxu1 %vm1038_vm7, %v4150_v18 }
 0xbe9   : > { %5199 = vmatprep.mubr.msk.f32.mxu1 %vm5350_vm8, %v5349_v10  ;;  %5192 = vmatpush3.msra.mxu1 %v4233_v24 }
 0xbea   : > { %5193 = vmatprep.subr.mxu1 %v5349_v10 }
 0xbeb   : > { %5194 = vmatpush3.msra.mxu1 %v4232_v44 }
 0xbec   : > { %5195 = vmatprep.subr.mxu1 %v5349_v10 }
 0xbed   : > { %5196 = vmatpush3.msra.mxu1 %v4231_v11 }
 0xbee   : > { %5197 = vmatprep.subr.mxu1 %v5349_v10 }
 0xbef   : > { %5198 = vmatpush3.msra.mxu1 %v4230_v50 }
 0xbf0   : > { %5202 = vmatprep.subr.mxu1 %v5349_v10 }
 0xc9c   : > { %v5176_v31 = vpop.f32.mrf.mxu1 }
 0xc9d   : > { %v4137_v25 = vadd.f32 %v5176_v31, %v4566_v20 }
 0xc9e   : > { %v4131_v6 = vpop.f32.mrf.mxu1 }
 0xc9f   : > { %v4132_v27 = vadd.f32 %v4566_v20, %v4131_v6 }
 0xca4   : > { %v5179_v61 = vpop.f32.mrf.mxu1 }
 0xca5   : > { %v4147_v48 = vadd.f32 %v5179_v61, %v4566_v20 }
 0xca6   : > { %v4141_v15 = vpop.f32.mrf.mxu1 }
 0xca7   : > { %v4142_v28 = vadd.f32 %v4566_v20, %v4141_v15 }
 0xca8   : > { %v4226_v0 = vpop.f32.mrf.mxu1 }
 0xca9   : > { %v4227_v3 = vadd.f32 %v4226_v0, %v4155_v37 }
 0xcaa   : > { %v5190_v5 = vpop.f32.mrf.mxu1 }
 0xcab   : > { %5200 = vmatmul.mubr.msk.f32.vlgmr.msra.gmra.mxu1 %vm1038_vm7, %v4227_v3 }
 0xcac   : > { %5203 = vmatpush3.msra.mxu1 %v4147_v48  ;;  %5210 = vmatprep.mubr.msk.f32.mxu1 %vm5350_vm8, %v5349_v10 }
 0xcad   : > { %5204 = vmatprep.subr.mxu1 %v5349_v10 }
 0xcae   : > { %5205 = vmatpush3.msra.mxu1 %v4142_v28 }
 0xcaf   : > { %5206 = vmatprep.subr.mxu1 %v5349_v10 }
 0xcb0   : > { %5207 = vmatpush3.msra.mxu1 %v4137_v25 }
 0xcb1   : > { %5208 = vmatprep.subr.mxu1 %v5349_v10 }
 0xcb2   : > { %5209 = vmatpush3.msra.mxu1 %v4132_v27 }
 0xcb3   : > { %5211 = vmatmul.mubr.msk.f32.vlgmr.msra.gmra.mxu1 %vm1038_vm7, %v4314_v32 }
 0xd6b   : > { %v4310_v9 = vpop.f32.mrf.mxu1 }
 0xd6c   : > { %v4311_v21 = vadd.f32 %v4572_v2, %v4310_v9 }
 0xd6d   : > { %v5201_v29 = vpop.f32.mrf.mxu1 }
 0xd73   : > { %v4390_v52 = vpop.f32.mrf.mxu1 }
 0xd74   : > { %v4391_v1 = vadd.f32 %v4390_v52, %v4319_v63 }
 0xd75   : > { %v5212_v10 = vpop.f32.mrf.mxu1 }
 0xd76   : > { %v4394_v46 = vadd.f32 %v4391_v1, %v4311_v21 }
 0xd78   : > { %4396 = vst.msk [vmem:[%s754_s30] sm:$0xff] %vm4395_vm0, %v4394_v46 }
 0xd79 PF: > { %s39_s3 = sadd.s32 1, %s5344_s3  }
 0xd7a   : > { %p36_p1 = scmp.ge.s32.totalorder %s39_s3, 4  }
 0xd7c   :  { %38 = sbr.rel (!%p36_p1) target bundleno = 19 (0x13), region = 170 }
 0xd81   :  { %4416 = vsyncpa [#allocation6], 1 }
 0xd82   :  { %4418 = vsyncpa [#allocation6 + $0x1], 1 }

</bundles_post_ra>
